<compile_context>
chip_gen: v7x
topology: tpu7x:2x2x1
jax: 0.10.0
libtpu: 0.0.40
codegen_flags: <defaults>
</compile_context>

<pallas_src>
import math
import functools

import jax
import jax.numpy as jnp
from jax.experimental import pallas as pl
from jax.experimental.pallas import tpu as pltpu  # noqa: F401  (TPU backend)

# ------------------------- configuration (small) -------------------------
D_MODEL = 32          # d_model
NHEAD = 4             # nhead
NUM_ENC = 2           # num_encoder_layers
NUM_DEC = 2           # num_decoder_layers
DIM_FF = 64           # dim_feedforward
LN_EPS = 1e-5         # nn.LayerNorm default eps
NEG_BIG = -1.0e30     # finite "-inf" for masked keys (exp underflows to 0)

BV_WIDTH = 128        # every bias / norm vector stored as one 128-lane row
N_WA_ENC, N_WA_DEC = 3, 5     # (C, .) weight-matrix slots per layer
N_BV_ENC, N_BV_DEC = 10, 16   # bias/norm rows per layer


# --------------------------- in-kernel helpers ----------------------------

def _layer_norm(x, g, b):
    """LayerNorm over the last dim (biased variance, eps=1e-5)."""
    mean = jnp.mean(x, axis=-1, keepdims=True)
    xc = x - mean
    var = jnp.mean(xc * xc, axis=-1, keepdims=True)
    return xc * jax.lax.rsqrt(var + LN_EPS) * g + b


def _split_heads(x2, B, N, H, Dh):
    """(B*N, H*Dh) -> (B*H, N, Dh); batch index g = b*H + h."""
    xt = jnp.swapaxes(x2.reshape(B, N, H * Dh), 1, 2)     # (B, C, N)
    return jnp.swapaxes(xt.reshape(B * H, Dh, N), 1, 2)   # (B*H, N, Dh)


def _split_heads_kt(x2, B, N, H, Dh):
    """(B*N, H*Dh) -> (B*H, Dh, N): per-(b,h) K^T, transposed ONCE."""
    xt = jnp.swapaxes(x2.reshape(B, N, H * Dh), 1, 2)     # (B, C, N)
    return xt.reshape(B * H, Dh, N)


def _merge_heads(o, B, N, H, Dh):
    """(B*H, N, Dh) -> (B*N, H*Dh)."""
    ot = jnp.swapaxes(o, 1, 2).reshape(B, H * Dh, N)      # (B, C, N)
    return jnp.swapaxes(ot, 1, 2).reshape(B * N, H * Dh)


def _mha(q_in, k_in, v_in, kb, w_in, bq, bk, bv, w_out, b_out, *, B, N, H, Dh):
    """nn.MultiheadAttention (eval).  1/sqrt(Dh) is pre-folded into Wq / bq.

    q_in/k_in/v_in: (B*N, C) VMEM values; kb: (B*H, Nq, Nk) additive bias.
    w_in: (C, 3C) packed pre-transposed in-proj; w_out: (C, C) pre-transposed.
    All heads go through ONE batched score matmul / softmax / PV matmul and a
    single merged out-projection.
    """
    C = H * Dh
    f32 = jnp.float32

    # Fused QKV projection when inputs alias (trace-time identity check).
    if q_in is k_in and k_in is v_in:            # decoder self-attn: q = k = v
        qkv = jnp.dot(q_in, w_in, preferred_element_type=f32)
        q2 = qkv[:, :C] + bq
        k2 = qkv[:, C:2 * C] + bk
        v2 = qkv[:, 2 * C:] + bv
    elif q_in is k_in:                           # encoder self-attn: q = k
        qk = jnp.dot(q_in, w_in[:, :2 * C], preferred_element_type=f32)
        q2 = qk[:, :C] + bq
        k2 = qk[:, C:] + bk
        v2 = jnp.dot(v_in, w_in[:, 2 * C:], preferred_element_type=f32) + bv
    else:                                        # cross-attn: all distinct
        q2 = jnp.dot(q_in, w_in[:, :C], preferred_element_type=f32) + bq
        k2 = jnp.dot(k_in, w_in[:, C:2 * C], preferred_element_type=f32) + bk
        v2 = jnp.dot(v_in, w_in[:, 2 * C:], preferred_element_type=f32) + bv

    qh = _split_heads(q2, B, N, H, Dh)           # (B*H, Nq, Dh)
    kt = _split_heads_kt(k2, B, N, H, Dh)        # (B*H, Dh, Nk)  pre-transposed K
    vh = _split_heads(v2, B, N, H, Dh)           # (B*H, Nk, Dh)

    s = jnp.einsum("gqd,gdk->gqk", qh, kt, preferred_element_type=f32) + kb
    m = jnp.max(s, axis=-1, keepdims=True)
    p = jnp.exp(s - m)
    p = p * pl.reciprocal(jnp.sum(p, axis=-1, keepdims=True), approx=True)
    o = jnp.einsum("gqk,gkd->gqd", p, vh, preferred_element_type=f32)

    om = _merge_heads(o, B, N, H, Dh)            # (B*N, C)
    return jnp.dot(om, w_out, preferred_element_type=f32) + b_out


# ------------------------------ fused kernel ------------------------------

def _transformer_kernel(tok_ref, kb_ref, wa_ref, w2_ref, bv_ref, out_ref,
                        *, B, N, C, H, F, n_enc, n_dec):
    Dh = C // H
    f32 = jnp.float32

    left = tok_ref[0]            # (B*N, C)
    right = tok_ref[1]
    pos = tok_ref[2]
    encm = tok_ref[3]            # 1.0 = masked, pre-broadcast to (B*N, C)
    decm = tok_ref[4]
    kb = kb_ref[...]             # (B*H, Nq, Nk) additive key-padding bias

    mkm = encm * decm            # memory/tgt key-padding mask (enc AND dec)

    # masked cross-copy: second assignment reads the already-updated left,
    # exactly matching the sequential in-place torch assignments.
    left = jnp.where(encm > 0.5, right, left)
    right = jnp.where(decm > 0.5, left, right)

    def vec(row, w=C):
        return bv_ref[row:row + 1, :w]           # (1, w) static ref slice

    def attn(q_in, k_in, v_in, wa0, bv0):
        return _mha(q_in, k_in, v_in, kb,
                    wa_ref[wa0],                 # (C, 3C) in-proj (Wq pre-scaled)
                    vec(bv0), vec(bv0 + 1), vec(bv0 + 2),
                    wa_ref[wa0 + 1][:, :C],      # (C, C) out-proj
                    vec(bv0 + 3),
                    B=B, N=N, H=H, Dh=Dh)

    def ffn(x, wa0, w20, bv0):
        h1 = jnp.dot(x, wa_ref[wa0][:, :F], preferred_element_type=f32)
        h1 = jnp.maximum(h1 + vec(bv0, F), 0.0)
        return jnp.dot(h1, w2_ref[w20], preferred_element_type=f32) + vec(bv0 + 1)

    # -------------------------------- encoder --------------------------------
    src = left
    for i in range(n_enc):
        wa0, bv0 = N_WA_ENC * i, N_BV_ENC * i
        qk = src + pos                                   # q = k = src + pos
        src2 = attn(qk, qk, src, wa0, bv0)
        src = _layer_norm(src + src2, vec(bv0 + 6), vec(bv0 + 7))
        src2 = ffn(src, wa0 + 2, i, bv0 + 4)
        src = _layer_norm(src + src2, vec(bv0 + 8), vec(bv0 + 9))
    memory = src

    # -------------------------------- decoder --------------------------------
    tgt = right
    for j in range(n_dec):
        wa0 = N_WA_ENC * n_enc + N_WA_DEC * j
        bv0 = N_BV_ENC * n_enc + N_BV_DEC * j
        # self-attn (query_pos is None): q = k = v = tgt
        tgt2 = attn(tgt, tgt, tgt, wa0, bv0)
        tgt = _layer_norm(tgt + tgt2, vec(bv0 + 10), vec(bv0 + 11))
        # cross-attn: q = tgt, k = memory + pos, v = memory
        kmem = memory + pos
        tgt2 = attn(tgt, kmem, memory, wa0 + 2, bv0 + 4)
        tgt = _layer_norm(tgt + tgt2, vec(bv0 + 12), vec(bv0 + 13))
        tgt2 = ffn(tgt, wa0 + 4, n_enc + j, bv0 + 8)
        tgt = _layer_norm(tgt + tgt2, vec(bv0 + 14), vec(bv0 + 15))
        # output[memory_key_mask.T] = memory[memory_key_mask.T] (per layer)
        tgt = jnp.where(mkm > 0.5, memory, tgt)

    # TODO(synk): if B/N/C grow, make this store lane-dense (last dim multiple
    # of 128), tile attention (online softmax, re-derive VMEM for v7x's 64 MiB)
    # and add a "parallel" batch grid axis so v7x's second TensorCore is used.
    out_ref[...] = tgt


# -------------------------------- wrapper ---------------------------------

def transformer_forward(packed, left_enc, right_dec, pos_embed,
                        enc_key_mask, dec_key_mask):
    """left_enc/right_dec/pos_embed: (B, N, C); masks: (B, N) bool (True=pad)."""
    B, N, C = left_enc.shape
    M = B * N
    H = NHEAD
    F = packed["w2"].shape[1]
    n_enc, n_dec = NUM_ENC, NUM_DEC

    encm = enc_key_mask.astype(jnp.float32)
    decm = dec_key_mask.astype(jnp.float32)
    mkm_bool = jnp.logical_and(enc_key_mask, dec_key_mask)

    # one packed per-token buffer: (5, M, C) = [left | right | pos | encm | decm]
    tok = jnp.stack(
        [left_enc.reshape(M, C), right_dec.reshape(M, C), pos_embed.reshape(M, C),
         jnp.broadcast_to(encm.reshape(M, 1), (M, C)),
         jnp.broadcast_to(decm.reshape(M, 1), (M, C))], axis=0)

    # additive key-padding bias, fully broadcast to (B*H, Nq, Nk), g = b*H + h
    kb = jnp.where(mkm_bool, NEG_BIG, 0.0).astype(jnp.float32)           # (B, N)
    kb = jnp.broadcast_to(kb[:, None, None, :], (B, H, N, N)).reshape(B * H, N, N)

    kernel = functools.partial(_transformer_kernel, B=B, N=N, C=C, H=H, F=F,
                               n_enc=n_enc, n_dec=n_dec)

    # advisory cost estimate for the XLA scheduler around the fused call
    n_attn = n_enc + 2 * n_dec
    attn_flops = 8 * M * C * C + 4 * B * H * N * N * (C // H)
    ffn_flops = 4 * M * C * F
    in_bytes = sum(int(x.size) * 4 for x in
                   (tok, kb, packed["wa"], packed["w2"], packed["bv"]))
    cost = pl.CostEstimate(
        flops=n_attn * attn_flops + (n_enc + n_dec) * ffn_flops,
        transcendentals=n_attn * B * H * N * N + 12 * M,
        bytes_accessed=in_bytes + M * C * 4)

    out2d = pl.pallas_call(
        kernel,
        out_shape=jax.ShapeDtypeStruct((M, C), jnp.float32),
        cost_estimate=cost,
    )(tok, kb, packed["wa"], packed["w2"], packed["bv"])

    return out2d.reshape(B, N, C), jnp.logical_not(mkm_bool)


# ------------------------------ weight packing -----------------------------
# wa : (n_slots, C, 3C)  every (C, .) matrix in its own leading slot (zero pad)
# w2 : (n_ffn,   F, C)   FFN second matmul weights
# bv : (n_rows, 128)     every bias / LayerNorm vector as one 128-lane row
# The 1/sqrt(Dh) attention scale is folded into Wq / bq here (free at runtime).

def pack_params(params):
    C, H = D_MODEL, NHEAD
    scale = 1.0 / math.sqrt(C // H)
    wa, w2, bv = [], [], []

    def pad_cols(m):
        out = jnp.zeros((C, 3 * C), jnp.float32)
        return out.at[:, :m.shape[1]].set(m)

    def add_vec(v):
        v = v.reshape(-1)
        bv.append(jnp.zeros((BV_WIDTH,), jnp.float32).at[:v.shape[0]].set(v))

    def add_attn(a):
        w_in = a["w_in"].at[:, :C].multiply(scale)       # fold scale into Wq
        wa.append(pad_cols(w_in))
        wa.append(pad_cols(a["w_out"]))
        b_in = a["b_in"].reshape(-1)
        add_vec(b_in[:C] * scale)                        # bq (scaled)
        add_vec(b_in[C:2 * C])                           # bk
        add_vec(b_in[2 * C:])                            # bv
        add_vec(a["b_out"])                              # b_out

    def add_common(lp):
        wa.append(pad_cols(lp["w1"]))
        w2.append(lp["w2"])
        add_vec(lp["b1"])
        add_vec(lp["b2"])

    for lp in params["encoder"]:
        add_attn(lp["self_attn"])
        add_common(lp)
        add_vec(lp["norm1_g"]); add_vec(lp["norm1_b"])
        add_vec(lp["norm2_g"]); add_vec(lp["norm2_b"])
    for lp in params["decoder"]:
        add_attn(lp["self_attn"])
        add_attn(lp["cross_attn"])
        add_common(lp)
        add_vec(lp["norm1_g"]); add_vec(lp["norm1_b"])
        add_vec(lp["norm2_g"]); add_vec(lp["norm2_b"])
        add_vec(lp["norm3_g"]); add_vec(lp["norm3_b"])

    return {"wa": jnp.stack(wa), "w2": jnp.stack(w2), "bv": jnp.stack(bv)}


# ------------------------------- parameters -------------------------------
# Weights are stored PRE-TRANSPOSED ((in_features, out_features) = torch .T).

def _xavier(key, fan_in, fan_out, shape):
    a = math.sqrt(6.0 / (fan_in + fan_out))
    return jax.random.uniform(key, shape, jnp.float32, -a, a)


def _init_attn(key, C):
    k1, k2 = jax.random.split(key)
    return {
        "w_in": _xavier(k1, C, 3 * C, (C, 3 * C)),   # packed Wq|Wk|Wv, transposed
        "b_in": jnp.zeros((1, 3 * C), jnp.float32),
        "w_out": _xavier(k2, C, C, (C, C)),          # out_proj.weight.T
        "b_out": jnp.zeros((1, C), jnp.float32),
    }


def _init_encoder_layer(key, C, F):
    ks = jax.random.split(key, 3)
    return {
        "self_attn": _init_attn(ks[0], C),
        "w1": _xavier(ks[1], C, F, (C, F)),
        "b1": jnp.zeros((1, F), jnp.float32),
        "w2": _xavier(ks[2], F, C, (F, C)),
        "b2": jnp.zeros((1, C), jnp.float32),
        "norm1_g": jnp.ones((1, C), jnp.float32),
        "norm1_b": jnp.zeros((1, C), jnp.float32),
        "norm2_g": jnp.ones((1, C), jnp.float32),
        "norm2_b": jnp.zeros((1, C), jnp.float32),
    }


def _init_decoder_layer(key, C, F):
    ks = jax.random.split(key, 4)
    return {
        "self_attn": _init_attn(ks[0], C),
        "cross_attn": _init_attn(ks[1], C),
        "w1": _xavier(ks[2], C, F, (C, F)),
        "b1": jnp.zeros((1, F), jnp.float32),
        "w2": _xavier(ks[3], F, C, (F, C)),
        "b2": jnp.zeros((1, C), jnp.float32),
        "norm1_g": jnp.ones((1, C), jnp.float32),
        "norm1_b": jnp.zeros((1, C), jnp.float32),
        "norm2_g": jnp.ones((1, C), jnp.float32),
        "norm2_b": jnp.zeros((1, C), jnp.float32),
        "norm3_g": jnp.ones((1, C), jnp.float32),
        "norm3_b": jnp.zeros((1, C), jnp.float32),
    }


def init_params(key, C=D_MODEL, F=DIM_FF, n_enc=NUM_ENC, n_dec=NUM_DEC):
    keys = jax.random.split(key, n_enc + n_dec)
    return {
        "encoder": [_init_encoder_layer(keys[i], C, F) for i in range(n_enc)],
        "decoder": [_init_decoder_layer(keys[n_enc + i], C, F)
                    for i in range(n_dec)],
    }


# ---------------------------------- main ----------------------------------

if __name__ == "__main__":
    key = jax.random.PRNGKey(0)
    B, N, C = 2, 8, D_MODEL

    k_left, k_right, k_pos, k_par = jax.random.split(key, 4)
    left_enc = jax.random.normal(k_left, (B, N, C), jnp.float32)
    right_dec = jax.random.normal(k_right, (B, N, C), jnp.float32)
    pos_embed = jax.random.normal(k_pos, (B, N, C), jnp.float32)

    idx = jnp.arange(N)
    enc_key_mask = jnp.stack([(idx % 3) == 0, (idx % 4) == 0])   # (B, N) bool
    dec_key_mask = jnp.stack([(idx % 2) == 0, (idx % 3) == 1])   # (B, N) bool

    packed = pack_params(init_params(k_par))

    fwd = jax.jit(transformer_forward)
    out, not_masked = fwd(packed, left_enc, right_dec, pos_embed,
                          enc_key_mask, dec_key_mask)
    jax.block_until_ready(out)

    assert out.shape == (B, N, C)
    assert not_masked.shape == (B, N)
    assert not bool(jnp.any(jnp.isnan(out)))
    print("KERNEL_OK")
</pallas_src>

<mosaic_0001>
module attributes {stable_mosaic.version = 11 : i64} {
  func.func @_transformer_kernel(%arg0: memref<5x16x32xf32, #tpu.memory_space<vmem>>, %arg1: memref<8x8x8xf32, #tpu.memory_space<vmem>>, %arg2: memref<16x32x96xf32, #tpu.memory_space<vmem>>, %arg3: memref<4x64x32xf32, #tpu.memory_space<vmem>>, %arg4: memref<52x128xf32, #tpu.memory_space<vmem>>, %arg5: memref<16x32xf32, #tpu.memory_space<vmem>>) attributes {dimension_semantics = [], scalar_prefetch = 0 : i64, scratch_operands = 0 : i64, tpu.core_type = #tpu.core_type<tc>} {
    %c0 = arith.constant 0 : index
    %c0_0 = arith.constant 0 : index
    %c0_1 = arith.constant 0 : index
    %0 = vector.load %arg0[%c0, %c0_0, %c0_1] : memref<5x16x32xf32, #tpu.memory_space<vmem>>, vector<1x16x32xf32>
    %1 = vector.shape_cast %0 : vector<1x16x32xf32> to vector<16x32xf32>
    %c1 = arith.constant 1 : index
    %c0_2 = arith.constant 0 : index
    %c0_3 = arith.constant 0 : index
    %2 = vector.load %arg0[%c1, %c0_2, %c0_3] : memref<5x16x32xf32, #tpu.memory_space<vmem>>, vector<1x16x32xf32>
    %3 = vector.shape_cast %2 : vector<1x16x32xf32> to vector<16x32xf32>
    %c2 = arith.constant 2 : index
    %c0_4 = arith.constant 0 : index
    %c0_5 = arith.constant 0 : index
    %4 = vector.load %arg0[%c2, %c0_4, %c0_5] : memref<5x16x32xf32, #tpu.memory_space<vmem>>, vector<1x16x32xf32>
    %5 = vector.shape_cast %4 : vector<1x16x32xf32> to vector<16x32xf32>
    %c3 = arith.constant 3 : index
    %c0_6 = arith.constant 0 : index
    %c0_7 = arith.constant 0 : index
    %6 = vector.load %arg0[%c3, %c0_6, %c0_7] : memref<5x16x32xf32, #tpu.memory_space<vmem>>, vector<1x16x32xf32>
    %7 = vector.shape_cast %6 : vector<1x16x32xf32> to vector<16x32xf32>
    %c4 = arith.constant 4 : index
    %c0_8 = arith.constant 0 : index
    %c0_9 = arith.constant 0 : index
    %8 = vector.load %arg0[%c4, %c0_8, %c0_9] : memref<5x16x32xf32, #tpu.memory_space<vmem>>, vector<1x16x32xf32>
    %9 = vector.shape_cast %8 : vector<1x16x32xf32> to vector<16x32xf32>
    %c0_10 = arith.constant 0 : index
    %c0_11 = arith.constant 0 : index
    %c0_12 = arith.constant 0 : index
    %10 = vector.load %arg1[%c0_10, %c0_11, %c0_12] : memref<8x8x8xf32, #tpu.memory_space<vmem>>, vector<8x8x8xf32>
    %11 = arith.mulf %7, %9 : vector<16x32xf32>
    %cst = arith.constant 5.000000e-01 : f32
    %12 = vector.broadcast %cst : f32 to vector<16x32xf32>
    %13 = arith.cmpf ogt, %7, %12 : vector<16x32xf32>
    %14 = arith.select %13, %3, %1 : vector<16x32xi1>, vector<16x32xf32>
    %cst_13 = arith.constant 5.000000e-01 : f32
    %15 = vector.broadcast %cst_13 : f32 to vector<16x32xf32>
    %16 = arith.cmpf ogt, %9, %15 : vector<16x32xf32>
    %17 = arith.select %16, %14, %3 : vector<16x32xi1>, vector<16x32xf32>
    %18 = arith.addf %14, %5 : vector<16x32xf32>
    %c0_14 = arith.constant 0 : index
    %c0_15 = arith.constant 0 : index
    %c0_16 = arith.constant 0 : index
    %19 = vector.load %arg2[%c0_14, %c0_15, %c0_16] : memref<16x32x96xf32, #tpu.memory_space<vmem>>, vector<1x32x96xf32>
    %20 = vector.shape_cast %19 : vector<1x32x96xf32> to vector<32x96xf32>
    %c0_17 = arith.constant 0 : index
    %c0_18 = arith.constant 0 : index
    %21 = vector.load %arg4[%c0_17, %c0_18] : memref<52x128xf32, #tpu.memory_space<vmem>>, vector<1x32xf32>
    %c1_19 = arith.constant 1 : index
    %c0_20 = arith.constant 0 : index
    %22 = vector.load %arg4[%c1_19, %c0_20] : memref<52x128xf32, #tpu.memory_space<vmem>>, vector<1x32xf32>
    %c2_21 = arith.constant 2 : index
    %c0_22 = arith.constant 0 : index
    %23 = vector.load %arg4[%c2_21, %c0_22] : memref<52x128xf32, #tpu.memory_space<vmem>>, vector<1x32xf32>
    %c1_23 = arith.constant 1 : index
    %c0_24 = arith.constant 0 : index
    %c0_25 = arith.constant 0 : index
    %24 = vector.load %arg2[%c1_23, %c0_24, %c0_25] : memref<16x32x96xf32, #tpu.memory_space<vmem>>, vector<1x32x96xf32>
    %25 = vector.shape_cast %24 : vector<1x32x96xf32> to vector<32x96xf32>
    %26 = vector.extract_strided_slice %25 {offsets = [0, 0], sizes = [32, 32], strides = [1, 1]} : vector<32x96xf32> to vector<32x32xf32>
    %c3_26 = arith.constant 3 : index
    %c0_27 = arith.constant 0 : index
    %27 = vector.load %arg4[%c3_26, %c0_27] : memref<52x128xf32, #tpu.memory_space<vmem>>, vector<1x32xf32>
    %28 = vector.extract_strided_slice %20 {offsets = [0, 0], sizes = [32, 64], strides = [1, 1]} : vector<32x96xf32> to vector<32x64xf32>
    %cst_28 = arith.constant dense<0.000000e+00> : vector<16x64xf32>
    %29 = tpu.matmul %18, %28, %cst_28 {dimension_numbers = #tpu.dot_dimension_numbers<[1], [0], [0], [1], [0, 0, 1, 1], [], []>} : vector<16x32xf32>, vector<32x64xf32>, vector<16x64xf32> -> vector<16x64xf32>
    %30 = vector.extract_strided_slice %29 {offsets = [0, 0], sizes = [16, 32], strides = [1, 1]} : vector<16x64xf32> to vector<16x32xf32>
    %31 = vector.broadcast %21 : vector<1x32xf32> to vector<16x32xf32>
    %32 = arith.addf %30, %31 : vector<16x32xf32>
    %33 = vector.extract_strided_slice %29 {offsets = [0, 32], sizes = [16, 32], strides = [1, 1]} : vector<16x64xf32> to vector<16x32xf32>
    %34 = vector.broadcast %22 : vector<1x32xf32> to vector<16x32xf32>
    %35 = arith.addf %33, %34 : vector<16x32xf32>
    %36 = vector.extract_strided_slice %20 {offsets = [0, 64], sizes = [32, 32], strides = [1, 1]} : vector<32x96xf32> to vector<32x32xf32>
    %cst_29 = arith.constant dense<0.000000e+00> : vector<16x32xf32>
    %37 = tpu.matmul %14, %36, %cst_29 {dimension_numbers = #tpu.dot_dimension_numbers<[1], [0], [0], [1], [0, 0, 1, 1], [], []>} : vector<16x32xf32>, vector<32x32xf32>, vector<16x32xf32> -> vector<16x32xf32>
    %38 = vector.broadcast %23 : vector<1x32xf32> to vector<16x32xf32>
    %39 = arith.addf %37, %38 : vector<16x32xf32>
    %40 = vector.shape_cast %32 : vector<16x32xf32> to vector<2x8x32xf32>
    %41 = tpu.transpose %40, [0, 2, 1] : vector<2x8x32xf32> -> vector<2x32x8xf32>
    %42 = vector.shape_cast %41 : vector<2x32x8xf32> to vector<8x8x8xf32>
    %43 = tpu.transpose %42, [0, 2, 1] : vector<8x8x8xf32> -> vector<8x8x8xf32>
    %44 = vector.shape_cast %35 : vector<16x32xf32> to vector<2x8x32xf32>
    %45 = tpu.transpose %44, [0, 2, 1] : vector<2x8x32xf32> -> vector<2x32x8xf32>
    %46 = vector.shape_cast %45 : vector<2x32x8xf32> to vector<8x8x8xf32>
    %47 = vector.shape_cast %39 : vector<16x32xf32> to vector<2x8x32xf32>
    %48 = tpu.transpose %47, [0, 2, 1] : vector<2x8x32xf32> -> vector<2x32x8xf32>
    %49 = vector.shape_cast %48 : vector<2x32x8xf32> to vector<8x8x8xf32>
    %50 = tpu.transpose %49, [0, 2, 1] : vector<8x8x8xf32> -> vector<8x8x8xf32>
    "tpu.trace_start"() <{level = 10 : i32, message = "gqd,gdk->gqk"}> : () -> ()
    %cst_30 = arith.constant dense<0.000000e+00> : vector<8x8x8xf32>
    %51 = tpu.matmul %43, %46, %cst_30 {dimension_numbers = #tpu.dot_dimension_numbers<[2], [1], [1], [2], [0, 0, 0, 1, 1, 2], [0], [0]>} : vector<8x8x8xf32>, vector<8x8x8xf32>, vector<8x8x8xf32> -> vector<8x8x8xf32>
    "tpu.trace_stop"() : () -> ()
    %52 = arith.addf %51, %10 : vector<8x8x8xf32>
    %cst_31 = arith.constant dense<0xFF800000> : vector<8x8xf32>
    %53 = vector.multi_reduction <maximumf>, %52, %cst_31 [2] : vector<8x8x8xf32> to vector<8x8xf32>
    %54 = vector.shape_cast %53 : vector<8x8xf32> to vector<8x8x1xf32>
    %55 = vector.broadcast %54 : vector<8x8x1xf32> to vector<8x8x8xf32>
    %56 = arith.subf %52, %55 : vector<8x8x8xf32>
    %57 = math.exp %56 : vector<8x8x8xf32>
    %cst_32 = arith.constant dense<0.000000e+00> : vector<8x8xf32>
    %58 = vector.multi_reduction <add>, %57, %cst_32 [2] : vector<8x8x8xf32> to vector<8x8xf32>
    %59 = vector.shape_cast %58 : vector<8x8xf32> to vector<8x8x1xf32>
    %60 = tpu.reciprocal %59 {approx = true} : vector<8x8x1xf32> -> vector<8x8x1xf32>
    %61 = vector.broadcast %60 : vector<8x8x1xf32> to vector<8x8x8xf32>
    %62 = arith.mulf %57, %61 : vector<8x8x8xf32>
    "tpu.trace_start"() <{level = 10 : i32, message = "gqk,gkd->gqd"}> : () -> ()
    %cst_33 = arith.constant dense<0.000000e+00> : vector<8x8x8xf32>
    %63 = tpu.matmul %62, %50, %cst_33 {dimension_numbers = #tpu.dot_dimension_numbers<[2], [1], [1], [2], [0, 0, 0, 1, 1, 2], [0], [0]>} : vector<8x8x8xf32>, vector<8x8x8xf32>, vector<8x8x8xf32> -> vector<8x8x8xf32>
    "tpu.trace_stop"() : () -> ()
    %64 = tpu.transpose %63, [0, 2, 1] : vector<8x8x8xf32> -> vector<8x8x8xf32>
    %65 = vector.shape_cast %64 : vector<8x8x8xf32> to vector<2x32x8xf32>
    %66 = tpu.transpose %65, [0, 2, 1] : vector<2x32x8xf32> -> vector<2x8x32xf32>
    %67 = vector.shape_cast %66 : vector<2x8x32xf32> to vector<16x32xf32>
    %cst_34 = arith.constant dense<0.000000e+00> : vector<16x32xf32>
    %68 = tpu.matmul %67, %26, %cst_34 {dimension_numbers = #tpu.dot_dimension_numbers<[1], [0], [0], [1], [0, 0, 1, 1], [], []>} : vector<16x32xf32>, vector<32x32xf32>, vector<16x32xf32> -> vector<16x32xf32>
    %69 = vector.broadcast %27 : vector<1x32xf32> to vector<16x32xf32>
    %70 = arith.addf %68, %69 : vector<16x32xf32>
    %71 = arith.addf %14, %70 : vector<16x32xf32>
    %c6 = arith.constant 6 : index
    %c0_35 = arith.constant 0 : index
    %72 = vector.load %arg4[%c6, %c0_35] : memref<52x128xf32, #tpu.memory_space<vmem>>, vector<1x32xf32>
    %c7 = arith.constant 7 : index
    %c0_36 = arith.constant 0 : index
    %73 = vector.load %arg4[%c7, %c0_36] : memref<52x128xf32, #tpu.memory_space<vmem>>, vector<1x32xf32>
    %cst_37 = arith.constant dense<0.000000e+00> : vector<16xf32>
    %74 = vector.multi_reduction <add>, %71, %cst_37 [1] : vector<16x32xf32> to vector<16xf32>
    %75 = vector.shape_cast %74 : vector<16xf32> to vector<16x1xf32>
    %cst_38 = arith.constant 3.200000e+01 : f32
    %76 = vector.broadcast %cst_38 : f32 to vector<16x1xf32>
    %77 = arith.divf %75, %76 : vector<16x1xf32>
    %78 = vector.broadcast %77 : vector<16x1xf32> to vector<16x32xf32>
    %79 = arith.subf %71, %78 : vector<16x32xf32>
    %80 = arith.mulf %79, %79 : vector<16x32xf32>
    %cst_39 = arith.constant dense<0.000000e+00> : vector<16xf32>
    %81 = vector.multi_reduction <add>, %80, %cst_39 [1] : vector<16x32xf32> to vector<16xf32>
    %82 = vector.shape_cast %81 : vector<16xf32> to vector<16x1xf32>
    %cst_40 = arith.constant 3.200000e+01 : f32
    %83 = vector.broadcast %cst_40 : f32 to vector<16x1xf32>
    %84 = arith.divf %82, %83 : vector<16x1xf32>
    %cst_41 = arith.constant 9.99999974E-6 : f32
    %85 = vector.broadcast %cst_41 : f32 to vector<16x1xf32>
    %86 = arith.addf %84, %85 : vector<16x1xf32>
    %87 = math.rsqrt %86 : vector<16x1xf32>
    %88 = vector.broadcast %87 : vector<16x1xf32> to vector<16x32xf32>
    %89 = arith.mulf %79, %88 : vector<16x32xf32>
    %90 = vector.broadcast %72 : vector<1x32xf32> to vector<16x32xf32>
    %91 = arith.mulf %89, %90 : vector<16x32xf32>
    %92 = vector.broadcast %73 : vector<1x32xf32> to vector<16x32xf32>
    %93 = arith.addf %91, %92 : vector<16x32xf32>
    %c2_42 = arith.constant 2 : index
    %c0_43 = arith.constant 0 : index
    %c0_44 = arith.constant 0 : index
    %94 = vector.load %arg2[%c2_42, %c0_43, %c0_44] : memref<16x32x96xf32, #tpu.memory_space<vmem>>, vector<1x32x96xf32>
    %95 = vector.shape_cast %94 : vector<1x32x96xf32> to vector<32x96xf32>
    %96 = vector.extract_strided_slice %95 {offsets = [0, 0], sizes = [32, 64], strides = [1, 1]} : vector<32x96xf32> to vector<32x64xf32>
    %cst_45 = arith.constant dense<0.000000e+00> : vector<16x64xf32>
    %97 = tpu.matmul %93, %96, %cst_45 {dimension_numbers = #tpu.dot_dimension_numbers<[1], [0], [0], [1], [0, 0, 1, 1], [], []>} : vector<16x32xf32>, vector<32x64xf32>, vector<16x64xf32> -> vector<16x64xf32>
    %c4_46 = arith.constant 4 : index
    %c0_47 = arith.constant 0 : index
    %98 = vector.load %arg4[%c4_46, %c0_47] : memref<52x128xf32, #tpu.memory_space<vmem>>, vector<1x64xf32>
    %99 = vector.broadcast %98 : vector<1x64xf32> to vector<16x64xf32>
    %100 = arith.addf %97, %99 : vector<16x64xf32>
    %cst_48 = arith.constant 0.000000e+00 : f32
    %101 = vector.broadcast %cst_48 : f32 to vector<16x64xf32>
    %102 = arith.maximumf %100, %101 : vector<16x64xf32>
    %c0_49 = arith.constant 0 : index
    %c0_50 = arith.constant 0 : index
    %c0_51 = arith.constant 0 : index
    %103 = vector.load %arg3[%c0_49, %c0_50, %c0_51] : memref<4x64x32xf32, #tpu.memory_space<vmem>>, vector<1x64x32xf32>
    %104 = vector.shape_cast %103 : vector<1x64x32xf32> to vector<64x32xf32>
    %cst_52 = arith.constant dense<0.000000e+00> : vector<16x32xf32>
    %105 = tpu.matmul %102, %104, %cst_52 {dimension_numbers = #tpu.dot_dimension_numbers<[1], [0], [0], [1], [0, 0, 1, 1], [], []>} : vector<16x64xf32>, vector<64x32xf32>, vector<16x32xf32> -> vector<16x32xf32>
    %c5 = arith.constant 5 : index
    %c0_53 = arith.constant 0 : index
    %106 = vector.load %arg4[%c5, %c0_53] : memref<52x128xf32, #tpu.memory_space<vmem>>, vector<1x32xf32>
    %107 = vector.broadcast %106 : vector<1x32xf32> to vector<16x32xf32>
    %108 = arith.addf %105, %107 : vector<16x32xf32>
    %109 = arith.addf %93, %108 : vector<16x32xf32>
    %c8 = arith.constant 8 : index
    %c0_54 = arith.constant 0 : index
    %110 = vector.load %arg4[%c8, %c0_54] : memref<52x128xf32, #tpu.memory_space<vmem>>, vector<1x32xf32>
    %c9 = arith.constant 9 : index
    %c0_55 = arith.constant 0 : index
    %111 = vector.load %arg4[%c9, %c0_55] : memref<52x128xf32, #tpu.memory_space<vmem>>, vector<1x32xf32>
    %cst_56 = arith.constant dense<0.000000e+00> : vector<16xf32>
    %112 = vector.multi_reduction <add>, %109, %cst_56 [1] : vector<16x32xf32> to vector<16xf32>
    %113 = vector.shape_cast %112 : vector<16xf32> to vector<16x1xf32>
    %cst_57 = arith.constant 3.200000e+01 : f32
    %114 = vector.broadcast %cst_57 : f32 to vector<16x1xf32>
    %115 = arith.divf %113, %114 : vector<16x1xf32>
    %116 = vector.broadcast %115 : vector<16x1xf32> to vector<16x32xf32>
    %117 = arith.subf %109, %116 : vector<16x32xf32>
    %118 = arith.mulf %117, %117 : vector<16x32xf32>
    %cst_58 = arith.constant dense<0.000000e+00> : vector<16xf32>
    %119 = vector.multi_reduction <add>, %118, %cst_58 [1] : vector<16x32xf32> to vector<16xf32>
    %120 = vector.shape_cast %119 : vector<16xf32> to vector<16x1xf32>
    %cst_59 = arith.constant 3.200000e+01 : f32
    %121 = vector.broadcast %cst_59 : f32 to vector<16x1xf32>
    %122 = arith.divf %120, %121 : vector<16x1xf32>
    %cst_60 = arith.constant 9.99999974E-6 : f32
    %123 = vector.broadcast %cst_60 : f32 to vector<16x1xf32>
    %124 = arith.addf %122, %123 : vector<16x1xf32>
    %125 = math.rsqrt %124 : vector<16x1xf32>
    %126 = vector.broadcast %125 : vector<16x1xf32> to vector<16x32xf32>
    %127 = arith.mulf %117, %126 : vector<16x32xf32>
    %128 = vector.broadcast %110 : vector<1x32xf32> to vector<16x32xf32>
    %129 = arith.mulf %127, %128 : vector<16x32xf32>
    %130 = vector.broadcast %111 : vector<1x32xf32> to vector<16x32xf32>
    %131 = arith.addf %129, %130 : vector<16x32xf32>
    %132 = arith.addf %131, %5 : vector<16x32xf32>
    %c3_61 = arith.constant 3 : index
    %c0_62 = arith.constant 0 : index
    %c0_63 = arith.constant 0 : index
    %133 = vector.load %arg2[%c3_61, %c0_62, %c0_63] : memref<16x32x96xf32, #tpu.memory_space<vmem>>, vector<1x32x96xf32>
    %134 = vector.shape_cast %133 : vector<1x32x96xf32> to vector<32x96xf32>
    %c10 = arith.constant 10 : index
    %c0_64 = arith.constant 0 : index
    %135 = vector.load %arg4[%c10, %c0_64] : memref<52x128xf32, #tpu.memory_space<vmem>>, vector<1x32xf32>
    %c11 = arith.constant 11 : index
    %c0_65 = arith.constant 0 : index
    %136 = vector.load %arg4[%c11, %c0_65] : memref<52x128xf32, #tpu.memory_space<vmem>>, vector<1x32xf32>
    %c12 = arith.constant 12 : index
    %c0_66 = arith.constant 0 : index
    %137 = vector.load %arg4[%c12, %c0_66] : memref<52x128xf32, #tpu.memory_space<vmem>>, vector<1x32xf32>
    %c4_67 = arith.constant 4 : index
    %c0_68 = arith.constant 0 : index
    %c0_69 = arith.constant 0 : index
    %138 = vector.load %arg2[%c4_67, %c0_68, %c0_69] : memref<16x32x96xf32, #tpu.memory_space<vmem>>, vector<1x32x96xf32>
    %139 = vector.shape_cast %138 : vector<1x32x96xf32> to vector<32x96xf32>
    %140 = vector.extract_strided_slice %139 {offsets = [0, 0], sizes = [32, 32], strides = [1, 1]} : vector<32x96xf32> to vector<32x32xf32>
    %c13 = arith.constant 13 : index
    %c0_70 = arith.constant 0 : index
    %141 = vector.load %arg4[%c13, %c0_70] : memref<52x128xf32, #tpu.memory_space<vmem>>, vector<1x32xf32>
    %142 = vector.extract_strided_slice %134 {offsets = [0, 0], sizes = [32, 64], strides = [1, 1]} : vector<32x96xf32> to vector<32x64xf32>
    %cst_71 = arith.constant dense<0.000000e+00> : vector<16x64xf32>
    %143 = tpu.matmul %132, %142, %cst_71 {dimension_numbers = #tpu.dot_dimension_numbers<[1], [0], [0], [1], [0, 0, 1, 1], [], []>} : vector<16x32xf32>, vector<32x64xf32>, vector<16x64xf32> -> vector<16x64xf32>
    %144 = vector.extract_strided_slice %143 {offsets = [0, 0], sizes = [16, 32], strides = [1, 1]} : vector<16x64xf32> to vector<16x32xf32>
    %145 = vector.broadcast %135 : vector<1x32xf32> to vector<16x32xf32>
    %146 = arith.addf %144, %145 : vector<16x32xf32>
    %147 = vector.extract_strided_slice %143 {offsets = [0, 32], sizes = [16, 32], strides = [1, 1]} : vector<16x64xf32> to vector<16x32xf32>
    %148 = vector.broadcast %136 : vector<1x32xf32> to vector<16x32xf32>
    %149 = arith.addf %147, %148 : vector<16x32xf32>
    %150 = vector.extract_strided_slice %134 {offsets = [0, 64], sizes = [32, 32], strides = [1, 1]} : vector<32x96xf32> to vector<32x32xf32>
    %cst_72 = arith.constant dense<0.000000e+00> : vector<16x32xf32>
    %151 = tpu.matmul %131, %150, %cst_72 {dimension_numbers = #tpu.dot_dimension_numbers<[1], [0], [0], [1], [0, 0, 1, 1], [], []>} : vector<16x32xf32>, vector<32x32xf32>, vector<16x32xf32> -> vector<16x32xf32>
    %152 = vector.broadcast %137 : vector<1x32xf32> to vector<16x32xf32>
    %153 = arith.addf %151, %152 : vector<16x32xf32>
    %154 = vector.shape_cast %146 : vector<16x32xf32> to vector<2x8x32xf32>
    %155 = tpu.transpose %154, [0, 2, 1] : vector<2x8x32xf32> -> vector<2x32x8xf32>
    %156 = vector.shape_cast %155 : vector<2x32x8xf32> to vector<8x8x8xf32>
    %157 = tpu.transpose %156, [0, 2, 1] : vector<8x8x8xf32> -> vector<8x8x8xf32>
    %158 = vector.shape_cast %149 : vector<16x32xf32> to vector<2x8x32xf32>
    %159 = tpu.transpose %158, [0, 2, 1] : vector<2x8x32xf32> -> vector<2x32x8xf32>
    %160 = vector.shape_cast %159 : vector<2x32x8xf32> to vector<8x8x8xf32>
    %161 = vector.shape_cast %153 : vector<16x32xf32> to vector<2x8x32xf32>
    %162 = tpu.transpose %161, [0, 2, 1] : vector<2x8x32xf32> -> vector<2x32x8xf32>
    %163 = vector.shape_cast %162 : vector<2x32x8xf32> to vector<8x8x8xf32>
    %164 = tpu.transpose %163, [0, 2, 1] : vector<8x8x8xf32> -> vector<8x8x8xf32>
    "tpu.trace_start"() <{level = 10 : i32, message = "gqd,gdk->gqk"}> : () -> ()
    %cst_73 = arith.constant dense<0.000000e+00> : vector<8x8x8xf32>
    %165 = tpu.matmul %157, %160, %cst_73 {dimension_numbers = #tpu.dot_dimension_numbers<[2], [1], [1], [2], [0, 0, 0, 1, 1, 2], [0], [0]>} : vector<8x8x8xf32>, vector<8x8x8xf32>, vector<8x8x8xf32> -> vector<8x8x8xf32>
    "tpu.trace_stop"() : () -> ()
    %166 = arith.addf %165, %10 : vector<8x8x8xf32>
    %cst_74 = arith.constant dense<0xFF800000> : vector<8x8xf32>
    %167 = vector.multi_reduction <maximumf>, %166, %cst_74 [2] : vector<8x8x8xf32> to vector<8x8xf32>
    %168 = vector.shape_cast %167 : vector<8x8xf32> to vector<8x8x1xf32>
    %169 = vector.broadcast %168 : vector<8x8x1xf32> to vector<8x8x8xf32>
    %170 = arith.subf %166, %169 : vector<8x8x8xf32>
    %171 = math.exp %170 : vector<8x8x8xf32>
    %cst_75 = arith.constant dense<0.000000e+00> : vector<8x8xf32>
    %172 = vector.multi_reduction <add>, %171, %cst_75 [2] : vector<8x8x8xf32> to vector<8x8xf32>
    %173 = vector.shape_cast %172 : vector<8x8xf32> to vector<8x8x1xf32>
    %174 = tpu.reciprocal %173 {approx = true} : vector<8x8x1xf32> -> vector<8x8x1xf32>
    %175 = vector.broadcast %174 : vector<8x8x1xf32> to vector<8x8x8xf32>
    %176 = arith.mulf %171, %175 : vector<8x8x8xf32>
    "tpu.trace_start"() <{level = 10 : i32, message = "gqk,gkd->gqd"}> : () -> ()
    %cst_76 = arith.constant dense<0.000000e+00> : vector<8x8x8xf32>
    %177 = tpu.matmul %176, %164, %cst_76 {dimension_numbers = #tpu.dot_dimension_numbers<[2], [1], [1], [2], [0, 0, 0, 1, 1, 2], [0], [0]>} : vector<8x8x8xf32>, vector<8x8x8xf32>, vector<8x8x8xf32> -> vector<8x8x8xf32>
    "tpu.trace_stop"() : () -> ()
    %178 = tpu.transpose %177, [0, 2, 1] : vector<8x8x8xf32> -> vector<8x8x8xf32>
    %179 = vector.shape_cast %178 : vector<8x8x8xf32> to vector<2x32x8xf32>
    %180 = tpu.transpose %179, [0, 2, 1] : vector<2x32x8xf32> -> vector<2x8x32xf32>
    %181 = vector.shape_cast %180 : vector<2x8x32xf32> to vector<16x32xf32>
    %cst_77 = arith.constant dense<0.000000e+00> : vector<16x32xf32>
    %182 = tpu.matmul %181, %140, %cst_77 {dimension_numbers = #tpu.dot_dimension_numbers<[1], [0], [0], [1], [0, 0, 1, 1], [], []>} : vector<16x32xf32>, vector<32x32xf32>, vector<16x32xf32> -> vector<16x32xf32>
    %183 = vector.broadcast %141 : vector<1x32xf32> to vector<16x32xf32>
    %184 = arith.addf %182, %183 : vector<16x32xf32>
    %185 = arith.addf %131, %184 : vector<16x32xf32>
    %c16 = arith.constant 16 : index
    %c0_78 = arith.constant 0 : index
    %186 = vector.load %arg4[%c16, %c0_78] : memref<52x128xf32, #tpu.memory_space<vmem>>, vector<1x32xf32>
    %c17 = arith.constant 17 : index
    %c0_79 = arith.constant 0 : index
    %187 = vector.load %arg4[%c17, %c0_79] : memref<52x128xf32, #tpu.memory_space<vmem>>, vector<1x32xf32>
    %cst_80 = arith.constant dense<0.000000e+00> : vector<16xf32>
    %188 = vector.multi_reduction <add>, %185, %cst_80 [1] : vector<16x32xf32> to vector<16xf32>
    %189 = vector.shape_cast %188 : vector<16xf32> to vector<16x1xf32>
    %cst_81 = arith.constant 3.200000e+01 : f32
    %190 = vector.broadcast %cst_81 : f32 to vector<16x1xf32>
    %191 = arith.divf %189, %190 : vector<16x1xf32>
    %192 = vector.broadcast %191 : vector<16x1xf32> to vector<16x32xf32>
    %193 = arith.subf %185, %192 : vector<16x32xf32>
    %194 = arith.mulf %193, %193 : vector<16x32xf32>
    %cst_82 = arith.constant dense<0.000000e+00> : vector<16xf32>
    %195 = vector.multi_reduction <add>, %194, %cst_82 [1] : vector<16x32xf32> to vector<16xf32>
    %196 = vector.shape_cast %195 : vector<16xf32> to vector<16x1xf32>
    %cst_83 = arith.constant 3.200000e+01 : f32
    %197 = vector.broadcast %cst_83 : f32 to vector<16x1xf32>
    %198 = arith.divf %196, %197 : vector<16x1xf32>
    %cst_84 = arith.constant 9.99999974E-6 : f32
    %199 = vector.broadcast %cst_84 : f32 to vector<16x1xf32>
    %200 = arith.addf %198, %199 : vector<16x1xf32>
    %201 = math.rsqrt %200 : vector<16x1xf32>
    %202 = vector.broadcast %201 : vector<16x1xf32> to vector<16x32xf32>
    %203 = arith.mulf %193, %202 : vector<16x32xf32>
    %204 = vector.broadcast %186 : vector<1x32xf32> to vector<16x32xf32>
    %205 = arith.mulf %203, %204 : vector<16x32xf32>
    %206 = vector.broadcast %187 : vector<1x32xf32> to vector<16x32xf32>
    %207 = arith.addf %205, %206 : vector<16x32xf32>
    %c5_85 = arith.constant 5 : index
    %c0_86 = arith.constant 0 : index
    %c0_87 = arith.constant 0 : index
    %208 = vector.load %arg2[%c5_85, %c0_86, %c0_87] : memref<16x32x96xf32, #tpu.memory_space<vmem>>, vector<1x32x96xf32>
    %209 = vector.shape_cast %208 : vector<1x32x96xf32> to vector<32x96xf32>
    %210 = vector.extract_strided_slice %209 {offsets = [0, 0], sizes = [32, 64], strides = [1, 1]} : vector<32x96xf32> to vector<32x64xf32>
    %cst_88 = arith.constant dense<0.000000e+00> : vector<16x64xf32>
    %211 = tpu.matmul %207, %210, %cst_88 {dimension_numbers = #tpu.dot_dimension_numbers<[1], [0], [0], [1], [0, 0, 1, 1], [], []>} : vector<16x32xf32>, vector<32x64xf32>, vector<16x64xf32> -> vector<16x64xf32>
    %c14 = arith.constant 14 : index
    %c0_89 = arith.constant 0 : index
    %212 = vector.load %arg4[%c14, %c0_89] : memref<52x128xf32, #tpu.memory_space<vmem>>, vector<1x64xf32>
    %213 = vector.broadcast %212 : vector<1x64xf32> to vector<16x64xf32>
    %214 = arith.addf %211, %213 : vector<16x64xf32>
    %cst_90 = arith.constant 0.000000e+00 : f32
    %215 = vector.broadcast %cst_90 : f32 to vector<16x64xf32>
    %216 = arith.maximumf %214, %215 : vector<16x64xf32>
    %c1_91 = arith.constant 1 : index
    %c0_92 = arith.constant 0 : index
    %c0_93 = arith.constant 0 : index
    %217 = vector.load %arg3[%c1_91, %c0_92, %c0_93] : memref<4x64x32xf32, #tpu.memory_space<vmem>>, vector<1x64x32xf32>
    %218 = vector.shape_cast %217 : vector<1x64x32xf32> to vector<64x32xf32>
    %cst_94 = arith.constant dense<0.000000e+00> : vector<16x32xf32>
    %219 = tpu.matmul %216, %218, %cst_94 {dimension_numbers = #tpu.dot_dimension_numbers<[1], [0], [0], [1], [0, 0, 1, 1], [], []>} : vector<16x64xf32>, vector<64x32xf32>, vector<16x32xf32> -> vector<16x32xf32>
    %c15 = arith.constant 15 : index
    %c0_95 = arith.constant 0 : index
    %220 = vector.load %arg4[%c15, %c0_95] : memref<52x128xf32, #tpu.memory_space<vmem>>, vector<1x32xf32>
    %221 = vector.broadcast %220 : vector<1x32xf32> to vector<16x32xf32>
    %222 = arith.addf %219, %221 : vector<16x32xf32>
    %223 = arith.addf %207, %222 : vector<16x32xf32>
    %c18 = arith.constant 18 : index
    %c0_96 = arith.constant 0 : index
    %224 = vector.load %arg4[%c18, %c0_96] : memref<52x128xf32, #tpu.memory_space<vmem>>, vector<1x32xf32>
    %c19 = arith.constant 19 : index
    %c0_97 = arith.constant 0 : index
    %225 = vector.load %arg4[%c19, %c0_97] : memref<52x128xf32, #tpu.memory_space<vmem>>, vector<1x32xf32>
    %cst_98 = arith.constant dense<0.000000e+00> : vector<16xf32>
    %226 = vector.multi_reduction <add>, %223, %cst_98 [1] : vector<16x32xf32> to vector<16xf32>
    %227 = vector.shape_cast %226 : vector<16xf32> to vector<16x1xf32>
    %cst_99 = arith.constant 3.200000e+01 : f32
    %228 = vector.broadcast %cst_99 : f32 to vector<16x1xf32>
    %229 = arith.divf %227, %228 : vector<16x1xf32>
    %230 = vector.broadcast %229 : vector<16x1xf32> to vector<16x32xf32>
    %231 = arith.subf %223, %230 : vector<16x32xf32>
    %232 = arith.mulf %231, %231 : vector<16x32xf32>
    %cst_100 = arith.constant dense<0.000000e+00> : vector<16xf32>
    %233 = vector.multi_reduction <add>, %232, %cst_100 [1] : vector<16x32xf32> to vector<16xf32>
    %234 = vector.shape_cast %233 : vector<16xf32> to vector<16x1xf32>
    %cst_101 = arith.constant 3.200000e+01 : f32
    %235 = vector.broadcast %cst_101 : f32 to vector<16x1xf32>
    %236 = arith.divf %234, %235 : vector<16x1xf32>
    %cst_102 = arith.constant 9.99999974E-6 : f32
    %237 = vector.broadcast %cst_102 : f32 to vector<16x1xf32>
    %238 = arith.addf %236, %237 : vector<16x1xf32>
    %239 = math.rsqrt %238 : vector<16x1xf32>
    %240 = vector.broadcast %239 : vector<16x1xf32> to vector<16x32xf32>
    %241 = arith.mulf %231, %240 : vector<16x32xf32>
    %242 = vector.broadcast %224 : vector<1x32xf32> to vector<16x32xf32>
    %243 = arith.mulf %241, %242 : vector<16x32xf32>
    %244 = vector.broadcast %225 : vector<1x32xf32> to vector<16x32xf32>
    %245 = arith.addf %243, %244 : vector<16x32xf32>
    %c6_103 = arith.constant 6 : index
    %c0_104 = arith.constant 0 : index
    %c0_105 = arith.constant 0 : index
    %246 = vector.load %arg2[%c6_103, %c0_104, %c0_105] : memref<16x32x96xf32, #tpu.memory_space<vmem>>, vector<1x32x96xf32>
    %247 = vector.shape_cast %246 : vector<1x32x96xf32> to vector<32x96xf32>
    %c20 = arith.constant 20 : index
    %c0_106 = arith.constant 0 : index
    %248 = vector.load %arg4[%c20, %c0_106] : memref<52x128xf32, #tpu.memory_space<vmem>>, vector<1x32xf32>
    %c21 = arith.constant 21 : index
    %c0_107 = arith.constant 0 : index
    %249 = vector.load %arg4[%c21, %c0_107] : memref<52x128xf32, #tpu.memory_space<vmem>>, vector<1x32xf32>
    %c22 = arith.constant 22 : index
    %c0_108 = arith.constant 0 : index
    %250 = vector.load %arg4[%c22, %c0_108] : memref<52x128xf32, #tpu.memory_space<vmem>>, vector<1x32xf32>
    %c7_109 = arith.constant 7 : index
    %c0_110 = arith.constant 0 : index
    %c0_111 = arith.constant 0 : index
    %251 = vector.load %arg2[%c7_109, %c0_110, %c0_111] : memref<16x32x96xf32, #tpu.memory_space<vmem>>, vector<1x32x96xf32>
    %252 = vector.shape_cast %251 : vector<1x32x96xf32> to vector<32x96xf32>
    %253 = vector.extract_strided_slice %252 {offsets = [0, 0], sizes = [32, 32], strides = [1, 1]} : vector<32x96xf32> to vector<32x32xf32>
    %c23 = arith.constant 23 : index
    %c0_112 = arith.constant 0 : index
    %254 = vector.load %arg4[%c23, %c0_112] : memref<52x128xf32, #tpu.memory_space<vmem>>, vector<1x32xf32>
    %cst_113 = arith.constant dense<0.000000e+00> : vector<16x96xf32>
    %255 = tpu.matmul %17, %247, %cst_113 {dimension_numbers = #tpu.dot_dimension_numbers<[1], [0], [0], [1], [0, 0, 1, 1], [], []>} : vector<16x32xf32>, vector<32x96xf32>, vector<16x96xf32> -> vector<16x96xf32>
    %256 = vector.extract_strided_slice %255 {offsets = [0, 0], sizes = [16, 32], strides = [1, 1]} : vector<16x96xf32> to vector<16x32xf32>
    %257 = vector.broadcast %248 : vector<1x32xf32> to vector<16x32xf32>
    %258 = arith.addf %256, %257 : vector<16x32xf32>
    %259 = vector.extract_strided_slice %255 {offsets = [0, 32], sizes = [16, 32], strides = [1, 1]} : vector<16x96xf32> to vector<16x32xf32>
    %260 = vector.broadcast %249 : vector<1x32xf32> to vector<16x32xf32>
    %261 = arith.addf %259, %260 : vector<16x32xf32>
    %262 = vector.extract_strided_slice %255 {offsets = [0, 64], sizes = [16, 32], strides = [1, 1]} : vector<16x96xf32> to vector<16x32xf32>
    %263 = vector.broadcast %250 : vector<1x32xf32> to vector<16x32xf32>
    %264 = arith.addf %262, %263 : vector<16x32xf32>
    %265 = vector.shape_cast %258 : vector<16x32xf32> to vector<2x8x32xf32>
    %266 = tpu.transpose %265, [0, 2, 1] : vector<2x8x32xf32> -> vector<2x32x8xf32>
    %267 = vector.shape_cast %266 : vector<2x32x8xf32> to vector<8x8x8xf32>
    %268 = tpu.transpose %267, [0, 2, 1] : vector<8x8x8xf32> -> vector<8x8x8xf32>
    %269 = vector.shape_cast %261 : vector<16x32xf32> to vector<2x8x32xf32>
    %270 = tpu.transpose %269, [0, 2, 1] : vector<2x8x32xf32> -> vector<2x32x8xf32>
    %271 = vector.shape_cast %270 : vector<2x32x8xf32> to vector<8x8x8xf32>
    %272 = vector.shape_cast %264 : vector<16x32xf32> to vector<2x8x32xf32>
    %273 = tpu.transpose %272, [0, 2, 1] : vector<2x8x32xf32> -> vector<2x32x8xf32>
    %274 = vector.shape_cast %273 : vector<2x32x8xf32> to vector<8x8x8xf32>
    %275 = tpu.transpose %274, [0, 2, 1] : vector<8x8x8xf32> -> vector<8x8x8xf32>
    "tpu.trace_start"() <{level = 10 : i32, message = "gqd,gdk->gqk"}> : () -> ()
    %cst_114 = arith.constant dense<0.000000e+00> : vector<8x8x8xf32>
    %276 = tpu.matmul %268, %271, %cst_114 {dimension_numbers = #tpu.dot_dimension_numbers<[2], [1], [1], [2], [0, 0, 0, 1, 1, 2], [0], [0]>} : vector<8x8x8xf32>, vector<8x8x8xf32>, vector<8x8x8xf32> -> vector<8x8x8xf32>
    "tpu.trace_stop"() : () -> ()
    %277 = arith.addf %276, %10 : vector<8x8x8xf32>
    %cst_115 = arith.constant dense<0xFF800000> : vector<8x8xf32>
    %278 = vector.multi_reduction <maximumf>, %277, %cst_115 [2] : vector<8x8x8xf32> to vector<8x8xf32>
    %279 = vector.shape_cast %278 : vector<8x8xf32> to vector<8x8x1xf32>
    %280 = vector.broadcast %279 : vector<8x8x1xf32> to vector<8x8x8xf32>
    %281 = arith.subf %277, %280 : vector<8x8x8xf32>
    %282 = math.exp %281 : vector<8x8x8xf32>
    %cst_116 = arith.constant dense<0.000000e+00> : vector<8x8xf32>
    %283 = vector.multi_reduction <add>, %282, %cst_116 [2] : vector<8x8x8xf32> to vector<8x8xf32>
    %284 = vector.shape_cast %283 : vector<8x8xf32> to vector<8x8x1xf32>
    %285 = tpu.reciprocal %284 {approx = true} : vector<8x8x1xf32> -> vector<8x8x1xf32>
    %286 = vector.broadcast %285 : vector<8x8x1xf32> to vector<8x8x8xf32>
    %287 = arith.mulf %282, %286 : vector<8x8x8xf32>
    "tpu.trace_start"() <{level = 10 : i32, message = "gqk,gkd->gqd"}> : () -> ()
    %cst_117 = arith.constant dense<0.000000e+00> : vector<8x8x8xf32>
    %288 = tpu.matmul %287, %275, %cst_117 {dimension_numbers = #tpu.dot_dimension_numbers<[2], [1], [1], [2], [0, 0, 0, 1, 1, 2], [0], [0]>} : vector<8x8x8xf32>, vector<8x8x8xf32>, vector<8x8x8xf32> -> vector<8x8x8xf32>
    "tpu.trace_stop"() : () -> ()
    %289 = tpu.transpose %288, [0, 2, 1] : vector<8x8x8xf32> -> vector<8x8x8xf32>
    %290 = vector.shape_cast %289 : vector<8x8x8xf32> to vector<2x32x8xf32>
    %291 = tpu.transpose %290, [0, 2, 1] : vector<2x32x8xf32> -> vector<2x8x32xf32>
    %292 = vector.shape_cast %291 : vector<2x8x32xf32> to vector<16x32xf32>
    %cst_118 = arith.constant dense<0.000000e+00> : vector<16x32xf32>
    %293 = tpu.matmul %292, %253, %cst_118 {dimension_numbers = #tpu.dot_dimension_numbers<[1], [0], [0], [1], [0, 0, 1, 1], [], []>} : vector<16x32xf32>, vector<32x32xf32>, vector<16x32xf32> -> vector<16x32xf32>
    %294 = vector.broadcast %254 : vector<1x32xf32> to vector<16x32xf32>
    %295 = arith.addf %293, %294 : vector<16x32xf32>
    %296 = arith.addf %17, %295 : vector<16x32xf32>
    %c30 = arith.constant 30 : index
    %c0_119 = arith.constant 0 : index
    %297 = vector.load %arg4[%c30, %c0_119] : memref<52x128xf32, #tpu.memory_space<vmem>>, vector<1x32xf32>
    %c31 = arith.constant 31 : index
    %c0_120 = arith.constant 0 : index
    %298 = vector.load %arg4[%c31, %c0_120] : memref<52x128xf32, #tpu.memory_space<vmem>>, vector<1x32xf32>
    %cst_121 = arith.constant dense<0.000000e+00> : vector<16xf32>
    %299 = vector.multi_reduction <add>, %296, %cst_121 [1] : vector<16x32xf32> to vector<16xf32>
    %300 = vector.shape_cast %299 : vector<16xf32> to vector<16x1xf32>
    %cst_122 = arith.constant 3.200000e+01 : f32
    %301 = vector.broadcast %cst_122 : f32 to vector<16x1xf32>
    %302 = arith.divf %300, %301 : vector<16x1xf32>
    %303 = vector.broadcast %302 : vector<16x1xf32> to vector<16x32xf32>
    %304 = arith.subf %296, %303 : vector<16x32xf32>
    %305 = arith.mulf %304, %304 : vector<16x32xf32>
    %cst_123 = arith.constant dense<0.000000e+00> : vector<16xf32>
    %306 = vector.multi_reduction <add>, %305, %cst_123 [1] : vector<16x32xf32> to vector<16xf32>
    %307 = vector.shape_cast %306 : vector<16xf32> to vector<16x1xf32>
    %cst_124 = arith.constant 3.200000e+01 : f32
    %308 = vector.broadcast %cst_124 : f32 to vector<16x1xf32>
    %309 = arith.divf %307, %308 : vector<16x1xf32>
    %cst_125 = arith.constant 9.99999974E-6 : f32
    %310 = vector.broadcast %cst_125 : f32 to vector<16x1xf32>
    %311 = arith.addf %309, %310 : vector<16x1xf32>
    %312 = math.rsqrt %311 : vector<16x1xf32>
    %313 = vector.broadcast %312 : vector<16x1xf32> to vector<16x32xf32>
    %314 = arith.mulf %304, %313 : vector<16x32xf32>
    %315 = vector.broadcast %297 : vector<1x32xf32> to vector<16x32xf32>
    %316 = arith.mulf %314, %315 : vector<16x32xf32>
    %317 = vector.broadcast %298 : vector<1x32xf32> to vector<16x32xf32>
    %318 = arith.addf %316, %317 : vector<16x32xf32>
    %319 = arith.addf %245, %5 : vector<16x32xf32>
    %c8_126 = arith.constant 8 : index
    %c0_127 = arith.constant 0 : index
    %c0_128 = arith.constant 0 : index
    %320 = vector.load %arg2[%c8_126, %c0_127, %c0_128] : memref<16x32x96xf32, #tpu.memory_space<vmem>>, vector<1x32x96xf32>
    %321 = vector.shape_cast %320 : vector<1x32x96xf32> to vector<32x96xf32>
    %c24 = arith.constant 24 : index
    %c0_129 = arith.constant 0 : index
    %322 = vector.load %arg4[%c24, %c0_129] : memref<52x128xf32, #tpu.memory_space<vmem>>, vector<1x32xf32>
    %c25 = arith.constant 25 : index
    %c0_130 = arith.constant 0 : index
    %323 = vector.load %arg4[%c25, %c0_130] : memref<52x128xf32, #tpu.memory_space<vmem>>, vector<1x32xf32>
    %c26 = arith.constant 26 : index
    %c0_131 = arith.constant 0 : index
    %324 = vector.load %arg4[%c26, %c0_131] : memref<52x128xf32, #tpu.memory_space<vmem>>, vector<1x32xf32>
    %c9_132 = arith.constant 9 : index
    %c0_133 = arith.constant 0 : index
    %c0_134 = arith.constant 0 : index
    %325 = vector.load %arg2[%c9_132, %c0_133, %c0_134] : memref<16x32x96xf32, #tpu.memory_space<vmem>>, vector<1x32x96xf32>
    %326 = vector.shape_cast %325 : vector<1x32x96xf32> to vector<32x96xf32>
    %327 = vector.extract_strided_slice %326 {offsets = [0, 0], sizes = [32, 32], strides = [1, 1]} : vector<32x96xf32> to vector<32x32xf32>
    %c27 = arith.constant 27 : index
    %c0_135 = arith.constant 0 : index
    %328 = vector.load %arg4[%c27, %c0_135] : memref<52x128xf32, #tpu.memory_space<vmem>>, vector<1x32xf32>
    %329 = vector.extract_strided_slice %321 {offsets = [0, 0], sizes = [32, 32], strides = [1, 1]} : vector<32x96xf32> to vector<32x32xf32>
    %cst_136 = arith.constant dense<0.000000e+00> : vector<16x32xf32>
    %330 = tpu.matmul %318, %329, %cst_136 {dimension_numbers = #tpu.dot_dimension_numbers<[1], [0], [0], [1], [0, 0, 1, 1], [], []>} : vector<16x32xf32>, vector<32x32xf32>, vector<16x32xf32> -> vector<16x32xf32>
    %331 = vector.broadcast %322 : vector<1x32xf32> to vector<16x32xf32>
    %332 = arith.addf %330, %331 : vector<16x32xf32>
    %333 = vector.extract_strided_slice %321 {offsets = [0, 32], sizes = [32, 32], strides = [1, 1]} : vector<32x96xf32> to vector<32x32xf32>
    %cst_137 = arith.constant dense<0.000000e+00> : vector<16x32xf32>
    %334 = tpu.matmul %319, %333, %cst_137 {dimension_numbers = #tpu.dot_dimension_numbers<[1], [0], [0], [1], [0, 0, 1, 1], [], []>} : vector<16x32xf32>, vector<32x32xf32>, vector<16x32xf32> -> vector<16x32xf32>
    %335 = vector.broadcast %323 : vector<1x32xf32> to vector<16x32xf32>
    %336 = arith.addf %334, %335 : vector<16x32xf32>
    %337 = vector.extract_strided_slice %321 {offsets = [0, 64], sizes = [32, 32], strides = [1, 1]} : vector<32x96xf32> to vector<32x32xf32>
    %cst_138 = arith.constant dense<0.000000e+00> : vector<16x32xf32>
    %338 = tpu.matmul %245, %337, %cst_138 {dimension_numbers = #tpu.dot_dimension_numbers<[1], [0], [0], [1], [0, 0, 1, 1], [], []>} : vector<16x32xf32>, vector<32x32xf32>, vector<16x32xf32> -> vector<16x32xf32>
    %339 = vector.broadcast %324 : vector<1x32xf32> to vector<16x32xf32>
    %340 = arith.addf %338, %339 : vector<16x32xf32>
    %341 = vector.shape_cast %332 : vector<16x32xf32> to vector<2x8x32xf32>
    %342 = tpu.transpose %341, [0, 2, 1] : vector<2x8x32xf32> -> vector<2x32x8xf32>
    %343 = vector.shape_cast %342 : vector<2x32x8xf32> to vector<8x8x8xf32>
    %344 = tpu.transpose %343, [0, 2, 1] : vector<8x8x8xf32> -> vector<8x8x8xf32>
    %345 = vector.shape_cast %336 : vector<16x32xf32> to vector<2x8x32xf32>
    %346 = tpu.transpose %345, [0, 2, 1] : vector<2x8x32xf32> -> vector<2x32x8xf32>
    %347 = vector.shape_cast %346 : vector<2x32x8xf32> to vector<8x8x8xf32>
    %348 = vector.shape_cast %340 : vector<16x32xf32> to vector<2x8x32xf32>
    %349 = tpu.transpose %348, [0, 2, 1] : vector<2x8x32xf32> -> vector<2x32x8xf32>
    %350 = vector.shape_cast %349 : vector<2x32x8xf32> to vector<8x8x8xf32>
    %351 = tpu.transpose %350, [0, 2, 1] : vector<8x8x8xf32> -> vector<8x8x8xf32>
    "tpu.trace_start"() <{level = 10 : i32, message = "gqd,gdk->gqk"}> : () -> ()
    %cst_139 = arith.constant dense<0.000000e+00> : vector<8x8x8xf32>
    %352 = tpu.matmul %344, %347, %cst_139 {dimension_numbers = #tpu.dot_dimension_numbers<[2], [1], [1], [2], [0, 0, 0, 1, 1, 2], [0], [0]>} : vector<8x8x8xf32>, vector<8x8x8xf32>, vector<8x8x8xf32> -> vector<8x8x8xf32>
    "tpu.trace_stop"() : () -> ()
    %353 = arith.addf %352, %10 : vector<8x8x8xf32>
    %cst_140 = arith.constant dense<0xFF800000> : vector<8x8xf32>
    %354 = vector.multi_reduction <maximumf>, %353, %cst_140 [2] : vector<8x8x8xf32> to vector<8x8xf32>
    %355 = vector.shape_cast %354 : vector<8x8xf32> to vector<8x8x1xf32>
    %356 = vector.broadcast %355 : vector<8x8x1xf32> to vector<8x8x8xf32>
    %357 = arith.subf %353, %356 : vector<8x8x8xf32>
    %358 = math.exp %357 : vector<8x8x8xf32>
    %cst_141 = arith.constant dense<0.000000e+00> : vector<8x8xf32>
    %359 = vector.multi_reduction <add>, %358, %cst_141 [2] : vector<8x8x8xf32> to vector<8x8xf32>
    %360 = vector.shape_cast %359 : vector<8x8xf32> to vector<8x8x1xf32>
    %361 = tpu.reciprocal %360 {approx = true} : vector<8x8x1xf32> -> vector<8x8x1xf32>
    %362 = vector.broadcast %361 : vector<8x8x1xf32> to vector<8x8x8xf32>
    %363 = arith.mulf %358, %362 : vector<8x8x8xf32>
    "tpu.trace_start"() <{level = 10 : i32, message = "gqk,gkd->gqd"}> : () -> ()
    %cst_142 = arith.constant dense<0.000000e+00> : vector<8x8x8xf32>
    %364 = tpu.matmul %363, %351, %cst_142 {dimension_numbers = #tpu.dot_dimension_numbers<[2], [1], [1], [2], [0, 0, 0, 1, 1, 2], [0], [0]>} : vector<8x8x8xf32>, vector<8x8x8xf32>, vector<8x8x8xf32> -> vector<8x8x8xf32>
    "tpu.trace_stop"() : () -> ()
    %365 = tpu.transpose %364, [0, 2, 1] : vector<8x8x8xf32> -> vector<8x8x8xf32>
    %366 = vector.shape_cast %365 : vector<8x8x8xf32> to vector<2x32x8xf32>
    %367 = tpu.transpose %366, [0, 2, 1] : vector<2x32x8xf32> -> vector<2x8x32xf32>
    %368 = vector.shape_cast %367 : vector<2x8x32xf32> to vector<16x32xf32>
    %cst_143 = arith.constant dense<0.000000e+00> : vector<16x32xf32>
    %369 = tpu.matmul %368, %327, %cst_143 {dimension_numbers = #tpu.dot_dimension_numbers<[1], [0], [0], [1], [0, 0, 1, 1], [], []>} : vector<16x32xf32>, vector<32x32xf32>, vector<16x32xf32> -> vector<16x32xf32>
    %370 = vector.broadcast %328 : vector<1x32xf32> to vector<16x32xf32>
    %371 = arith.addf %369, %370 : vector<16x32xf32>
    %372 = arith.addf %318, %371 : vector<16x32xf32>
    %c32 = arith.constant 32 : index
    %c0_144 = arith.constant 0 : index
    %373 = vector.load %arg4[%c32, %c0_144] : memref<52x128xf32, #tpu.memory_space<vmem>>, vector<1x32xf32>
    %c33 = arith.constant 33 : index
    %c0_145 = arith.constant 0 : index
    %374 = vector.load %arg4[%c33, %c0_145] : memref<52x128xf32, #tpu.memory_space<vmem>>, vector<1x32xf32>
    %cst_146 = arith.constant dense<0.000000e+00> : vector<16xf32>
    %375 = vector.multi_reduction <add>, %372, %cst_146 [1] : vector<16x32xf32> to vector<16xf32>
    %376 = vector.shape_cast %375 : vector<16xf32> to vector<16x1xf32>
    %cst_147 = arith.constant 3.200000e+01 : f32
    %377 = vector.broadcast %cst_147 : f32 to vector<16x1xf32>
    %378 = arith.divf %376, %377 : vector<16x1xf32>
    %379 = vector.broadcast %378 : vector<16x1xf32> to vector<16x32xf32>
    %380 = arith.subf %372, %379 : vector<16x32xf32>
    %381 = arith.mulf %380, %380 : vector<16x32xf32>
    %cst_148 = arith.constant dense<0.000000e+00> : vector<16xf32>
    %382 = vector.multi_reduction <add>, %381, %cst_148 [1] : vector<16x32xf32> to vector<16xf32>
    %383 = vector.shape_cast %382 : vector<16xf32> to vector<16x1xf32>
    %cst_149 = arith.constant 3.200000e+01 : f32
    %384 = vector.broadcast %cst_149 : f32 to vector<16x1xf32>
    %385 = arith.divf %383, %384 : vector<16x1xf32>
    %cst_150 = arith.constant 9.99999974E-6 : f32
    %386 = vector.broadcast %cst_150 : f32 to vector<16x1xf32>
    %387 = arith.addf %385, %386 : vector<16x1xf32>
    %388 = math.rsqrt %387 : vector<16x1xf32>
    %389 = vector.broadcast %388 : vector<16x1xf32> to vector<16x32xf32>
    %390 = arith.mulf %380, %389 : vector<16x32xf32>
    %391 = vector.broadcast %373 : vector<1x32xf32> to vector<16x32xf32>
    %392 = arith.mulf %390, %391 : vector<16x32xf32>
    %393 = vector.broadcast %374 : vector<1x32xf32> to vector<16x32xf32>
    %394 = arith.addf %392, %393 : vector<16x32xf32>
    %c10_151 = arith.constant 10 : index
    %c0_152 = arith.constant 0 : index
    %c0_153 = arith.constant 0 : index
    %395 = vector.load %arg2[%c10_151, %c0_152, %c0_153] : memref<16x32x96xf32, #tpu.memory_space<vmem>>, vector<1x32x96xf32>
    %396 = vector.shape_cast %395 : vector<1x32x96xf32> to vector<32x96xf32>
    %397 = vector.extract_strided_slice %396 {offsets = [0, 0], sizes = [32, 64], strides = [1, 1]} : vector<32x96xf32> to vector<32x64xf32>
    %cst_154 = arith.constant dense<0.000000e+00> : vector<16x64xf32>
    %398 = tpu.matmul %394, %397, %cst_154 {dimension_numbers = #tpu.dot_dimension_numbers<[1], [0], [0], [1], [0, 0, 1, 1], [], []>} : vector<16x32xf32>, vector<32x64xf32>, vector<16x64xf32> -> vector<16x64xf32>
    %c28 = arith.constant 28 : index
    %c0_155 = arith.constant 0 : index
    %399 = vector.load %arg4[%c28, %c0_155] : memref<52x128xf32, #tpu.memory_space<vmem>>, vector<1x64xf32>
    %400 = vector.broadcast %399 : vector<1x64xf32> to vector<16x64xf32>
    %401 = arith.addf %398, %400 : vector<16x64xf32>
    %cst_156 = arith.constant 0.000000e+00 : f32
    %402 = vector.broadcast %cst_156 : f32 to vector<16x64xf32>
    %403 = arith.maximumf %401, %402 : vector<16x64xf32>
    %c2_157 = arith.constant 2 : index
    %c0_158 = arith.constant 0 : index
    %c0_159 = arith.constant 0 : index
    %404 = vector.load %arg3[%c2_157, %c0_158, %c0_159] : memref<4x64x32xf32, #tpu.memory_space<vmem>>, vector<1x64x32xf32>
    %405 = vector.shape_cast %404 : vector<1x64x32xf32> to vector<64x32xf32>
    %cst_160 = arith.constant dense<0.000000e+00> : vector<16x32xf32>
    %406 = tpu.matmul %403, %405, %cst_160 {dimension_numbers = #tpu.dot_dimension_numbers<[1], [0], [0], [1], [0, 0, 1, 1], [], []>} : vector<16x64xf32>, vector<64x32xf32>, vector<16x32xf32> -> vector<16x32xf32>
    %c29 = arith.constant 29 : index
    %c0_161 = arith.constant 0 : index
    %407 = vector.load %arg4[%c29, %c0_161] : memref<52x128xf32, #tpu.memory_space<vmem>>, vector<1x32xf32>
    %408 = vector.broadcast %407 : vector<1x32xf32> to vector<16x32xf32>
    %409 = arith.addf %406, %408 : vector<16x32xf32>
    %410 = arith.addf %394, %409 : vector<16x32xf32>
    %c34 = arith.constant 34 : index
    %c0_162 = arith.constant 0 : index
    %411 = vector.load %arg4[%c34, %c0_162] : memref<52x128xf32, #tpu.memory_space<vmem>>, vector<1x32xf32>
    %c35 = arith.constant 35 : index
    %c0_163 = arith.constant 0 : index
    %412 = vector.load %arg4[%c35, %c0_163] : memref<52x128xf32, #tpu.memory_space<vmem>>, vector<1x32xf32>
    %cst_164 = arith.constant dense<0.000000e+00> : vector<16xf32>
    %413 = vector.multi_reduction <add>, %410, %cst_164 [1] : vector<16x32xf32> to vector<16xf32>
    %414 = vector.shape_cast %413 : vector<16xf32> to vector<16x1xf32>
    %cst_165 = arith.constant 3.200000e+01 : f32
    %415 = vector.broadcast %cst_165 : f32 to vector<16x1xf32>
    %416 = arith.divf %414, %415 : vector<16x1xf32>
    %417 = vector.broadcast %416 : vector<16x1xf32> to vector<16x32xf32>
    %418 = arith.subf %410, %417 : vector<16x32xf32>
    %419 = arith.mulf %418, %418 : vector<16x32xf32>
    %cst_166 = arith.constant dense<0.000000e+00> : vector<16xf32>
    %420 = vector.multi_reduction <add>, %419, %cst_166 [1] : vector<16x32xf32> to vector<16xf32>
    %421 = vector.shape_cast %420 : vector<16xf32> to vector<16x1xf32>
    %cst_167 = arith.constant 3.200000e+01 : f32
    %422 = vector.broadcast %cst_167 : f32 to vector<16x1xf32>
    %423 = arith.divf %421, %422 : vector<16x1xf32>
    %cst_168 = arith.constant 9.99999974E-6 : f32
    %424 = vector.broadcast %cst_168 : f32 to vector<16x1xf32>
    %425 = arith.addf %423, %424 : vector<16x1xf32>
    %426 = math.rsqrt %425 : vector<16x1xf32>
    %427 = vector.broadcast %426 : vector<16x1xf32> to vector<16x32xf32>
    %428 = arith.mulf %418, %427 : vector<16x32xf32>
    %429 = vector.broadcast %411 : vector<1x32xf32> to vector<16x32xf32>
    %430 = arith.mulf %428, %429 : vector<16x32xf32>
    %431 = vector.broadcast %412 : vector<1x32xf32> to vector<16x32xf32>
    %432 = arith.addf %430, %431 : vector<16x32xf32>
    %cst_169 = arith.constant 5.000000e-01 : f32
    %433 = vector.broadcast %cst_169 : f32 to vector<16x32xf32>
    %434 = arith.cmpf ogt, %11, %433 : vector<16x32xf32>
    %435 = arith.select %434, %245, %432 : vector<16x32xi1>, vector<16x32xf32>
    %c11_170 = arith.constant 11 : index
    %c0_171 = arith.constant 0 : index
    %c0_172 = arith.constant 0 : index
    %436 = vector.load %arg2[%c11_170, %c0_171, %c0_172] : memref<16x32x96xf32, #tpu.memory_space<vmem>>, vector<1x32x96xf32>
    %437 = vector.shape_cast %436 : vector<1x32x96xf32> to vector<32x96xf32>
    %c36 = arith.constant 36 : index
    %c0_173 = arith.constant 0 : index
    %438 = vector.load %arg4[%c36, %c0_173] : memref<52x128xf32, #tpu.memory_space<vmem>>, vector<1x32xf32>
    %c37 = arith.constant 37 : index
    %c0_174 = arith.constant 0 : index
    %439 = vector.load %arg4[%c37, %c0_174] : memref<52x128xf32, #tpu.memory_space<vmem>>, vector<1x32xf32>
    %c38 = arith.constant 38 : index
    %c0_175 = arith.constant 0 : index
    %440 = vector.load %arg4[%c38, %c0_175] : memref<52x128xf32, #tpu.memory_space<vmem>>, vector<1x32xf32>
    %c12_176 = arith.constant 12 : index
    %c0_177 = arith.constant 0 : index
    %c0_178 = arith.constant 0 : index
    %441 = vector.load %arg2[%c12_176, %c0_177, %c0_178] : memref<16x32x96xf32, #tpu.memory_space<vmem>>, vector<1x32x96xf32>
    %442 = vector.shape_cast %441 : vector<1x32x96xf32> to vector<32x96xf32>
    %443 = vector.extract_strided_slice %442 {offsets = [0, 0], sizes = [32, 32], strides = [1, 1]} : vector<32x96xf32> to vector<32x32xf32>
    %c39 = arith.constant 39 : index
    %c0_179 = arith.constant 0 : index
    %444 = vector.load %arg4[%c39, %c0_179] : memref<52x128xf32, #tpu.memory_space<vmem>>, vector<1x32xf32>
    %cst_180 = arith.constant dense<0.000000e+00> : vector<16x96xf32>
    %445 = tpu.matmul %435, %437, %cst_180 {dimension_numbers = #tpu.dot_dimension_numbers<[1], [0], [0], [1], [0, 0, 1, 1], [], []>} : vector<16x32xf32>, vector<32x96xf32>, vector<16x96xf32> -> vector<16x96xf32>
    %446 = vector.extract_strided_slice %445 {offsets = [0, 0], sizes = [16, 32], strides = [1, 1]} : vector<16x96xf32> to vector<16x32xf32>
    %447 = vector.broadcast %438 : vector<1x32xf32> to vector<16x32xf32>
    %448 = arith.addf %446, %447 : vector<16x32xf32>
    %449 = vector.extract_strided_slice %445 {offsets = [0, 32], sizes = [16, 32], strides = [1, 1]} : vector<16x96xf32> to vector<16x32xf32>
    %450 = vector.broadcast %439 : vector<1x32xf32> to vector<16x32xf32>
    %451 = arith.addf %449, %450 : vector<16x32xf32>
    %452 = vector.extract_strided_slice %445 {offsets = [0, 64], sizes = [16, 32], strides = [1, 1]} : vector<16x96xf32> to vector<16x32xf32>
    %453 = vector.broadcast %440 : vector<1x32xf32> to vector<16x32xf32>
    %454 = arith.addf %452, %453 : vector<16x32xf32>
    %455 = vector.shape_cast %448 : vector<16x32xf32> to vector<2x8x32xf32>
    %456 = tpu.transpose %455, [0, 2, 1] : vector<2x8x32xf32> -> vector<2x32x8xf32>
    %457 = vector.shape_cast %456 : vector<2x32x8xf32> to vector<8x8x8xf32>
    %458 = tpu.transpose %457, [0, 2, 1] : vector<8x8x8xf32> -> vector<8x8x8xf32>
    %459 = vector.shape_cast %451 : vector<16x32xf32> to vector<2x8x32xf32>
    %460 = tpu.transpose %459, [0, 2, 1] : vector<2x8x32xf32> -> vector<2x32x8xf32>
    %461 = vector.shape_cast %460 : vector<2x32x8xf32> to vector<8x8x8xf32>
    %462 = vector.shape_cast %454 : vector<16x32xf32> to vector<2x8x32xf32>
    %463 = tpu.transpose %462, [0, 2, 1] : vector<2x8x32xf32> -> vector<2x32x8xf32>
    %464 = vector.shape_cast %463 : vector<2x32x8xf32> to vector<8x8x8xf32>
    %465 = tpu.transpose %464, [0, 2, 1] : vector<8x8x8xf32> -> vector<8x8x8xf32>
    "tpu.trace_start"() <{level = 10 : i32, message = "gqd,gdk->gqk"}> : () -> ()
    %cst_181 = arith.constant dense<0.000000e+00> : vector<8x8x8xf32>
    %466 = tpu.matmul %458, %461, %cst_181 {dimension_numbers = #tpu.dot_dimension_numbers<[2], [1], [1], [2], [0, 0, 0, 1, 1, 2], [0], [0]>} : vector<8x8x8xf32>, vector<8x8x8xf32>, vector<8x8x8xf32> -> vector<8x8x8xf32>
    "tpu.trace_stop"() : () -> ()
    %467 = arith.addf %466, %10 : vector<8x8x8xf32>
    %cst_182 = arith.constant dense<0xFF800000> : vector<8x8xf32>
    %468 = vector.multi_reduction <maximumf>, %467, %cst_182 [2] : vector<8x8x8xf32> to vector<8x8xf32>
    %469 = vector.shape_cast %468 : vector<8x8xf32> to vector<8x8x1xf32>
    %470 = vector.broadcast %469 : vector<8x8x1xf32> to vector<8x8x8xf32>
    %471 = arith.subf %467, %470 : vector<8x8x8xf32>
    %472 = math.exp %471 : vector<8x8x8xf32>
    %cst_183 = arith.constant dense<0.000000e+00> : vector<8x8xf32>
    %473 = vector.multi_reduction <add>, %472, %cst_183 [2] : vector<8x8x8xf32> to vector<8x8xf32>
    %474 = vector.shape_cast %473 : vector<8x8xf32> to vector<8x8x1xf32>
    %475 = tpu.reciprocal %474 {approx = true} : vector<8x8x1xf32> -> vector<8x8x1xf32>
    %476 = vector.broadcast %475 : vector<8x8x1xf32> to vector<8x8x8xf32>
    %477 = arith.mulf %472, %476 : vector<8x8x8xf32>
    "tpu.trace_start"() <{level = 10 : i32, message = "gqk,gkd->gqd"}> : () -> ()
    %cst_184 = arith.constant dense<0.000000e+00> : vector<8x8x8xf32>
    %478 = tpu.matmul %477, %465, %cst_184 {dimension_numbers = #tpu.dot_dimension_numbers<[2], [1], [1], [2], [0, 0, 0, 1, 1, 2], [0], [0]>} : vector<8x8x8xf32>, vector<8x8x8xf32>, vector<8x8x8xf32> -> vector<8x8x8xf32>
    "tpu.trace_stop"() : () -> ()
    %479 = tpu.transpose %478, [0, 2, 1] : vector<8x8x8xf32> -> vector<8x8x8xf32>
    %480 = vector.shape_cast %479 : vector<8x8x8xf32> to vector<2x32x8xf32>
    %481 = tpu.transpose %480, [0, 2, 1] : vector<2x32x8xf32> -> vector<2x8x32xf32>
    %482 = vector.shape_cast %481 : vector<2x8x32xf32> to vector<16x32xf32>
    %cst_185 = arith.constant dense<0.000000e+00> : vector<16x32xf32>
    %483 = tpu.matmul %482, %443, %cst_185 {dimension_numbers = #tpu.dot_dimension_numbers<[1], [0], [0], [1], [0, 0, 1, 1], [], []>} : vector<16x32xf32>, vector<32x32xf32>, vector<16x32xf32> -> vector<16x32xf32>
    %484 = vector.broadcast %444 : vector<1x32xf32> to vector<16x32xf32>
    %485 = arith.addf %483, %484 : vector<16x32xf32>
    %486 = arith.addf %435, %485 : vector<16x32xf32>
    %c46 = arith.constant 46 : index
    %c0_186 = arith.constant 0 : index
    %487 = vector.load %arg4[%c46, %c0_186] : memref<52x128xf32, #tpu.memory_space<vmem>>, vector<1x32xf32>
    %c47 = arith.constant 47 : index
    %c0_187 = arith.constant 0 : index
    %488 = vector.load %arg4[%c47, %c0_187] : memref<52x128xf32, #tpu.memory_space<vmem>>, vector<1x32xf32>
    %cst_188 = arith.constant dense<0.000000e+00> : vector<16xf32>
    %489 = vector.multi_reduction <add>, %486, %cst_188 [1] : vector<16x32xf32> to vector<16xf32>
    %490 = vector.shape_cast %489 : vector<16xf32> to vector<16x1xf32>
    %cst_189 = arith.constant 3.200000e+01 : f32
    %491 = vector.broadcast %cst_189 : f32 to vector<16x1xf32>
    %492 = arith.divf %490, %491 : vector<16x1xf32>
    %493 = vector.broadcast %492 : vector<16x1xf32> to vector<16x32xf32>
    %494 = arith.subf %486, %493 : vector<16x32xf32>
    %495 = arith.mulf %494, %494 : vector<16x32xf32>
    %cst_190 = arith.constant dense<0.000000e+00> : vector<16xf32>
    %496 = vector.multi_reduction <add>, %495, %cst_190 [1] : vector<16x32xf32> to vector<16xf32>
    %497 = vector.shape_cast %496 : vector<16xf32> to vector<16x1xf32>
    %cst_191 = arith.constant 3.200000e+01 : f32
    %498 = vector.broadcast %cst_191 : f32 to vector<16x1xf32>
    %499 = arith.divf %497, %498 : vector<16x1xf32>
    %cst_192 = arith.constant 9.99999974E-6 : f32
    %500 = vector.broadcast %cst_192 : f32 to vector<16x1xf32>
    %501 = arith.addf %499, %500 : vector<16x1xf32>
    %502 = math.rsqrt %501 : vector<16x1xf32>
    %503 = vector.broadcast %502 : vector<16x1xf32> to vector<16x32xf32>
    %504 = arith.mulf %494, %503 : vector<16x32xf32>
    %505 = vector.broadcast %487 : vector<1x32xf32> to vector<16x32xf32>
    %506 = arith.mulf %504, %505 : vector<16x32xf32>
    %507 = vector.broadcast %488 : vector<1x32xf32> to vector<16x32xf32>
    %508 = arith.addf %506, %507 : vector<16x32xf32>
    %509 = arith.addf %245, %5 : vector<16x32xf32>
    %c13_193 = arith.constant 13 : index
    %c0_194 = arith.constant 0 : index
    %c0_195 = arith.constant 0 : index
    %510 = vector.load %arg2[%c13_193, %c0_194, %c0_195] : memref<16x32x96xf32, #tpu.memory_space<vmem>>, vector<1x32x96xf32>
    %511 = vector.shape_cast %510 : vector<1x32x96xf32> to vector<32x96xf32>
    %c40 = arith.constant 40 : index
    %c0_196 = arith.constant 0 : index
    %512 = vector.load %arg4[%c40, %c0_196] : memref<52x128xf32, #tpu.memory_space<vmem>>, vector<1x32xf32>
    %c41 = arith.constant 41 : index
    %c0_197 = arith.constant 0 : index
    %513 = vector.load %arg4[%c41, %c0_197] : memref<52x128xf32, #tpu.memory_space<vmem>>, vector<1x32xf32>
    %c42 = arith.constant 42 : index
    %c0_198 = arith.constant 0 : index
    %514 = vector.load %arg4[%c42, %c0_198] : memref<52x128xf32, #tpu.memory_space<vmem>>, vector<1x32xf32>
    %c14_199 = arith.constant 14 : index
    %c0_200 = arith.constant 0 : index
    %c0_201 = arith.constant 0 : index
    %515 = vector.load %arg2[%c14_199, %c0_200, %c0_201] : memref<16x32x96xf32, #tpu.memory_space<vmem>>, vector<1x32x96xf32>
    %516 = vector.shape_cast %515 : vector<1x32x96xf32> to vector<32x96xf32>
    %517 = vector.extract_strided_slice %516 {offsets = [0, 0], sizes = [32, 32], strides = [1, 1]} : vector<32x96xf32> to vector<32x32xf32>
    %c43 = arith.constant 43 : index
    %c0_202 = arith.constant 0 : index
    %518 = vector.load %arg4[%c43, %c0_202] : memref<52x128xf32, #tpu.memory_space<vmem>>, vector<1x32xf32>
    %519 = vector.extract_strided_slice %511 {offsets = [0, 0], sizes = [32, 32], strides = [1, 1]} : vector<32x96xf32> to vector<32x32xf32>
    %cst_203 = arith.constant dense<0.000000e+00> : vector<16x32xf32>
    %520 = tpu.matmul %508, %519, %cst_203 {dimension_numbers = #tpu.dot_dimension_numbers<[1], [0], [0], [1], [0, 0, 1, 1], [], []>} : vector<16x32xf32>, vector<32x32xf32>, vector<16x32xf32> -> vector<16x32xf32>
    %521 = vector.broadcast %512 : vector<1x32xf32> to vector<16x32xf32>
    %522 = arith.addf %520, %521 : vector<16x32xf32>
    %523 = vector.extract_strided_slice %511 {offsets = [0, 32], sizes = [32, 32], strides = [1, 1]} : vector<32x96xf32> to vector<32x32xf32>
    %cst_204 = arith.constant dense<0.000000e+00> : vector<16x32xf32>
    %524 = tpu.matmul %509, %523, %cst_204 {dimension_numbers = #tpu.dot_dimension_numbers<[1], [0], [0], [1], [0, 0, 1, 1], [], []>} : vector<16x32xf32>, vector<32x32xf32>, vector<16x32xf32> -> vector<16x32xf32>
    %525 = vector.broadcast %513 : vector<1x32xf32> to vector<16x32xf32>
    %526 = arith.addf %524, %525 : vector<16x32xf32>
    %527 = vector.extract_strided_slice %511 {offsets = [0, 64], sizes = [32, 32], strides = [1, 1]} : vector<32x96xf32> to vector<32x32xf32>
    %cst_205 = arith.constant dense<0.000000e+00> : vector<16x32xf32>
    %528 = tpu.matmul %245, %527, %cst_205 {dimension_numbers = #tpu.dot_dimension_numbers<[1], [0], [0], [1], [0, 0, 1, 1], [], []>} : vector<16x32xf32>, vector<32x32xf32>, vector<16x32xf32> -> vector<16x32xf32>
    %529 = vector.broadcast %514 : vector<1x32xf32> to vector<16x32xf32>
    %530 = arith.addf %528, %529 : vector<16x32xf32>
    %531 = vector.shape_cast %522 : vector<16x32xf32> to vector<2x8x32xf32>
    %532 = tpu.transpose %531, [0, 2, 1] : vector<2x8x32xf32> -> vector<2x32x8xf32>
    %533 = vector.shape_cast %532 : vector<2x32x8xf32> to vector<8x8x8xf32>
    %534 = tpu.transpose %533, [0, 2, 1] : vector<8x8x8xf32> -> vector<8x8x8xf32>
    %535 = vector.shape_cast %526 : vector<16x32xf32> to vector<2x8x32xf32>
    %536 = tpu.transpose %535, [0, 2, 1] : vector<2x8x32xf32> -> vector<2x32x8xf32>
    %537 = vector.shape_cast %536 : vector<2x32x8xf32> to vector<8x8x8xf32>
    %538 = vector.shape_cast %530 : vector<16x32xf32> to vector<2x8x32xf32>
    %539 = tpu.transpose %538, [0, 2, 1] : vector<2x8x32xf32> -> vector<2x32x8xf32>
    %540 = vector.shape_cast %539 : vector<2x32x8xf32> to vector<8x8x8xf32>
    %541 = tpu.transpose %540, [0, 2, 1] : vector<8x8x8xf32> -> vector<8x8x8xf32>
    "tpu.trace_start"() <{level = 10 : i32, message = "gqd,gdk->gqk"}> : () -> ()
    %cst_206 = arith.constant dense<0.000000e+00> : vector<8x8x8xf32>
    %542 = tpu.matmul %534, %537, %cst_206 {dimension_numbers = #tpu.dot_dimension_numbers<[2], [1], [1], [2], [0, 0, 0, 1, 1, 2], [0], [0]>} : vector<8x8x8xf32>, vector<8x8x8xf32>, vector<8x8x8xf32> -> vector<8x8x8xf32>
    "tpu.trace_stop"() : () -> ()
    %543 = arith.addf %542, %10 : vector<8x8x8xf32>
    %cst_207 = arith.constant dense<0xFF800000> : vector<8x8xf32>
    %544 = vector.multi_reduction <maximumf>, %543, %cst_207 [2] : vector<8x8x8xf32> to vector<8x8xf32>
    %545 = vector.shape_cast %544 : vector<8x8xf32> to vector<8x8x1xf32>
    %546 = vector.broadcast %545 : vector<8x8x1xf32> to vector<8x8x8xf32>
    %547 = arith.subf %543, %546 : vector<8x8x8xf32>
    %548 = math.exp %547 : vector<8x8x8xf32>
    %cst_208 = arith.constant dense<0.000000e+00> : vector<8x8xf32>
    %549 = vector.multi_reduction <add>, %548, %cst_208 [2] : vector<8x8x8xf32> to vector<8x8xf32>
    %550 = vector.shape_cast %549 : vector<8x8xf32> to vector<8x8x1xf32>
    %551 = tpu.reciprocal %550 {approx = true} : vector<8x8x1xf32> -> vector<8x8x1xf32>
    %552 = vector.broadcast %551 : vector<8x8x1xf32> to vector<8x8x8xf32>
    %553 = arith.mulf %548, %552 : vector<8x8x8xf32>
    "tpu.trace_start"() <{level = 10 : i32, message = "gqk,gkd->gqd"}> : () -> ()
    %cst_209 = arith.constant dense<0.000000e+00> : vector<8x8x8xf32>
    %554 = tpu.matmul %553, %541, %cst_209 {dimension_numbers = #tpu.dot_dimension_numbers<[2], [1], [1], [2], [0, 0, 0, 1, 1, 2], [0], [0]>} : vector<8x8x8xf32>, vector<8x8x8xf32>, vector<8x8x8xf32> -> vector<8x8x8xf32>
    "tpu.trace_stop"() : () -> ()
    %555 = tpu.transpose %554, [0, 2, 1] : vector<8x8x8xf32> -> vector<8x8x8xf32>
    %556 = vector.shape_cast %555 : vector<8x8x8xf32> to vector<2x32x8xf32>
    %557 = tpu.transpose %556, [0, 2, 1] : vector<2x32x8xf32> -> vector<2x8x32xf32>
    %558 = vector.shape_cast %557 : vector<2x8x32xf32> to vector<16x32xf32>
    %cst_210 = arith.constant dense<0.000000e+00> : vector<16x32xf32>
    %559 = tpu.matmul %558, %517, %cst_210 {dimension_numbers = #tpu.dot_dimension_numbers<[1], [0], [0], [1], [0, 0, 1, 1], [], []>} : vector<16x32xf32>, vector<32x32xf32>, vector<16x32xf32> -> vector<16x32xf32>
    %560 = vector.broadcast %518 : vector<1x32xf32> to vector<16x32xf32>
    %561 = arith.addf %559, %560 : vector<16x32xf32>
    %562 = arith.addf %508, %561 : vector<16x32xf32>
    %c48 = arith.constant 48 : index
    %c0_211 = arith.constant 0 : index
    %563 = vector.load %arg4[%c48, %c0_211] : memref<52x128xf32, #tpu.memory_space<vmem>>, vector<1x32xf32>
    %c49 = arith.constant 49 : index
    %c0_212 = arith.constant 0 : index
    %564 = vector.load %arg4[%c49, %c0_212] : memref<52x128xf32, #tpu.memory_space<vmem>>, vector<1x32xf32>
    %cst_213 = arith.constant dense<0.000000e+00> : vector<16xf32>
    %565 = vector.multi_reduction <add>, %562, %cst_213 [1] : vector<16x32xf32> to vector<16xf32>
    %566 = vector.shape_cast %565 : vector<16xf32> to vector<16x1xf32>
    %cst_214 = arith.constant 3.200000e+01 : f32
    %567 = vector.broadcast %cst_214 : f32 to vector<16x1xf32>
    %568 = arith.divf %566, %567 : vector<16x1xf32>
    %569 = vector.broadcast %568 : vector<16x1xf32> to vector<16x32xf32>
    %570 = arith.subf %562, %569 : vector<16x32xf32>
    %571 = arith.mulf %570, %570 : vector<16x32xf32>
    %cst_215 = arith.constant dense<0.000000e+00> : vector<16xf32>
    %572 = vector.multi_reduction <add>, %571, %cst_215 [1] : vector<16x32xf32> to vector<16xf32>
    %573 = vector.shape_cast %572 : vector<16xf32> to vector<16x1xf32>
    %cst_216 = arith.constant 3.200000e+01 : f32
    %574 = vector.broadcast %cst_216 : f32 to vector<16x1xf32>
    %575 = arith.divf %573, %574 : vector<16x1xf32>
    %cst_217 = arith.constant 9.99999974E-6 : f32
    %576 = vector.broadcast %cst_217 : f32 to vector<16x1xf32>
    %577 = arith.addf %575, %576 : vector<16x1xf32>
    %578 = math.rsqrt %577 : vector<16x1xf32>
    %579 = vector.broadcast %578 : vector<16x1xf32> to vector<16x32xf32>
    %580 = arith.mulf %570, %579 : vector<16x32xf32>
    %581 = vector.broadcast %563 : vector<1x32xf32> to vector<16x32xf32>
    %582 = arith.mulf %580, %581 : vector<16x32xf32>
    %583 = vector.broadcast %564 : vector<1x32xf32> to vector<16x32xf32>
    %584 = arith.addf %582, %583 : vector<16x32xf32>
    %c15_218 = arith.constant 15 : index
    %c0_219 = arith.constant 0 : index
    %c0_220 = arith.constant 0 : index
    %585 = vector.load %arg2[%c15_218, %c0_219, %c0_220] : memref<16x32x96xf32, #tpu.memory_space<vmem>>, vector<1x32x96xf32>
    %586 = vector.shape_cast %585 : vector<1x32x96xf32> to vector<32x96xf32>
    %587 = vector.extract_strided_slice %586 {offsets = [0, 0], sizes = [32, 64], strides = [1, 1]} : vector<32x96xf32> to vector<32x64xf32>
    %cst_221 = arith.constant dense<0.000000e+00> : vector<16x64xf32>
    %588 = tpu.matmul %584, %587, %cst_221 {dimension_numbers = #tpu.dot_dimension_numbers<[1], [0], [0], [1], [0, 0, 1, 1], [], []>} : vector<16x32xf32>, vector<32x64xf32>, vector<16x64xf32> -> vector<16x64xf32>
    %c44 = arith.constant 44 : index
    %c0_222 = arith.constant 0 : index
    %589 = vector.load %arg4[%c44, %c0_222] : memref<52x128xf32, #tpu.memory_space<vmem>>, vector<1x64xf32>
    %590 = vector.broadcast %589 : vector<1x64xf32> to vector<16x64xf32>
    %591 = arith.addf %588, %590 : vector<16x64xf32>
    %cst_223 = arith.constant 0.000000e+00 : f32
    %592 = vector.broadcast %cst_223 : f32 to vector<16x64xf32>
    %593 = arith.maximumf %591, %592 : vector<16x64xf32>
    %c3_224 = arith.constant 3 : index
    %c0_225 = arith.constant 0 : index
    %c0_226 = arith.constant 0 : index
    %594 = vector.load %arg3[%c3_224, %c0_225, %c0_226] : memref<4x64x32xf32, #tpu.memory_space<vmem>>, vector<1x64x32xf32>
    %595 = vector.shape_cast %594 : vector<1x64x32xf32> to vector<64x32xf32>
    %cst_227 = arith.constant dense<0.000000e+00> : vector<16x32xf32>
    %596 = tpu.matmul %593, %595, %cst_227 {dimension_numbers = #tpu.dot_dimension_numbers<[1], [0], [0], [1], [0, 0, 1, 1], [], []>} : vector<16x64xf32>, vector<64x32xf32>, vector<16x32xf32> -> vector<16x32xf32>
    %c45 = arith.constant 45 : index
    %c0_228 = arith.constant 0 : index
    %597 = vector.load %arg4[%c45, %c0_228] : memref<52x128xf32, #tpu.memory_space<vmem>>, vector<1x32xf32>
    %598 = vector.broadcast %597 : vector<1x32xf32> to vector<16x32xf32>
    %599 = arith.addf %596, %598 : vector<16x32xf32>
    %600 = arith.addf %584, %599 : vector<16x32xf32>
    %c50 = arith.constant 50 : index
    %c0_229 = arith.constant 0 : index
    %601 = vector.load %arg4[%c50, %c0_229] : memref<52x128xf32, #tpu.memory_space<vmem>>, vector<1x32xf32>
    %c51 = arith.constant 51 : index
    %c0_230 = arith.constant 0 : index
    %602 = vector.load %arg4[%c51, %c0_230] : memref<52x128xf32, #tpu.memory_space<vmem>>, vector<1x32xf32>
    %cst_231 = arith.constant dense<0.000000e+00> : vector<16xf32>
    %603 = vector.multi_reduction <add>, %600, %cst_231 [1] : vector<16x32xf32> to vector<16xf32>
    %604 = vector.shape_cast %603 : vector<16xf32> to vector<16x1xf32>
    %cst_232 = arith.constant 3.200000e+01 : f32
    %605 = vector.broadcast %cst_232 : f32 to vector<16x1xf32>
    %606 = arith.divf %604, %605 : vector<16x1xf32>
    %607 = vector.broadcast %606 : vector<16x1xf32> to vector<16x32xf32>
    %608 = arith.subf %600, %607 : vector<16x32xf32>
    %609 = arith.mulf %608, %608 : vector<16x32xf32>
    %cst_233 = arith.constant dense<0.000000e+00> : vector<16xf32>
    %610 = vector.multi_reduction <add>, %609, %cst_233 [1] : vector<16x32xf32> to vector<16xf32>
    %611 = vector.shape_cast %610 : vector<16xf32> to vector<16x1xf32>
    %cst_234 = arith.constant 3.200000e+01 : f32
    %612 = vector.broadcast %cst_234 : f32 to vector<16x1xf32>
    %613 = arith.divf %611, %612 : vector<16x1xf32>
    %cst_235 = arith.constant 9.99999974E-6 : f32
    %614 = vector.broadcast %cst_235 : f32 to vector<16x1xf32>
    %615 = arith.addf %613, %614 : vector<16x1xf32>
    %616 = math.rsqrt %615 : vector<16x1xf32>
    %617 = vector.broadcast %616 : vector<16x1xf32> to vector<16x32xf32>
    %618 = arith.mulf %608, %617 : vector<16x32xf32>
    %619 = vector.broadcast %601 : vector<1x32xf32> to vector<16x32xf32>
    %620 = arith.mulf %618, %619 : vector<16x32xf32>
    %621 = vector.broadcast %602 : vector<1x32xf32> to vector<16x32xf32>
    %622 = arith.addf %620, %621 : vector<16x32xf32>
    %cst_236 = arith.constant 5.000000e-01 : f32
    %623 = vector.broadcast %cst_236 : f32 to vector<16x32xf32>
    %624 = arith.cmpf ogt, %11, %623 : vector<16x32xf32>
    %625 = arith.select %624, %245, %622 : vector<16x32xi1>, vector<16x32xf32>
    %c0_237 = arith.constant 0 : index
    %c0_238 = arith.constant 0 : index
    %626 = vector.load %arg5[%c0_237, %c0_238] : memref<16x32xf32, #tpu.memory_space<vmem>>, vector<16x32xf32>
    tpu.vector_store %arg5[%c0_237, %c0_238], %625 {strides = array<i32>} : memref<16x32xf32, #tpu.memory_space<vmem>>, vector<16x32xf32>,
    return
  }
}

</mosaic_0001>

<bundles_post_ra>
// kernel: transformer_forward.1
= control target key start
LH: loop header
LB: loop body
LE: loop exit
PB: predicated region body
PF: predicated region fallthrough
CT: control target
= control target key end

     0   :  { %vm68_vm1 = vcmask 261120   ;;  %s17441_s15 = smov 64   ;;  %s19161_s0 = inlined_call_operand.vmem [shape: f32[5,16,32], index: 0, kind: input, shape index: {}]   ;;  %s19162_s1 = inlined_call_operand.vmem [shape: f32[8,8,8], index: 1, kind: input, shape index: {}]   ;;  %s19163_s2 = inlined_call_operand.vmem [shape: f32[16,32,96], index: 2, kind: input, shape index: {}]   ;;  %s19164_s3 = inlined_call_operand.vmem [shape: f32[4,64,32], index: 3, kind: input, shape index: {}]   ;;  %s19165_s4 = inlined_call_operand.vmem [shape: f32[52,128], index: 4, kind: input, shape index: {}]   ;;  %s19166_s5 = inlined_call_operand.hbm [shape: f32[16,32], index: 5, kind: output, shape index: {}]  }
   0x1   :  { %v55_v0 = vld [vmem:[%s19163_s2] sm:$0xff]  ;;  %v56_v1 = vld [vmem:[%s19163_s2 + $0x8] sm:$0xff]  ;;  %v57_v2 = vld [vmem:[%s19163_s2 + $0x10] sm:$0xff] }
   0x2   :  { %v16853_v3 = vpack.c.bf16 %v56_v1, %v55_v0  ;;  %v58_v4 = vld [vmem:[%s19163_s2 + $0x18] sm:$0xff]  ;;  %v21_v5 = vld [vmem:[%s19161_s0] sm:$0xff]  ;;  %v15351_v6 = vld [vmem:[%s19161_s0 + $0x10] sm:$0xff]  ;;  %v17101_v7 = vpack.i.bf16 %v56_v1, %v55_v0 }
   0x3   :  { %v16857_v8 = vpack.c.bf16 %v58_v4, %v57_v2  ;;  %v17500_v9 = vld [vmem:[%s19161_s0 + $0x20] sm:$0xff]  ;;  %v15355_v10 = vld [vmem:[%s19161_s0 + $0x30] sm:$0xff]  ;;  %v22_v11 = vld [vmem:[%s19161_s0 + $0x8] sm:$0xff]  ;;  %v17106_v14 = vpack.i.bf16 %v58_v4, %v57_v2 }
   0x4   :  { %16854 = vmatprep.subr.bf16.mxu1 %v16853_v3  ;;  %vm45_vm0 = vcmp.gt.f32.partialorder %v15355_v10, 0.5  ;;  %v15352_v12 = vld [vmem:[%s19161_s0 + $0x18] sm:$0xff]  ;;  %17102 = vrot.lane.b32.xlu1 %v17101_v7, %s17441_s15  ;;  %v17520_v16 = vld [vmem:[%s19161_s0 + $0x28] sm:$0xff]  ;;  %v15366_v17 = vld [vmem:[%s19165_s4 + $0x1] ss:$0 sm:$0xff] }
   0x5   :  { %v15356_v13 = vld [vmem:[%s19161_s0 + $0x38] sm:$0xff]  ;;  %16856 = vmatpush3.bf16.msra.mxu1 %v16853_v3  ;;  %v17515_v15 = vsel %vm45_vm0, %v15351_v6, %v21_v5 }
   0x6   :  { %vm46_vm2 = vcmp.gt.f32.partialorder %v15356_v13, 0.5 }
   0x7   :  { %10 = vsyncpa [#allocation3], 0  ;;  %16858 = vmatprep.subr.bf16.mxu1 %v16857_v8  ;;  %v53_v18 = vadd.f32 %v17500_v9, %v17515_v15  ;;  %v17527_v19 = vsel %vm46_vm2, %v15352_v12, %v22_v11  ;;  %s17442_s20 = smov 32   ;;  %s17443_s21 = smov 96   ;;  %v15365_v34 = vld [vmem:[%s19165_s4] ss:$0 sm:$0xff] }
   0x8   :  { %161 = vrot.lane.b32.xlu0 %v15366_v17, %s17442_s20  ;;  %v54_v20 = vadd.f32 %v17520_v16, %v17527_v19  ;;  %17107 = vrot.lane.b32.xlu1 %v17106_v14, %s17441_s15  ;;  %v17444_v47 = vmov 0.0   ;;  %vm17445_vm3 = vmmov 0   ;;  %vm723_vm4 = vcmask 64512   ;;  %v17589_v2 = vld [vmem:[%s19162_s1] sm:$0xff]  ;;  %v17595_v6 = vld [vmem:[%s19162_s1 + $0x8] sm:$0xff] }
   0x9   :  { %16063 = vmatprep.mubr.msk.f32.mxu1 %vm68_vm1, %v53_v18  ;;  %16860 = vmatpush3.bf16.msra.mxu1 %v16857_v8  ;;  %v17602_v12 = vld [vmem:[%s19162_s1 + $0x10] sm:$0xff]  ;;  %vm2558_vm5 = vcmask 523264  }
   0xa   :  { %16077 = vmatprep.subr.mxu0 %v17444_v47  ;;  %16079 = vmatprep.mubr.msk.f32.mxu0 %vm17445_vm3, %v17444_v47 }
   0xc   :  { %16064 = vmatmul.mubr.msk.f32.vlgmr.msra.gmra.mrb[0].mxu1 %vm68_vm1, %v54_v20  ;;  %v17609_v20 = vld [vmem:[%s19162_s1 + $0x18] sm:$0xff] }
   0xd   :  { %16074 = vmatprep.mubr.msk.f32.mxu1 %vm68_vm1, %v17515_v15 }
  0x76   :  { %v17103_v21 = vpop.permute.xlu1 %17102 }
  0x77   :  { %v17105_v23 = vunpack.i.h.bf16 %v17103_v21  ;;  %v17104_v24 = vunpack.i.l.bf16 %v17103_v21 }
  0x79   :  { %v16861_v27 = vpack.c.bf16 %v17105_v23, %v17104_v24  ;;  %v17615_v23 = vld [vmem:[%s19162_s1 + $0x20] sm:$0xff] }
  0x7a   :  { %v17108_v22 = vpop.permute.xlu1 %17107  ;;  %v162_v29 = vpop.permute.xlu0 %161 }
  0x7b   :  { %v17110_v25 = vunpack.i.h.bf16 %v17108_v22  ;;  %v17109_v26 = vunpack.i.l.bf16 %v17108_v22  ;;  %16862 = vmatprep.subr.bf16.mxu1 %v16861_v27 }
  0x7c   :  { %16864 = vmatpush3.bf16.msra.mxu1 %v16861_v27 }
  0x7d   :  { %v16865_v28 = vpack.c.bf16 %v17110_v25, %v17109_v26 }
  0x7f   :  { %16866 = vmatprep.subr.bf16.mxu1 %v16865_v28 }
  0x80   :  { %16868 = vmatpush3.bf16.msra.mxu1 %v16865_v28  ;;  %v17621_v28 = vld [vmem:[%s19162_s1 + $0x28] sm:$0xff] }
  0x81   :  { %16082 = vmatprep.subr.mxu1 %v17444_v47 }
  0x83   :  { %16075 = vmatmul.mubr.msk.f32.vlgmr.msra.gmra.mrb[2].mxu1 %vm68_vm1, %v17527_v19 }
  0x84   :  { %16084 = vmatprep.mubr.msk.f32.mxu1 %vm17445_vm3, %v17444_v47 }
  0xdf   :  { %v16065_v30 = vpop.f32.mrb[0].mxu1 }
  0xe0   :  { %v165_v31 = vadd.f32 %v16065_v30, %v162_v29  ;;  %v141_v32 = vpop.f32.mrb[1].mxu1  ;;  %v155_v36 = vadd.f32 %v16065_v30, %v15365_v34 }
  0xe1   :  { %v164_v33 = vadd.f32 %v162_v29, %v141_v32  ;;  %v154_v35 = vadd.f32 %v15365_v34, %v141_v32  ;;  %v17626_v29 = vld [vmem:[%s19162_s1 + $0x30] sm:$0xff] }
  0xe2   :  { %591 = vrot.lane.b32.xlu1 %v165_v31, %s17443_s21 }
  0xe3   :  { %589 = vrot.lane.b32.xlu0 %v164_v33, %s17443_s21 }
 0x101   :  { %267 = vxpose.xlu0.b32.start.end [1/1] (short) (narrow) %v154_v35, 32 }
 0x10b   :  { %299 = vxpose.xlu1.b32.start.end [1/1] (short) (narrow) %v155_v36, 32 }
 0x154   :  { %v592_v40 = vpop.permute.xlu1 %591 }
 0x155   :  { %v590_v37 = vpop.permute.xlu0 %589 }
 0x156   :  { %v17582_v0 = vpop.f32.mrb[2].mxu1 }
 0x157   :  { %v17584_v1 = vpop.f32.mrb[3].mxu1 }
 0x181   :  { %v283_v38 = vpop.trf.xlu0 }
 0x182   :  { %331 = vxpose.xlu0.b32.start.end [1/1] (short) (narrow) %v283_v38, 8  ;;  %v17635_v38 = vld [vmem:[%s19162_s1 + $0x38] sm:$0xff] }
 0x185   :  { %v284_v39 = vpop.trf.xlu0 }
 0x189   :  { %v285_v41 = vpop.trf.xlu0 }
 0x18a   :  { %395 = vxpose.xlu0.b32.start.end [1/1] (short) (narrow) %v285_v41, 8 }
 0x18b   :  { %v315_v42 = vpop.trf.xlu1 }
 0x18c   :  { %459 = vxpose.xlu1.b32.start.end [1/1] (short) (narrow) %v315_v42, 8 }
 0x18d   :  { %v286_v44 = vpop.trf.xlu0 }
 0x18e   :  { %627 = vxpose.xlu0.b32.start.end [1/1] (short) (narrow) %v592_v40, 32 }
 0x18f   :  { %v316_v43 = vpop.trf.xlu1 }
 0x190   :  { %363 = vxpose.xlu1.b32.start.end [1/1] (short) (narrow) %v284_v39, 8 }
 0x193   :  { %v317_v45 = vpop.trf.xlu1 }
 0x194   :  { %427 = vxpose.xlu1.b32.start.end [1/1] (short) (narrow) %v286_v44, 8 }
 0x197   :  { %v318_v46 = vpop.trf.xlu1 }
 0x198   :  { %523 = vxpose.xlu1.b32.start.end [1/1] (short) (narrow) %v317_v45, 8 }
 0x19b   :  { %595 = vxpose.xlu0.b32.start.end [1/1] (short) (narrow) %v590_v37, 32 }
 0x19c   :  { %555 = vxpose.xlu1.b32.start.end [1/1] (short) (narrow) %v318_v46, 8 }
 0x1a8   :  { %491 = vxpose.xlu0.b32.start.end [1/1] (short) (narrow) %v316_v43, 8 }
 0x202   :  { %v347_v48 = vpop.trf.xlu0 }
 0x20a   :  { %v411_v49 = vpop.trf.xlu0 }
 0x20c   :  { %v475_v54 = vpop.trf.xlu1 }
 0x20e   :  { %v643_v50 = vpop.trf.xlu0 }
 0x210   :  { %v379_v56 = vpop.trf.xlu1 }
 0x212   :  { %v644_v51 = vpop.trf.xlu0 }
 0x214   :  { %v443_v58 = vpop.trf.xlu1 }
 0x216   :  { %v645_v52 = vpop.trf.xlu0 }
 0x218   :  { %v539_v61 = vpop.trf.xlu1 }
 0x21a   :  { %v646_v53 = vpop.trf.xlu0 }
 0x21c   :  { %v571_v63 = vpop.trf.xlu1 }
 0x21e   :  { %v611_v55 = vpop.trf.xlu0 }
 0x21f   :  { %16078 = vmatpush3.msra.mxu0 %v611_v55 }
 0x220   :  { %16080 = vmatmul.mubr.msk.f32.vlgmr.msra.gmra.mrb[0].mxu0 %vm723_vm4, %v347_v48  ;;  %16087 = vmatprep.subr.mxu0 %v17444_v47 }
 0x221   :  { %16089 = vmatprep.mubr.msk.f32.mxu0 %vm17445_vm3, %v17444_v47 }
 0x222   :  { %v612_v57 = vpop.trf.xlu0 }
 0x223   :  { %16083 = vmatpush3.msra.mxu1 %v612_v57 }
 0x224   :  { %16085 = vmatmul.mubr.msk.f32.vlgmr.msra.gmra.mrb[4].mxu1 %vm723_vm4, %v379_v56  ;;  %16092 = vmatprep.subr.mxu1 %v17444_v47 }
 0x225   :  { %16094 = vmatprep.mubr.msk.f32.mxu1 %vm17445_vm3, %v17444_v47 }
 0x226   :  { %v613_v59 = vpop.trf.xlu0 }
 0x227   :  { %16088 = vmatpush3.msra.mxu0 %v613_v59 }
 0x228   :  { %16090 = vmatmul.mubr.msk.f32.vlgmr.msra.gmra.mrb[2].mxu0 %vm723_vm4, %v411_v49  ;;  %16097 = vmatprep.subr.mxu0 %v17444_v47 }
 0x229   :  { %16098 = vmatpush3.msra.mxu0 %v643_v50  ;;  %16099 = vmatprep.mubr.msk.f32.mxu0 %vm17445_vm3, %v17444_v47 }
 0x22a   :  { %v614_v60 = vpop.trf.xlu0  ;;  %16107 = vmatprep.subr.mxu0 %v17444_v47 }
 0x22b   :  { %16093 = vmatpush3.msra.mxu1 %v614_v60 }
 0x22c   :  { %16095 = vmatmul.mubr.msk.f32.vlgmr.msra.gmra.mrb[6].mxu1 %vm723_vm4, %v443_v58  ;;  %16100 = vmatmul.mubr.msk.f32.vlgmr.msra.gmra.mrb[4].mxu0 %vm723_vm4, %v475_v54 }
 0x22d   :  { %16102 = vmatprep.subr.mxu1 %v17444_v47  ;;  %16108 = vmatpush3.msra.mxu0 %v645_v52 }
 0x22e   :  { %16103 = vmatpush3.msra.mxu1 %v644_v51  ;;  %16104 = vmatprep.mubr.msk.f32.mxu1 %vm17445_vm3, %v17444_v47  ;;  %v507_v62 = vpop.trf.xlu0 }
 0x22f   :  { %16112 = vmatprep.subr.mxu1 %v17444_v47  ;;  %16109 = vmatprep.mubr.msk.f32.mxu0 %vm17445_vm3, %v17444_v47 }
 0x230   :  { %16105 = vmatmul.mubr.msk.f32.vlgmr.msra.gmra.mrb[8].mxu1 %vm723_vm4, %v507_v62  ;;  %16110 = vmatmul.mubr.msk.f32.vlgmr.msra.gmra.mrb[6].mxu0 %vm723_vm4, %v539_v61 }
 0x231   :  { %16113 = vmatpush3.msra.mxu1 %v646_v53  ;;  %16114 = vmatprep.mubr.msk.f32.mxu1 %vm17445_vm3, %v17444_v47 }
 0x232   :  { %16117 = vmatprep.subr.mxu0 %v17444_v47  ;;  %16119 = vmatprep.mubr.msk.f32.mxu0 %vm17445_vm3, %v17444_v47 }
 0x233   :  { %16122 = vmatprep.subr.mxu1 %v17444_v47 }
 0x234   :  { %16115 = vmatmul.mubr.msk.f32.vlgmr.msra.gmra.mrb[10].mxu1 %vm723_vm4, %v571_v63 }
 0x235   :  { %16124 = vmatprep.mubr.msk.f32.mxu1 %vm17445_vm3, %v17444_v47 }
 0x2f3   :  { %v793_v3 = vpop.f32.mrb[0].mxu0 }
 0x2f4   :  { %v794_v4 = vadd.f32 %v793_v3, %v17589_v2  ;;  %v16081_v5 = vpop.f32.mrb[1].mxu0 }
 0x2f6   :  { %v1308_v7 = vsel %vm723_vm4, %v794_v4, -inf }
 0x2f7   :  { %1309 = vmax.xlane.f32.xlu1 %v1308_v7  ;;  %v866_v8 = vpop.f32.mrb[4].mxu1 }
 0x2f8   :  { %v867_v10 = vadd.f32 %v866_v8, %v17595_v6  ;;  %v16086_v11 = vpop.f32.mrb[5].mxu1 }
 0x2fa   :  { %v1311_v13 = vsel %vm723_vm4, %v867_v10, -inf }
 0x2fb   :  { %1312 = vmax.xlane.f32.xlu0 %v1311_v13  ;;  %v939_v14 = vpop.f32.mrb[2].mxu0 }
 0x2fc   :  { %v940_v17 = vadd.f32 %v939_v14, %v17602_v12  ;;  %v16091_v18 = vpop.f32.mrb[3].mxu0 }
 0x2fe   :  { %v1314_v21 = vsel %vm723_vm4, %v940_v17, -inf }
 0x2ff   :  { %1315 = vmax.xlane.f32.xlu1 %v1314_v21  ;;  %v1012_v22 = vpop.f32.mrb[6].mxu1  ;;  %v1085_v24 = vpop.f32.mrb[4].mxu0 }
 0x300   :  { %v1013_v25 = vadd.f32 %v1012_v22, %v17609_v20  ;;  %v16096_v26 = vpop.f32.mrb[7].mxu1  ;;  %v16101_v27 = vpop.f32.mrb[5].mxu0  ;;  %v1086_v30 = vadd.f32 %v1085_v24, %v17615_v23 }
 0x302   :  { %v1317_v31 = vsel %vm723_vm4, %v1013_v25, -inf  ;;  %v1320_v39 = vsel %vm723_vm4, %v1086_v30, -inf }
 0x303   :  { %1318 = vmax.xlane.f32.xlu1 %v1317_v31  ;;  %v1158_v32 = vpop.f32.mrb[8].mxu1  ;;  %v1231_v33 = vpop.f32.mrb[6].mxu0 }
 0x304   :  { %v1159_v34 = vadd.f32 %v1158_v32, %v17621_v28  ;;  %v16106_v35 = vpop.f32.mrb[9].mxu1  ;;  %v1232_v36 = vadd.f32 %v1231_v33, %v17626_v29  ;;  %v16111_v37 = vpop.f32.mrb[7].mxu0 }
 0x306   :  { %v1323_v40 = vsel %vm723_vm4, %v1159_v34, -inf  ;;  %v1326_v43 = vsel %vm723_vm4, %v1232_v36, -inf }
 0x307   :  { %1321 = vmax.xlane.f32.xlu1 %v1320_v39  ;;  %1324 = vmax.xlane.f32.xlu0 %v1323_v40  ;;  %v1304_v41 = vpop.f32.mrb[10].mxu1 }
 0x308   :  { %v1305_v42 = vadd.f32 %v1304_v41, %v17635_v38  ;;  %v16116_v44 = vpop.f32.mrb[11].mxu1 }
 0x30a   :  { %v1329_v45 = vsel %vm723_vm4, %v1305_v42, -inf }
 0x30b   :  { %1327 = vmax.xlane.f32.xlu1 %v1326_v43  ;;  %1330 = vmax.xlane.f32.xlu0 %v1329_v45 }
 0x384   :  { %v1310_v46 = vpop.xlane.xlu1 %1309 }
 0x385   :  { %v1332_v48 = vsub.f32 %v794_v4, %v1310_v46 }
 0x387   :  { %v1340_v49 = vmul.f32 1.442695, %v1332_v48 }
 0x388   :  { %v1313_v50 = vpop.xlane.xlu0 %1312 }
 0x389   :  { %17161 = vpow2.f32 %v1340_v49  ;;  %v1333_v51 = vsub.f32 %v867_v10, %v1313_v50 }
 0x38b   :  { %v1342_v52 = vmul.f32 1.442695, %v1333_v51 }
 0x38c   :  { %v1316_v53 = vpop.xlane.xlu1 %1315 }
 0x38d   :  { %17163 = vpow2.f32 %v1342_v52  ;;  %v1334_v54 = vsub.f32 %v940_v17, %v1316_v53 }
 0x38f   :  { %v1344_v55 = vmul.f32 1.442695, %v1334_v54 }
 0x390   :  { %v1319_v56 = vpop.xlane.xlu1 %1318 }
 0x391   :  { %17165 = vpow2.f32 %v1344_v55  ;;  %v1335_v57 = vsub.f32 %v1013_v25, %v1319_v56 }
 0x393   :  { %v17642_v58 = vpop.eup %17161  ;;  %v1346_v59 = vmul.f32 1.442695, %v1335_v57 }
 0x394   :  { %v1322_v60 = vpop.xlane.xlu1 %1321  ;;  %v1325_v61 = vpop.xlane.xlu0 %1324  ;;  %v1356_v62 = vsel %vm723_vm4, %v17642_v58, 0.0 }
 0x395   :  { %17167 = vpow2.f32 %v1346_v59  ;;  %v1336_v63 = vsub.f32 %v1086_v30, %v1322_v60  ;;  %v1337_v3 = vsub.f32 %v1159_v34, %v1325_v61  ;;  %1357 = vadd.xlane.f32.xlu1 %v1356_v62 }
 0x397   :  { %v17646_v4 = vpop.eup %17163  ;;  %v1348_v5 = vmul.f32 1.442695, %v1336_v63  ;;  %v1350_v7 = vmul.f32 1.442695, %v1337_v3 }
 0x398   :  { %v1328_v8 = vpop.xlane.xlu1 %1327  ;;  %v1331_v10 = vpop.xlane.xlu0 %1330  ;;  %v1359_v11 = vsel %vm723_vm4, %v17646_v4, 0.0 }
 0x399   :  { %17169 = vpow2.f32 %v1348_v5  ;;  %v1338_v13 = vsub.f32 %v1232_v36, %v1328_v8  ;;  %v1339_v14 = vsub.f32 %v1305_v42, %v1331_v10  ;;  %1360 = vadd.xlane.f32.xlu0 %v1359_v11  ;;  %v15367_v36 = vld [vmem:[%s19165_s4 + $0x2] ss:$0 sm:$0xff] }
 0x39a   :  { %17171 = vpow2.f32 %v1350_v7  ;;  %v264_v37 = vadd.f32 %v17582_v0, %v15367_v36  ;;  %v259_v39 = vadd.f32 %v15367_v36, %v17584_v1  ;;  %v15359_v36 = vld [vmem:[%s19163_s2 + $0x20] sm:$0xff] }
 0x39b   :  { %v17650_v17 = vpop.eup %17165  ;;  %v1352_v18 = vmul.f32 1.442695, %v1338_v13  ;;  %v1354_v21 = vmul.f32 1.442695, %v1339_v14 }
 0x39c   :  { %v1362_v22 = vsel %vm723_vm4, %v17650_v17, 0.0 }
 0x39d   :  { %17173 = vpow2.f32 %v1352_v18  ;;  %1363 = vadd.xlane.f32.xlu1 %v1362_v22 }
 0x39e   :  { %17175 = vpow2.f32 %v1354_v21 }
 0x39f   :  { %v17654_v24 = vpop.eup %17167 }
 0x3a0   :  { %v1365_v25 = vsel %vm723_vm4, %v17654_v24, 0.0 }
 0x3a1   :  { %1366 = vadd.xlane.f32.xlu0 %v1365_v25 }
 0x3a3   :  { %v17658_v26 = vpop.eup %17169 }
 0x3a4   :  { %v17660_v27 = vpop.eup %17171  ;;  %v1368_v30 = vsel %vm723_vm4, %v17658_v26, 0.0 }
 0x3a5   :  { %1369 = vadd.xlane.f32.xlu1 %v1368_v30  ;;  %v1371_v31 = vsel %vm723_vm4, %v17660_v27, 0.0 }
 0x3a6   :  { %1372 = vadd.xlane.f32.xlu0 %v1371_v31 }
 0x3a7   :  { %v17666_v32 = vpop.eup %17173 }
 0x3a8   :  { %v17668_v33 = vpop.eup %17175  ;;  %v1374_v34 = vsel %vm723_vm4, %v17666_v32, 0.0 }
 0x3a9   :  { %1375 = vadd.xlane.f32.xlu1 %v1374_v34  ;;  %v1377_v35 = vsel %vm723_vm4, %v17668_v33, 0.0 }
 0x3aa   :  { %1378 = vadd.xlane.f32.xlu0 %v1377_v35 }
 0x3d7   :  { %691 = vxpose.xlu0.b32.start.end [1/1] (short) (narrow) %v264_v37, 32  ;;  %v15360_v37 = vld [vmem:[%s19163_s2 + $0x28] sm:$0xff] }
 0x3dc   :  { %659 = vxpose.xlu1.b32.start.end [1/1] (short) (narrow) %v259_v39, 32  ;;  %v15361_v39 = vld [vmem:[%s19163_s2 + $0x30] sm:$0xff] }
 0x422   :  { %v1358_v41 = vpop.xlane.xlu1 %1357 }
 0x423   :  { %17177 = vrcp.f32 %v1358_v41  ;;  %v15362_v41 = vld [vmem:[%s19163_s2 + $0x38] sm:$0xff] }
 0x426   :  { %v1361_v40 = vpop.xlane.xlu0 %1360 }
 0x427   :  { %17179 = vrcp.f32 %v1361_v40  ;;  %v16869_v40 = vpack.c.bf16 %v15360_v37, %v15359_v36 }
 0x42a   :  { %v1364_v43 = vpop.xlane.xlu1 %1363 }
 0x42b   :  { %17181 = vrcp.f32 %v1364_v43 }
 0x42d   :  { %v17178_v49 = vpop.eup %17177 }
 0x42e   :  { %v1367_v42 = vpop.xlane.xlu0 %1366  ;;  %v1388_v0 = vmul.f32 %v17178_v49, %v17642_v58 }
 0x42f   :  { %17183 = vrcp.f32 %v1367_v42  ;;  %v16873_v42 = vpack.c.bf16 %v15362_v41, %v15361_v39 }
 0x431   :  { %v17180_v1 = vpop.eup %17179 }
 0x432   :  { %v1370_v44 = vpop.xlane.xlu1 %1369  ;;  %v1389_v53 = vmul.f32 %v17180_v1, %v17646_v4 }
 0x433   :  { %v1373_v45 = vpop.xlane.xlu0 %1372  ;;  %17185 = vrcp.f32 %v1370_v44 }
 0x434   :  { %17187 = vrcp.f32 %v1373_v45 }
 0x435   :  { %v17182_v55 = vpop.eup %17181 }
 0x436   :  { %v1376_v46 = vpop.xlane.xlu1 %1375  ;;  %v1390_v58 = vmul.f32 %v17182_v55, %v17650_v17 }
 0x437   :  { %v1379_v48 = vpop.xlane.xlu0 %1378  ;;  %17189 = vrcp.f32 %v1376_v46 }
 0x438   :  { %17191 = vrcp.f32 %v1379_v48 }
 0x439   :  { %v17184_v57 = vpop.eup %17183 }
 0x43a   :  { %v1391_v63 = vmul.f32 %v17184_v57, %v17654_v24 }
 0x43d   :  { %v17186_v59 = vpop.eup %17185 }
 0x43e   :  { %v17188_v62 = vpop.eup %17187  ;;  %v1392_v3 = vmul.f32 %v17186_v59, %v17658_v26 }
 0x43f   :  { %v1393_v5 = vmul.f32 %v17188_v62, %v17660_v27 }
 0x441   :  { %v17190_v4 = vpop.eup %17189 }
 0x442   :  { %v1394_v7 = vmul.f32 %v17190_v4, %v17666_v32  ;;  %v17192_v10 = vpop.eup %17191 }
 0x443   :  { %v1395_v11 = vmul.f32 %v17192_v10, %v17668_v33 }
 0x457   :  { %v707_v51 = vpop.trf.xlu0 }
 0x45b   :  { %v708_v54 = vpop.trf.xlu0 }
 0x45c   :  { %v675_v50 = vpop.trf.xlu1 }
 0x45d   :  { %16118 = vmatpush3.xpose.msk.msra.mxu0 %vm723_vm4, %v675_v50 }
 0x45e   :  { %16127 = vmatprep.subr.mxu0 %v17444_v47 }
 0x45f   :  { %v709_v61 = vpop.trf.xlu0 }
 0x460   :  { %16120 = vmatmul.mubr.msk.f32.vlgmr.msra.gmra.mrb[8].mxu0 %vm723_vm4, %v1388_v0  ;;  %v676_v52 = vpop.trf.xlu1 }
 0x461   :  { %16123 = vmatpush3.xpose.msk.msra.mxu1 %vm723_vm4, %v676_v52  ;;  %16129 = vmatprep.mubr.msk.f32.mxu0 %vm17445_vm3, %v17444_v47  ;;  %v15394_v52 = vld [vmem:[%s19165_s4 + $0x3] ss:$0 sm:$0xff] }
 0x462   :  { %16132 = vmatprep.subr.mxu1 %v17444_v47 }
 0x463   :  { %v710_v8 = vpop.trf.xlu0 }
 0x464   :  { %v677_v56 = vpop.trf.xlu1  ;;  %16125 = vmatmul.mubr.msk.f32.vlgmr.msra.gmra.mrb[12].mxu1 %vm723_vm4, %v1389_v53 }
 0x465   :  { %16128 = vmatpush3.xpose.msk.msra.mxu0 %vm723_vm4, %v677_v56  ;;  %16134 = vmatprep.mubr.msk.f32.mxu1 %vm17445_vm3, %v17444_v47 }
 0x466   :  { %16137 = vmatprep.subr.mxu0 %v17444_v47 }
 0x468   :  { %16130 = vmatmul.mubr.msk.f32.vlgmr.msra.gmra.mrb[10].mxu0 %vm723_vm4, %v1390_v58  ;;  %v678_v60 = vpop.trf.xlu1 }
 0x469   :  { %16133 = vmatpush3.xpose.msk.msra.mxu1 %vm723_vm4, %v678_v60  ;;  %16138 = vmatpush3.xpose.msk.msra.mxu0 %vm723_vm4, %v707_v51 }
 0x46a   :  { %16139 = vmatprep.mubr.msk.f32.mxu0 %vm17445_vm3, %v17444_v47  ;;  %16142 = vmatprep.subr.mxu1 %v17444_v47 }
 0x46b   :  { %16147 = vmatprep.subr.mxu0 %v17444_v47 }
 0x46c   :  { %16135 = vmatmul.mubr.msk.f32.vlgmr.msra.gmra.mrb[14].mxu1 %vm723_vm4, %v1391_v63  ;;  %16140 = vmatmul.mubr.msk.f32.vlgmr.msra.gmra.mrb[12].mxu0 %vm723_vm4, %v1392_v3 }
 0x46d   :  { %16143 = vmatpush3.xpose.msk.msra.mxu1 %vm723_vm4, %v708_v54  ;;  %16148 = vmatpush3.xpose.msk.msra.mxu0 %vm723_vm4, %v709_v61 }
 0x46e   :  { %16144 = vmatprep.mubr.msk.f32.mxu1 %vm17445_vm3, %v17444_v47  ;;  %16149 = vmatprep.mubr.msk.f32.mxu0 %vm17445_vm3, %v17444_v47 }
 0x46f   :  { %16152 = vmatprep.subr.mxu1 %v17444_v47  ;;  %16870 = vmatprep.subr.bf16.mxu0 %v16869_v40 }
 0x470   :  { %16145 = vmatmul.mubr.msk.f32.vlgmr.msra.gmra.mrb[16].mxu1 %vm723_vm4, %v1393_v5  ;;  %16150 = vmatmul.mubr.msk.f32.vlgmr.msra.gmra.mrb[14].mxu0 %vm723_vm4, %v1394_v7 }
 0x471   :  { %16153 = vmatpush3.xpose.msk.msra.mxu1 %vm723_vm4, %v710_v8  ;;  %16154 = vmatprep.mubr.msk.f32.mxu1 %vm17445_vm3, %v17444_v47 }
 0x472   :  { %16872 = vmatpush3.bf16.msra.mxu0 %v16869_v40 }
 0x473   :  { %16874 = vmatprep.subr.bf16.mxu0 %v16873_v42 }
 0x474   :  { %16155 = vmatmul.mubr.msk.f32.vlgmr.msra.gmra.mrb[18].mxu1 %vm723_vm4, %v1395_v11 }
 0x476   :  { %16876 = vmatpush3.bf16.msra.mxu0 %v16873_v42 }
 0x533   :  { %v1468_v13 = vpop.f32.mrb[8].mxu0 }
 0x534   :  { %v16121_v14 = vpop.f32.mrb[9].mxu0  ;;  %2004 = vxpose.xlu0.b32.start.end [1/1] (short) (narrow) %v1468_v13, 8  ;;  %v15399_v13 = vld [vmem:[%s19163_s2 + $0x40] sm:$0xff] }
 0x535   :  { %v15400_v14 = vld [vmem:[%s19163_s2 + $0x48] sm:$0xff] }
 0x537   :  { %v1544_v17 = vpop.f32.mrb[12].mxu1 }
 0x538   :  { %2036 = vxpose.xlu0.b32.start.end [1/1] (short) (narrow) %v1544_v17, 8  ;;  %v16126_v18 = vpop.f32.mrb[13].mxu1  ;;  %v15401_v17 = vld [vmem:[%s19163_s2 + $0x50] sm:$0xff] }
 0x539   :  { %v16877_v18 = vpack.c.bf16 %v15400_v14, %v15399_v13 }
 0x53b   :  { %v1620_v21 = vpop.f32.mrb[10].mxu0  ;;  %16878 = vmatprep.subr.bf16.mxu1 %v16877_v18 }
 0x53c   :  { %v16131_v22 = vpop.f32.mrb[11].mxu0  ;;  %16880 = vmatpush3.bf16.msra.mxu1 %v16877_v18 }
 0x53f   :  { %v1696_v24 = vpop.f32.mrb[14].mxu1  ;;  %v1772_v25 = vpop.f32.mrb[12].mxu0 }
 0x540   :  { %v16136_v26 = vpop.f32.mrb[15].mxu1  ;;  %2132 = vxpose.xlu1.b32.start.end [1/1] (short) (narrow) %v1772_v25, 8  ;;  %v16141_v27 = vpop.f32.mrb[13].mxu0  ;;  %v2546_v25 = vld [vmem:[%s19164_s3 + $0x8] sm:$0xff] }
 0x541   :  { %v2547_v26 = vld [vmem:[%s19164_s3 + $0x10] sm:$0xff] }
 0x543   :  { %v1848_v30 = vpop.f32.mrb[16].mxu1  ;;  %v1924_v31 = vpop.f32.mrb[14].mxu0 }
 0x544   :  { %2068 = vxpose.xlu1.b32.start.end [1/1] (short) (narrow) %v1620_v21, 8  ;;  %2164 = vxpose.xlu0.b32.start.end [1/1] (short) (narrow) %v1848_v30, 8  ;;  %v16146_v32 = vpop.f32.mrb[17].mxu1  ;;  %v16151_v33 = vpop.f32.mrb[15].mxu0  ;;  %v15402_v21 = vld [vmem:[%s19163_s2 + $0x58] sm:$0xff] }
 0x545   :  { %v16881_v22 = vpack.c.bf16 %v15402_v21, %v15401_v17  ;;  %v2548_v30 = vld [vmem:[%s19164_s3 + $0x18] sm:$0xff]  ;;  %v2549_v32 = vld [vmem:[%s19164_s3 + $0x20] sm:$0xff]  ;;  %v2550_v33 = vld [vmem:[%s19164_s3 + $0x28] sm:$0xff] }
 0x547   :  { %v2000_v34 = vpop.f32.mrb[18].mxu1  ;;  %16882 = vmatprep.subr.bf16.mxu1 %v16881_v22 }
 0x548   :  { %2100 = vxpose.xlu1.b32.start.end [1/1] (short) (narrow) %v1696_v24, 8  ;;  %2196 = vxpose.xlu0.b32.start.end [1/1] (short) (narrow) %v1924_v31, 8  ;;  %v16156_v35 = vpop.f32.mrb[19].mxu1  ;;  %v2545_v24 = vld [vmem:[%s19164_s3] sm:$0xff]  ;;  %v16889_v31 = vpack.c.bf16 %v2548_v30, %v2547_v26  ;;  %v15412_v30 = vld [vmem:[%s19163_s2 + $0x68] sm:$0xff] }
 0x549   :  { %16884 = vmatpush3.bf16.msra.mxu1 %v16881_v22  ;;  %v16885_v27 = vpack.c.bf16 %v2546_v25, %v2545_v24 }
 0x54b   :  { %16886 = vmatprep.subr.bf16.mxu0 %v16885_v27 }
 0x54c   :  { %2228 = vxpose.xlu0.b32.start.end [1/1] (short) (narrow) %v2000_v34, 8  ;;  %v16893_v34 = vpack.c.bf16 %v2550_v33, %v2549_v32  ;;  %v15413_v32 = vld [vmem:[%s19163_s2 + $0x70] sm:$0xff]  ;;  %v15414_v33 = vld [vmem:[%s19163_s2 + $0x78] sm:$0xff] }
 0x5b4   :  { %v2020_v43 = vpop.trf.xlu0 }
 0x5b5   :  { %2260 = vxpose.xlu1.b32.start [1/4] (short) (narrow) %v2020_v43, 8  ;;  %v15397_v43 = vld [vmem:[%s19165_s4 + $0x6] ss:$0 sm:$0xff] }
 0x5b8   :  { %v2052_v44 = vpop.trf.xlu0 }
 0x5b9   :  { %2261 = vxpose.xlu1.b32.cont [2/4] (short) (narrow) %v2052_v44, 8 }
 0x5c0   :  { %v2148_v45 = vpop.trf.xlu1 }
 0x5c1   :  { %2292 = vxpose.xlu0.b32.start [1/4] (short) (narrow) %v2148_v45, 8  ;;  %v15398_v45 = vld [vmem:[%s19165_s4 + $0x7] ss:$0 sm:$0xff] }
 0x5c4   :  { %v2180_v46 = vpop.trf.xlu0  ;;  %v2084_v48 = vpop.trf.xlu1 }
 0x5c5   :  { %2293 = vxpose.xlu0.b32.cont [2/4] (short) (narrow) %v2180_v46, 8  ;;  %2262 = vxpose.xlu1.b32.cont [3/4] (short) (narrow) %v2084_v48, 8 }
 0x5c8   :  { %v2212_v49 = vpop.trf.xlu0  ;;  %v2116_v50 = vpop.trf.xlu1 }
 0x5c9   :  { %2294 = vxpose.xlu0.b32.cont [3/4] (short) (narrow) %v2212_v49, 8  ;;  %2263 = vxpose.xlu1.b32.end [4/4] (short) (narrow) %v2116_v50, 8 }
 0x5cc   :  { %v2244_v51 = vpop.trf.xlu0 }
 0x5cd   :  { %2295 = vxpose.xlu0.b32.end [4/4] (short) (narrow) %v2244_v51, 8 }
 0x63d   :  { %v2276_v0 = vpop.trf.xlu1 }
 0x63e   :  { %16165 = vmatprep.mubr.msk.f32.mxu0 %vm68_vm1, %v2276_v0 }
 0x641   :  { %v2308_v1 = vpop.trf.xlu0 }
 0x642   :  { %16166 = vmatmul.mubr.msk.f32.vlgmr.msra.gmra.mrb[16].mxu0 %vm68_vm1, %v2308_v1  ;;  %v2551_v1 = vld [vmem:[%s19164_s3 + $0x30] sm:$0xff] }
 0x643   :  { %16888 = vmatpush3.bf16.msra.mxu0 %v16885_v27  ;;  %v15411_v27 = vld [vmem:[%s19163_s2 + $0x60] sm:$0xff] }
 0x644   :  { %16890 = vmatprep.subr.bf16.mxu0 %v16889_v31 }
 0x647   :  { %16892 = vmatpush3.bf16.msra.mxu0 %v16889_v31  ;;  %v16901_v31 = vpack.c.bf16 %v15412_v30, %v15411_v27 }
 0x648   :  { %16894 = vmatprep.subr.bf16.mxu0 %v16893_v34 }
 0x649   :  { %16902 = vmatprep.subr.bf16.mxu1 %v16901_v31 }
 0x64b   :  { %16896 = vmatpush3.bf16.msra.mxu0 %v16893_v34  ;;  %v16905_v34 = vpack.c.bf16 %v15414_v33, %v15413_v32 }
 0x715   :  { %v16167_v53 = vpop.f32.mrb[16].mxu0 }
 0x716   :  { %v2406_v54 = vadd.f32 %v16167_v53, %v15394_v52  ;;  %v2400_v55 = vpop.f32.mrb[17].mxu0 }
 0x717   :  { %v2401_v56 = vadd.f32 %v15394_v52, %v2400_v55  ;;  %v2552_v52 = vld [vmem:[%s19164_s3 + $0x38] sm:$0xff] }
 0x718   :  { %v2410_v57 = vadd.f32 %v2406_v54, %v17527_v19  ;;  %v16897_v53 = vpack.c.bf16 %v2552_v52, %v2551_v1  ;;  %v15403_v54 = vld [vmem:[%s19165_s4 + $0x4] ss:$0 sm:$0xff] }
 0x719   :  { %v2409_v58 = vadd.f32 %v2401_v56, %v17515_v15 }
 0x71a   :  { %v2416_v59 = vsel %vm68_vm1, %v2410_v57, 0.0  ;;  %16898 = vmatprep.subr.bf16.mxu0 %v16897_v53 }
 0x71b   :  { %2417 = vadd.xlane.f32.xlu0 %v2416_v59  ;;  %v2413_v60 = vsel %vm68_vm1, %v2409_v58, 0.0  ;;  %16900 = vmatpush3.bf16.msra.mxu0 %v16897_v53 }
 0x71c   :  { %2414 = vadd.xlane.f32.xlu1 %v2413_v60  ;;  %16220 = vmatprep.subr.mxu0 %v17444_v47 }
 0x7a8   :  { %v2418_v61 = vpop.xlane.xlu0 %2417 }
 0x7a9   :  { %v2421_v62 = vmul.f32 0.03125, %v2418_v61  ;;  %v2415_v63 = vpop.xlane.xlu1 %2414  ;;  %v15406_v61 = vld [vmem:[%s19165_s4 + $0x5] ss:$0 sm:$0xff] }
 0x7aa   :  { %v2420_v3 = vmul.f32 0.03125, %v2415_v63 }
 0x7ab   :  { %v2423_v4 = vsub.f32 %v2410_v57, %v2421_v62 }
 0x7ac   :  { %v2422_v5 = vsub.f32 %v2409_v58, %v2420_v3 }
 0x7ad   :  { %v2425_v10 = vmul.f32 %v2423_v4, %v2423_v4 }
 0x7ae   :  { %v2424_v7 = vmul.f32 %v2422_v5, %v2422_v5 }
 0x7af   :  { %v2429_v11 = vsel %vm68_vm1, %v2425_v10, 0.0 }
 0x7b0   :  { %v2426_v8 = vsel %vm68_vm1, %v2424_v7, 0.0 }
 0x7b1   :  { %2427 = vadd.xlane.f32.xlu1 %v2426_v8 }
 0x7b5   :  { %2430 = vadd.xlane.f32.xlu1 %v2429_v11 }
 0x83e   :  { %v2428_v35 = vpop.xlane.xlu1 %2427 }
 0x83f   :  { %v2432_v36 = vmul.f32 0.03125, %v2428_v35  ;;  %v15422_v35 = vld [vmem:[%s19165_s4 + $0xb] ss:$0 sm:$0xff] }
 0x841   :  { %v2434_v37 = vadd.f32 1e-05, %v2432_v36  ;;  %v17111_v36 = vpack.i.bf16 %v15412_v30, %v15411_v27 }
 0x842   :  { %v2431_v39 = vpop.xlane.xlu1 %2430 }
 0x843   :  { %17193 = vrsqrt.f32 %v2434_v37  ;;  %v2433_v40 = vmul.f32 0.03125, %v2431_v39 }
 0x845   :  { %v2435_v41 = vadd.f32 1e-05, %v2433_v40 }
 0x847   :  { %17195 = vrsqrt.f32 %v2435_v41 }
 0x84d   :  { %v17194_v42 = vpop.eup %17193 }
 0x84e   :  { %v2438_v44 = vmul.f32 %v17194_v42, %v2422_v5 }
 0x850   :  { %v2444_v46 = vmul.f32 %v15397_v43, %v2438_v44 }
 0x851   :  { %v17196_v48 = vpop.eup %17195 }
 0x852   :  { %v2439_v49 = vmul.f32 %v17196_v48, %v2423_v4  ;;  %v2450_v50 = vadd.f32 %v15398_v45, %v2444_v46 }
 0x854   :  { %v2445_v51 = vmul.f32 %v15397_v43, %v2439_v49  ;;  %16176 = vmatprep.mubr.msk.f32.mxu1 %vm68_vm1, %v2450_v50 }
 0x856   :  { %v2451_v0 = vadd.f32 %v15398_v45, %v2445_v51  ;;  %v15409_v45 = vld [vmem:[%s19165_s4 + $0x8] ss:$0 sm:$0xff] }
 0x858   :  { %16177 = vmatmul.mubr.msk.f32.vlgmr.msra.gmra.mrb[20].mxu1 %vm68_vm1, %v2451_v0 }
 0x859   :  { %16904 = vmatpush3.bf16.msra.mxu1 %v16901_v31 }
 0x85a   :  { %16906 = vmatprep.subr.bf16.mxu1 %v16905_v34 }
 0x85d   :  { %16908 = vmatpush3.bf16.msra.mxu1 %v16905_v34 }
 0x92b   :  { %v16178_v55 = vpop.f32.mrb[20].mxu1 }
 0x92c   :  { %v2540_v56 = vadd.f32 %v16178_v55, %v15403_v54  ;;  %v2534_v57 = vpop.f32.mrb[21].mxu1 }
 0x92d   :  { %v2535_v58 = vadd.f32 %v15403_v54, %v2534_v57 }
 0x92e   :  { %v2544_v60 = vmax.f32 %v2540_v56, 0.0 }
 0x92f   :  { %v2543_v59 = vmax.f32 %v2535_v58, 0.0 }
 0x931   :  { %16195 = vmatprep.mubr.msk.f32.mxu0 %vm2558_vm5, %v2543_v59 }
 0x932   :  { %16196 = vmatmul.mubr.msk.f32.vlgmr.msra.gmra.mrb[18].mxu0 %vm2558_vm5, %v2544_v60 }
 0x933   :  { %16222 = vmatprep.mubr.msk.f32.mxu0 %vm17445_vm3, %v17444_v47 }
 0xa05   :  { %v16197_v62 = vpop.f32.mrb[18].mxu0 }
 0xa06   :  { %v2637_v63 = vadd.f32 %v16197_v62, %v15406_v61  ;;  %v2631_v3 = vpop.f32.mrb[19].mxu0 }
 0xa07   :  { %v2632_v4 = vadd.f32 %v15406_v61, %v2631_v3 }
 0xa08   :  { %v2641_v5 = vadd.f32 %v2637_v63, %v2451_v0  ;;  %v15421_v63 = vld [vmem:[%s19165_s4 + $0xa] ss:$0 sm:$0xff] }
 0xa09   :  { %v2640_v7 = vadd.f32 %v2632_v4, %v2450_v50  ;;  %v15410_v50 = vld [vmem:[%s19165_s4 + $0x9] ss:$0 sm:$0xff] }
 0xa0a   :  { %v2647_v8 = vsel %vm68_vm1, %v2641_v5, 0.0 }
 0xa0b   :  { %2648 = vadd.xlane.f32.xlu0 %v2647_v8  ;;  %v2644_v10 = vsel %vm68_vm1, %v2640_v7, 0.0 }
 0xa0c   :  { %2645 = vadd.xlane.f32.xlu1 %v2644_v10 }
 0xa98   :  { %v2649_v11 = vpop.xlane.xlu0 %2648 }
 0xa99   :  { %v2651_v13 = vmul.f32 0.03125, %v2649_v11  ;;  %v2646_v14 = vpop.xlane.xlu1 %2645 }
 0xa9a   :  { %v2650_v17 = vmul.f32 0.03125, %v2646_v14 }
 0xa9b   :  { %v2653_v18 = vsub.f32 %v2641_v5, %v2651_v13 }
 0xa9c   :  { %v2652_v21 = vsub.f32 %v2640_v7, %v2650_v17 }
 0xa9d   :  { %v2655_v22 = vmul.f32 %v2653_v18, %v2653_v18 }
 0xa9e   :  { %v2654_v24 = vmul.f32 %v2652_v21, %v2652_v21 }
 0xa9f   :  { %v2659_v25 = vsel %vm68_vm1, %v2655_v22, 0.0 }
 0xaa0   :  { %2660 = vadd.xlane.f32.xlu0 %v2659_v25  ;;  %v2656_v26 = vsel %vm68_vm1, %v2654_v24, 0.0 }
 0xaa1   :  { %2657 = vadd.xlane.f32.xlu1 %v2656_v26 }
 0xab2   :  { %2790 = vrot.lane.b32.xlu1 %v15422_v35, %s17442_s20 }
 0xab6   :  { %17112 = vrot.lane.b32.xlu1 %v17111_v36, %s17441_s15 }
 0xb2d   :  { %v2661_v37 = vpop.xlane.xlu0 %2660 }
 0xb2e   :  { %v2663_v39 = vmul.f32 0.03125, %v2661_v37  ;;  %v2658_v40 = vpop.xlane.xlu1 %2657 }
 0xb2f   :  { %v2662_v41 = vmul.f32 0.03125, %v2658_v40 }
 0xb30   :  { %v2665_v42 = vadd.f32 1e-05, %v2663_v39 }
 0xb31   :  { %v2664_v43 = vadd.f32 1e-05, %v2662_v41 }
 0xb32   :  { %17197 = vrsqrt.f32 %v2665_v42  ;;  %v2791_v55 = vpop.permute.xlu1 %2790 }
 0xb33   :  { %17199 = vrsqrt.f32 %v2664_v43 }
 0xb36   :  { %v17113_v56 = vpop.permute.xlu1 %17112 }
 0xb37   :  { %v17115_v57 = vunpack.i.h.bf16 %v17113_v56  ;;  %v17114_v58 = vunpack.i.l.bf16 %v17113_v56 }
 0xb39   :  { %v16909_v59 = vpack.c.bf16 %v17115_v57, %v17114_v58 }
 0xb3b   :  { %16910 = vmatprep.subr.bf16.mxu1 %v16909_v59 }
 0xb3c   :  { %v17198_v44 = vpop.eup %17197 }
 0xb3d   :  { %v17200_v46 = vpop.eup %17199  ;;  %v2669_v48 = vmul.f32 %v17198_v44, %v2653_v18 }
 0xb3e   :  { %v2668_v49 = vmul.f32 %v17200_v46, %v2652_v21 }
 0xb3f   :  { %v2675_v51 = vmul.f32 %v15409_v45, %v2669_v48 }
 0xb40   :  { %v2674_v0 = vmul.f32 %v15409_v45, %v2668_v49 }
 0xb41   :  { %v17826_v1 = vadd.f32 %v15410_v50, %v2675_v51 }
 0xb42   :  { %v17828_v52 = vadd.f32 %v15410_v50, %v2674_v0 }
 0xb43   :  { %v2683_v54 = vadd.f32 %v17520_v16, %v17826_v1  ;;  %v17116_v16 = vpack.i.bf16 %v15414_v33, %v15413_v32 }
 0xb44   :  { %v2682_v53 = vadd.f32 %v17500_v9, %v17828_v52 }
 0xb46   :  { %16206 = vmatprep.mubr.msk.f32.mxu1 %vm68_vm1, %v2682_v53 }
 0xb47   :  { %16207 = vmatmul.mubr.msk.f32.vlgmr.msra.gmra.mrb[22].mxu1 %vm68_vm1, %v2683_v54 }
 0xb48   :  { %16217 = vmatprep.mubr.msk.f32.mxu1 %vm68_vm1, %v17828_v52  ;;  %16912 = vmatpush3.bf16.msra.mxu1 %v16909_v59 }
 0xc1a   :  { %v16208_v60 = vpop.f32.mrb[22].mxu1 }
 0xc1b   :  { %v2794_v61 = vadd.f32 %v16208_v60, %v2791_v55  ;;  %v2770_v9 = vpop.f32.mrb[23].mxu1  ;;  %v2784_v4 = vadd.f32 %v16208_v60, %v15421_v63 }
 0xc1c   :  { %v2793_v62 = vadd.f32 %v2791_v55, %v2770_v9  ;;  %v2783_v3 = vadd.f32 %v15421_v63, %v2770_v9 }
 0xc1d   :  { %3220 = vrot.lane.b32.xlu1 %v2794_v61, %s17443_s21 }
 0xc1e   :  { %3218 = vrot.lane.b32.xlu0 %v2793_v62, %s17443_s21 }
 0xc21   :  { %17117 = vrot.lane.b32.xlu1 %v17116_v16, %s17441_s15 }
 0xc3c   :  { %2896 = vxpose.xlu0.b32.start.end [1/1] (short) (narrow) %v2783_v3, 32 }
 0xc4a   :  { %2928 = vxpose.xlu1.b32.start.end [1/1] (short) (narrow) %v2784_v4, 32 }
 0xc8f   :  { %v3221_v5 = vpop.permute.xlu1 %3220 }
 0xc90   :  { %v3219_v13 = vpop.permute.xlu0 %3218 }
 0xc93   :  { %v17118_v7 = vpop.permute.xlu1 %17117 }
 0xc94   :  { %v17120_v8 = vunpack.i.h.bf16 %v17118_v7  ;;  %v17119_v10 = vunpack.i.l.bf16 %v17118_v7 }
 0xc96   :  { %v16913_v11 = vpack.c.bf16 %v17120_v8, %v17119_v10 }
 0xc98   :  { %16914 = vmatprep.subr.bf16.mxu1 %v16913_v11 }
 0xc99   :  { %16916 = vmatpush3.bf16.msra.mxu1 %v16913_v11 }
 0xc9a   :  { %16225 = vmatprep.subr.mxu1 %v17444_v47 }
 0xc9c   :  { %16218 = vmatmul.mubr.msk.f32.vlgmr.msra.gmra.mrb[24].mxu1 %vm68_vm1, %v17826_v1 }
 0xc9d   :  { %16227 = vmatprep.mubr.msk.f32.mxu1 %vm17445_vm3, %v17444_v47 }
 0xcbc   :  { %v2912_v14 = vpop.trf.xlu0 }
 0xcc0   :  { %v2913_v17 = vpop.trf.xlu0 }
 0xcc1   :  { %2992 = vxpose.xlu1.b32.start.end [1/1] (short) (narrow) %v2913_v17, 8 }
 0xcc4   :  { %v2914_v21 = vpop.trf.xlu0 }
 0xcc5   :  { %3256 = vxpose.xlu1.b32.start.end [1/1] (short) (narrow) %v3221_v5, 32 }
 0xcc8   :  { %v2915_v24 = vpop.trf.xlu0 }
 0xcca   :  { %v2944_v18 = vpop.trf.xlu1 }
 0xccb   :  { %3088 = vxpose.xlu0.b32.start.end [1/1] (short) (narrow) %v2944_v18, 8 }
 0xcce   :  { %v2945_v22 = vpop.trf.xlu1 }
 0xccf   :  { %2960 = vxpose.xlu0.b32.start.end [1/1] (short) (narrow) %v2912_v14, 8 }
 0xcd2   :  { %3120 = vxpose.xlu1.b32.start.end [1/1] (short) (narrow) %v2945_v22, 8  ;;  %v2946_v25 = vpop.trf.xlu1 }
 0xcd3   :  { %3024 = vxpose.xlu0.b32.start.end [1/1] (short) (narrow) %v2914_v21, 8 }
 0xcd6   :  { %v2947_v26 = vpop.trf.xlu1 }
 0xcd7   :  { %3056 = vxpose.xlu0.b32.start.end [1/1] (short) (narrow) %v2915_v24, 8 }
 0xcdb   :  { %3224 = vxpose.xlu0.b32.start.end [1/1] (short) (narrow) %v3219_v13, 32 }
 0xce8   :  { %3152 = vxpose.xlu0.b32.start.end [1/1] (short) (narrow) %v2946_v25, 8 }
 0xcec   :  { %3184 = vxpose.xlu0.b32.start.end [1/1] (short) (narrow) %v2947_v26, 8 }
 0xd41   :  { %v3008_v30 = vpop.trf.xlu1 }
 0xd45   :  { %v3272_v32 = vpop.trf.xlu1 }
 0xd49   :  { %v3273_v35 = vpop.trf.xlu1 }
 0xd4b   :  { %v3104_v27 = vpop.trf.xlu0 }
 0xd4d   :  { %v3274_v37 = vpop.trf.xlu1 }
 0xd4f   :  { %v2976_v31 = vpop.trf.xlu0 }
 0xd51   :  { %v3275_v41 = vpop.trf.xlu1 }
 0xd53   :  { %v3040_v33 = vpop.trf.xlu0 }
 0xd55   :  { %v3136_v43 = vpop.trf.xlu1 }
 0xd57   :  { %v3072_v34 = vpop.trf.xlu0 }
 0xd5b   :  { %v3240_v36 = vpop.trf.xlu0 }
 0xd5c   :  { %16221 = vmatpush3.msra.mxu0 %v3240_v36 }
 0xd5d   :  { %16223 = vmatmul.mubr.msk.f32.vlgmr.msra.gmra.mrb[20].mxu0 %vm723_vm4, %v2976_v31  ;;  %16230 = vmatprep.subr.mxu0 %v17444_v47 }
 0xd5e   :  { %16232 = vmatprep.mubr.msk.f32.mxu0 %vm17445_vm3, %v17444_v47 }
 0xd5f   :  { %v3241_v39 = vpop.trf.xlu0 }
 0xd60   :  { %16226 = vmatpush3.msra.mxu1 %v3241_v39 }
 0xd61   :  { %16228 = vmatmul.mubr.msk.f32.vlgmr.msra.gmra.mrb[26].mxu1 %vm723_vm4, %v3008_v30  ;;  %16235 = vmatprep.subr.mxu1 %v17444_v47 }
 0xd62   :  { %16237 = vmatprep.mubr.msk.f32.mxu1 %vm17445_vm3, %v17444_v47 }
 0xd63   :  { %v3242_v40 = vpop.trf.xlu0 }
 0xd64   :  { %16231 = vmatpush3.msra.mxu0 %v3242_v40 }
 0xd65   :  { %16233 = vmatmul.mubr.msk.f32.vlgmr.msra.gmra.mrb[22].mxu0 %vm723_vm4, %v3040_v33  ;;  %16240 = vmatprep.subr.mxu0 %v17444_v47 }
 0xd66   :  { %16241 = vmatpush3.msra.mxu0 %v3272_v32  ;;  %16242 = vmatprep.mubr.msk.f32.mxu0 %vm17445_vm3, %v17444_v47 }
 0xd67   :  { %v3243_v42 = vpop.trf.xlu0  ;;  %16250 = vmatprep.subr.mxu0 %v17444_v47 }
 0xd68   :  { %16236 = vmatpush3.msra.mxu1 %v3243_v42 }
 0xd69   :  { %16238 = vmatmul.mubr.msk.f32.vlgmr.msra.gmra.mrb[28].mxu1 %vm723_vm4, %v3072_v34  ;;  %16243 = vmatmul.mubr.msk.f32.vlgmr.msra.gmra.mrb[24].mxu0 %vm723_vm4, %v3104_v27 }
 0xd6a   :  { %16245 = vmatprep.subr.mxu1 %v17444_v47  ;;  %16251 = vmatpush3.msra.mxu0 %v3274_v37 }
 0xd6b   :  { %16246 = vmatpush3.msra.mxu1 %v3273_v35  ;;  %v3168_v44 = vpop.trf.xlu0  ;;  %16252 = vmatprep.mubr.msk.f32.mxu0 %vm17445_vm3, %v17444_v47 }
 0xd6c   :  { %16247 = vmatprep.mubr.msk.f32.mxu1 %vm17445_vm3, %v17444_v47  ;;  %16255 = vmatprep.subr.mxu1 %v17444_v47 }
 0xd6d   :  { %16248 = vmatmul.mubr.msk.f32.vlgmr.msra.gmra.mrb[30].mxu1 %vm723_vm4, %v3136_v43  ;;  %16253 = vmatmul.mubr.msk.f32.vlgmr.msra.gmra.mrb[26].mxu0 %vm723_vm4, %v3168_v44 }
 0xd6e   :  { %16256 = vmatpush3.msra.mxu1 %v3275_v41  ;;  %16257 = vmatprep.mubr.msk.f32.mxu1 %vm17445_vm3, %v17444_v47 }
 0xd6f   :  { %v17874_v45 = vpop.f32.mrb[24].mxu1  ;;  %v3200_v46 = vpop.trf.xlu0  ;;  %16260 = vmatprep.subr.mxu0 %v17444_v47  ;;  %16262 = vmatprep.mubr.msk.f32.mxu0 %vm17445_vm3, %v17444_v47 }
 0xd70   :  { %v17879_v48 = vpop.f32.mrb[25].mxu1  ;;  %16265 = vmatprep.subr.mxu1 %v17444_v47 }
 0xd71   :  { %16258 = vmatmul.mubr.msk.f32.vlgmr.msra.gmra.mrb[32].mxu1 %vm723_vm4, %v3200_v46 }
 0xd72   :  { %16267 = vmatprep.mubr.msk.f32.mxu1 %vm17445_vm3, %v17444_v47 }
 0xe30   :  { %v3421_v49 = vpop.f32.mrb[20].mxu0 }
 0xe31   :  { %v3422_v50 = vadd.f32 %v3421_v49, %v17589_v2  ;;  %v16224_v51 = vpop.f32.mrb[21].mxu0 }
 0xe33   :  { %v3936_v0 = vsel %vm723_vm4, %v3422_v50, -inf }
 0xe34   :  { %3937 = vmax.xlane.f32.xlu0 %v3936_v0  ;;  %v3494_v53 = vpop.f32.mrb[26].mxu1 }
 0xe35   :  { %v3495_v54 = vadd.f32 %v3494_v53, %v17595_v6  ;;  %v16229_v55 = vpop.f32.mrb[27].mxu1 }
 0xe37   :  { %v3939_v56 = vsel %vm723_vm4, %v3495_v54, -inf }
 0xe38   :  { %v3567_v57 = vpop.f32.mrb[22].mxu0  ;;  %3940 = vmax.xlane.f32.xlu1 %v3939_v56 }
 0xe39   :  { %v3568_v58 = vadd.f32 %v3567_v57, %v17602_v12  ;;  %v16234_v59 = vpop.f32.mrb[23].mxu0 }
 0xe3b   :  { %v3942_v60 = vsel %vm723_vm4, %v3568_v58, -inf }
 0xe3c   :  { %v3713_v61 = vpop.f32.mrb[24].mxu0  ;;  %3943 = vmax.xlane.f32.xlu1 %v3942_v60  ;;  %v3640_v2 = vpop.f32.mrb[28].mxu1 }
 0xe3d   :  { %v3714_v9 = vadd.f32 %v3713_v61, %v17615_v23  ;;  %v3641_v62 = vadd.f32 %v3640_v2, %v17609_v20  ;;  %v16239_v16 = vpop.f32.mrb[29].mxu1  ;;  %v16244_v63 = vpop.f32.mrb[25].mxu0 }
 0xe3f   :  { %v3948_v6 = vsel %vm723_vm4, %v3714_v9, -inf  ;;  %v3945_v3 = vsel %vm723_vm4, %v3641_v62, -inf }
 0xe40   :  { %3949 = vmax.xlane.f32.xlu0 %v3948_v6  ;;  %v3859_v4 = vpop.f32.mrb[26].mxu0  ;;  %3946 = vmax.xlane.f32.xlu1 %v3945_v3  ;;  %v3786_v12 = vpop.f32.mrb[30].mxu1 }
 0xe41   :  { %v3860_v5 = vadd.f32 %v3859_v4, %v17626_v29  ;;  %v3787_v7 = vadd.f32 %v3786_v12, %v17621_v28  ;;  %v16254_v8 = vpop.f32.mrb[27].mxu0  ;;  %v16249_v10 = vpop.f32.mrb[31].mxu1 }
 0xe43   :  { %v3954_v23 = vsel %vm723_vm4, %v3860_v5, -inf  ;;  %v3951_v20 = vsel %vm723_vm4, %v3787_v7, -inf }
 0xe44   :  { %3955 = vmax.xlane.f32.xlu0 %v3954_v23  ;;  %3952 = vmax.xlane.f32.xlu1 %v3951_v20  ;;  %v3932_v11 = vpop.f32.mrb[32].mxu1 }
 0xe45   :  { %v3933_v13 = vadd.f32 %v3932_v11, %v17635_v38  ;;  %v16259_v14 = vpop.f32.mrb[33].mxu1 }
 0xe47   :  { %v3957_v17 = vsel %vm723_vm4, %v3933_v13, -inf }
 0xe48   :  { %3958 = vmax.xlane.f32.xlu1 %v3957_v17 }
 0xec1   :  { %v3938_v18 = vpop.xlane.xlu0 %3937 }
 0xec2   :  { %v3960_v21 = vsub.f32 %v3422_v50, %v3938_v18 }
 0xec4   :  { %v3968_v29 = vmul.f32 1.442695, %v3960_v21 }
 0xec5   :  { %v3941_v22 = vpop.xlane.xlu1 %3940 }
 0xec6   :  { %17201 = vpow2.f32 %v3968_v29  ;;  %v3961_v28 = vsub.f32 %v3495_v54, %v3941_v22 }
 0xec8   :  { %v3970_v24 = vmul.f32 1.442695, %v3961_v28 }
 0xec9   :  { %v3944_v25 = vpop.xlane.xlu1 %3943 }
 0xeca   :  { %17203 = vpow2.f32 %v3970_v24  ;;  %v3962_v26 = vsub.f32 %v3568_v58, %v3944_v25 }
 0xecc   :  { %v3972_v27 = vmul.f32 1.442695, %v3962_v26 }
 0xecd   :  { %v3950_v30 = vpop.xlane.xlu0 %3949  ;;  %v3947_v31 = vpop.xlane.xlu1 %3946 }
 0xece   :  { %17205 = vpow2.f32 %v3972_v27  ;;  %v3964_v32 = vsub.f32 %v3714_v9, %v3950_v30  ;;  %v3963_v38 = vsub.f32 %v3641_v62, %v3947_v31  ;;  %v15423_v62 = vld [vmem:[%s19165_s4 + $0xc] ss:$0 sm:$0xff] }
 0xecf   :  { %v2888_v16 = vadd.f32 %v15423_v62, %v17879_v48  ;;  %v2893_v63 = vadd.f32 %v17874_v45, %v15423_v62 }
 0xed0   :  { %v17202_v33 = vpop.eup %17201  ;;  %v3976_v34 = vmul.f32 1.442695, %v3964_v32  ;;  %v3974_v35 = vmul.f32 1.442695, %v3963_v38 }
 0xed1   :  { %v3956_v36 = vpop.xlane.xlu0 %3955  ;;  %v3953_v37 = vpop.xlane.xlu1 %3952  ;;  %v3984_v39 = vsel %vm723_vm4, %v17202_v33, 0.0 }
 0xed2   :  { %17207 = vpow2.f32 %v3976_v34  ;;  %v3966_v40 = vsub.f32 %v3860_v5, %v3956_v36  ;;  %v3965_v41 = vsub.f32 %v3787_v7, %v3953_v37  ;;  %3985 = vadd.xlane.f32.xlu0 %v3984_v39 }
 0xed3   :  { %17209 = vpow2.f32 %v3974_v35 }
 0xed4   :  { %v17204_v42 = vpop.eup %17203  ;;  %v3980_v43 = vmul.f32 1.442695, %v3966_v40  ;;  %v3978_v44 = vmul.f32 1.442695, %v3965_v41 }
 0xed5   :  { %v3959_v46 = vpop.xlane.xlu1 %3958  ;;  %v3987_v49 = vsel %vm723_vm4, %v17204_v42, 0.0 }
 0xed6   :  { %17211 = vpow2.f32 %v3980_v43  ;;  %v3967_v50 = vsub.f32 %v3933_v13, %v3959_v46  ;;  %3988 = vadd.xlane.f32.xlu1 %v3987_v49 }
 0xed7   :  { %17213 = vpow2.f32 %v3978_v44 }
 0xed8   :  { %v17206_v51 = vpop.eup %17205  ;;  %v3982_v0 = vmul.f32 1.442695, %v3967_v50 }
 0xed9   :  { %v3990_v53 = vsel %vm723_vm4, %v17206_v51, 0.0 }
 0xeda   :  { %17215 = vpow2.f32 %v3982_v0  ;;  %3991 = vadd.xlane.f32.xlu0 %v3990_v53 }
 0xedc   :  { %v17904_v54 = vpop.eup %17207 }
 0xedd   :  { %v17210_v55 = vpop.eup %17209  ;;  %v3996_v56 = vsel %vm723_vm4, %v17904_v54, 0.0 }
 0xede   :  { %3997 = vadd.xlane.f32.xlu0 %v3996_v56  ;;  %v3993_v57 = vsel %vm723_vm4, %v17210_v55, 0.0  ;;  %v15415_v56 = vld [vmem:[%s19163_s2 + $0x80] sm:$0xff] }
 0xedf   :  { %3994 = vadd.xlane.f32.xlu1 %v3993_v57  ;;  %v15416_v57 = vld [vmem:[%s19163_s2 + $0x88] sm:$0xff] }
 0xee0   :  { %v17909_v58 = vpop.eup %17211 }
 0xee1   :  { %v17911_v59 = vpop.eup %17213  ;;  %v4002_v60 = vsel %vm723_vm4, %v17909_v58, 0.0 }
 0xee2   :  { %4003 = vadd.xlane.f32.xlu0 %v4002_v60  ;;  %v3999_v61 = vsel %vm723_vm4, %v17911_v59, 0.0  ;;  %v15418_v60 = vld [vmem:[%s19163_s2 + $0x98] sm:$0xff] }
 0xee3   :  { %4000 = vadd.xlane.f32.xlu1 %v3999_v61 }
 0xee4   :  { %v17917_v2 = vpop.eup %17215 }
 0xee5   :  { %v4005_v9 = vsel %vm723_vm4, %v17917_v2, 0.0 }
 0xee7   :  { %4006 = vadd.xlane.f32.xlu1 %v4005_v9 }
 0xf0f   :  { %3288 = vxpose.xlu0.b32.start.end [1/1] (short) (narrow) %v2888_v16, 32 }
 0xf1a   :  { %3320 = vxpose.xlu1.b32.start.end [1/1] (short) (narrow) %v2893_v63, 32 }
 0xf5f   :  { %v3986_v6 = vpop.xlane.xlu0 %3985 }
 0xf60   :  { %17217 = vrcp.f32 %v3986_v6 }
 0xf63   :  { %v3989_v4 = vpop.xlane.xlu1 %3988 }
 0xf64   :  { %17219 = vrcp.f32 %v3989_v4 }
 0xf67   :  { %v3992_v3 = vpop.xlane.xlu0 %3991 }
 0xf68   :  { %17221 = vrcp.f32 %v3992_v3 }
 0xf6a   :  { %v17218_v8 = vpop.eup %17217 }
 0xf6b   :  { %v3998_v12 = vpop.xlane.xlu0 %3997  ;;  %v4016_v48 = vmul.f32 %v17218_v8, %v17202_v33 }
 0xf6c   :  { %v3995_v5 = vpop.xlane.xlu1 %3994  ;;  %17223 = vrcp.f32 %v3998_v12 }
 0xf6d   :  { %17225 = vrcp.f32 %v3995_v5 }
 0xf6e   :  { %v17220_v45 = vpop.eup %17219 }
 0xf6f   :  { %v4004_v7 = vpop.xlane.xlu0 %4003  ;;  %v4017_v11 = vmul.f32 %v17220_v45, %v17204_v42 }
 0xf70   :  { %v4001_v23 = vpop.xlane.xlu1 %4000 }
 0xf71   :  { %17227 = vrcp.f32 %v4001_v23 }
 0xf72   :  { %v17222_v13 = vpop.eup %17221  ;;  %17229 = vrcp.f32 %v4004_v7  ;;  %v15450_v7 = vld [vmem:[%s19165_s4 + $0xd] ss:$0 sm:$0xff] }
 0xf73   :  { %v4018_v21 = vmul.f32 %v17222_v13, %v17206_v51 }
 0xf74   :  { %v4007_v14 = vpop.xlane.xlu1 %4006 }
 0xf75   :  { %17231 = vrcp.f32 %v4007_v14 }
 0xf76   :  { %v17224_v18 = vpop.eup %17223 }
 0xf77   :  { %v17226_v29 = vpop.eup %17225  ;;  %v4020_v25 = vmul.f32 %v17224_v18, %v17904_v54 }
 0xf78   :  { %v4019_v24 = vmul.f32 %v17226_v29, %v17210_v55 }
 0xf7b   :  { %v17228_v26 = vpop.eup %17227 }
 0xf7c   :  { %v17230_v30 = vpop.eup %17229  ;;  %v4021_v31 = vmul.f32 %v17228_v26, %v17911_v59  ;;  %v16917_v59 = vpack.c.bf16 %v15416_v57, %v15415_v56  ;;  %v15456_v26 = vld [vmem:[%s19163_s2 + $0xa8] sm:$0xff]  ;;  %v15453_v56 = vld [vmem:[%s19165_s4 + $0x10] ss:$0 sm:$0xff] }
 0xf7d   :  { %v4022_v38 = vmul.f32 %v17230_v30, %v17909_v58  ;;  %v15417_v58 = vld [vmem:[%s19163_s2 + $0x90] sm:$0xff] }
 0xf7e   :  { %v16921_v61 = vpack.c.bf16 %v15418_v60, %v15417_v58  ;;  %v15454_v58 = vld [vmem:[%s19165_s4 + $0x11] ss:$0 sm:$0xff]  ;;  %v15357_v60 = vld [vmem:[%s19161_s0 + $0x40] sm:$0xff] }
 0xf7f   :  { %v17232_v33 = vpop.eup %17231  ;;  %vm49_vm6 = vcmp.gt.f32.partialorder %v15357_v60, 0.5 }
 0xf80   :  { %v4023_v35 = vmul.f32 %v17232_v33, %v17917_v2  ;;  %v15476_v33 = vld [vmem:[%s19163_s2 + $0xc8] sm:$0xff] }
 0xf8f   :  { %v3304_v10 = vpop.trf.xlu0 }
 0xf90   :  { %16261 = vmatpush3.xpose.msk.msra.mxu0 %vm723_vm4, %v3304_v10 }
 0xf91   :  { %16270 = vmatprep.subr.mxu0 %v17444_v47 }
 0xf93   :  { %16263 = vmatmul.mubr.msk.f32.vlgmr.msra.gmra.mrb[28].mxu0 %vm723_vm4, %v4016_v48  ;;  %v3305_v20 = vpop.trf.xlu0 }
 0xf94   :  { %16266 = vmatpush3.xpose.msk.msra.mxu1 %vm723_vm4, %v3305_v20  ;;  %16272 = vmatprep.mubr.msk.f32.mxu0 %vm17445_vm3, %v17444_v47 }
 0xf95   :  { %16275 = vmatprep.subr.mxu1 %v17444_v47 }
 0xf97   :  { %16268 = vmatmul.mubr.msk.f32.vlgmr.msra.gmra.mrb[34].mxu1 %vm723_vm4, %v4017_v11  ;;  %v3306_v17 = vpop.trf.xlu0 }
 0xf98   :  { %16271 = vmatpush3.xpose.msk.msra.mxu0 %vm723_vm4, %v3306_v17  ;;  %16277 = vmatprep.mubr.msk.f32.mxu1 %vm17445_vm3, %v17444_v47 }
 0xf99   :  { %16280 = vmatprep.subr.mxu0 %v17444_v47 }
 0xf9a   :  { %v3336_v22 = vpop.trf.xlu1 }
 0xf9b   :  { %16273 = vmatmul.mubr.msk.f32.vlgmr.msra.gmra.mrb[30].mxu0 %vm723_vm4, %v4018_v21  ;;  %v3307_v28 = vpop.trf.xlu0 }
 0xf9c   :  { %16276 = vmatpush3.xpose.msk.msra.mxu1 %vm723_vm4, %v3307_v28  ;;  %16281 = vmatpush3.xpose.msk.msra.mxu0 %vm723_vm4, %v3336_v22 }
 0xf9d   :  { %16282 = vmatprep.mubr.msk.f32.mxu0 %vm17445_vm3, %v17444_v47  ;;  %16285 = vmatprep.subr.mxu1 %v17444_v47 }
 0xf9e   :  { %v3337_v27 = vpop.trf.xlu1  ;;  %16290 = vmatprep.subr.mxu0 %v17444_v47 }
 0xf9f   :  { %16278 = vmatmul.mubr.msk.f32.vlgmr.msra.gmra.mrb[36].mxu1 %vm723_vm4, %v4019_v24  ;;  %16283 = vmatmul.mubr.msk.f32.vlgmr.msra.gmra.mrb[32].mxu0 %vm723_vm4, %v4020_v25 }
 0xfa0   :  { %16286 = vmatpush3.xpose.msk.msra.mxu1 %vm723_vm4, %v3337_v27  ;;  %16287 = vmatprep.mubr.msk.f32.mxu1 %vm17445_vm3, %v17444_v47  ;;  %v15457_v27 = vld [vmem:[%s19163_s2 + $0xb0] sm:$0xff] }
 0xfa1   :  { %16292 = vmatprep.mubr.msk.f32.mxu0 %vm17445_vm3, %v17444_v47  ;;  %16295 = vmatprep.subr.mxu1 %v17444_v47 }
 0xfa2   :  { %v3338_v32 = vpop.trf.xlu1 }
 0xfa3   :  { %16291 = vmatpush3.xpose.msk.msra.mxu0 %vm723_vm4, %v3338_v32  ;;  %16288 = vmatmul.mubr.msk.f32.vlgmr.msra.gmra.mrb[38].mxu1 %vm723_vm4, %v4021_v31  ;;  %v15458_v31 = vld [vmem:[%s19163_s2 + $0xb8] sm:$0xff] }
 0xfa4   :  { %16297 = vmatprep.mubr.msk.f32.mxu1 %vm17445_vm3, %v17444_v47  ;;  %16918 = vmatprep.subr.bf16.mxu0 %v16917_v59  ;;  %v16929_v32 = vpack.c.bf16 %v15458_v31, %v15457_v27 }
 0xfa6   :  { %v3339_v34 = vpop.trf.xlu1  ;;  %16293 = vmatmul.mubr.msk.f32.vlgmr.msra.gmra.mrb[34].mxu0 %vm723_vm4, %v4022_v38  ;;  %v15475_v38 = vld [vmem:[%s19163_s2 + $0xc0] sm:$0xff] }
 0xfa7   :  { %16296 = vmatpush3.xpose.msk.msra.mxu1 %vm723_vm4, %v3339_v34  ;;  %16920 = vmatpush3.bf16.msra.mxu0 %v16917_v59  ;;  %v16949_v34 = vpack.c.bf16 %v15476_v33, %v15475_v38 }
 0xfa8   :  { %16922 = vmatprep.subr.bf16.mxu0 %v16921_v61 }
 0xfaa   :  { %16298 = vmatmul.mubr.msk.f32.vlgmr.msra.gmra.mrb[40].mxu1 %vm723_vm4, %v4023_v35  ;;  %v15486_v35 = vld [vmem:[%s19165_s4 + $0x15] ss:$0 sm:$0xff] }
 0xfab   :  { %16924 = vmatpush3.bf16.msra.mxu0 %v16921_v61 }
0x1066   :  { %v4096_v36 = vpop.f32.mrb[28].mxu0 }
0x1067   :  { %4632 = vxpose.xlu0.b32.start.end [1/1] (short) (narrow) %v4096_v36, 8  ;;  %v16264_v37 = vpop.f32.mrb[29].mxu0  ;;  %v15462_v36 = vld [vmem:[%s19164_s3 + $0x40] sm:$0xff] }
0x1068   :  { %v15463_v37 = vld [vmem:[%s19164_s3 + $0x48] sm:$0xff] }
0x106a   :  { %v4172_v39 = vpop.f32.mrb[34].mxu1 }
0x106b   :  { %4664 = vxpose.xlu0.b32.start.end [1/1] (short) (narrow) %v4172_v39, 8  ;;  %v16269_v40 = vpop.f32.mrb[35].mxu1  ;;  %v16933_v39 = vpack.c.bf16 %v15463_v37, %v15462_v36 }
0x106c   :  { %v15464_v40 = vld [vmem:[%s19164_s3 + $0x50] sm:$0xff] }
0x106d   :  { %16934 = vmatprep.subr.bf16.mxu0 %v16933_v39 }
0x106e   :  { %v4248_v41 = vpop.f32.mrb[30].mxu0 }
0x106f   :  { %4696 = vxpose.xlu0.b32.start.end [1/1] (short) (narrow) %v4248_v41, 8  ;;  %v16274_v42 = vpop.f32.mrb[31].mxu0  ;;  %v15465_v41 = vld [vmem:[%s19164_s3 + $0x58] sm:$0xff] }
0x1070   :  { %v16937_v42 = vpack.c.bf16 %v15465_v41, %v15464_v40 }
0x1072   :  { %v4324_v43 = vpop.f32.mrb[36].mxu1  ;;  %v4400_v44 = vpop.f32.mrb[32].mxu0 }
0x1073   :  { %4760 = vxpose.xlu1.b32.start.end [1/1] (short) (narrow) %v4400_v44, 8  ;;  %v16279_v46 = vpop.f32.mrb[37].mxu1  ;;  %v16284_v49 = vpop.f32.mrb[33].mxu0  ;;  %v15467_v44 = vld [vmem:[%s19164_s3 + $0x68] sm:$0xff] }
0x1076   :  { %v4476_v50 = vpop.f32.mrb[38].mxu1 }
0x1077   :  { %4792 = vxpose.xlu0.b32.start.end [1/1] (short) (narrow) %v4476_v50, 8  ;;  %v16289_v51 = vpop.f32.mrb[39].mxu1 }
0x1079   :  { %v4552_v0 = vpop.f32.mrb[34].mxu0 }
0x107a   :  { %4824 = vxpose.xlu1.b32.start.end [1/1] (short) (narrow) %v4552_v0, 8  ;;  %v16294_v53 = vpop.f32.mrb[35].mxu0 }
0x107b   :  { %4728 = vxpose.xlu0.b32.start.end [1/1] (short) (narrow) %v4324_v43, 8  ;;  %v15466_v43 = vld [vmem:[%s19164_s3 + $0x60] sm:$0xff] }
0x107c   :  { %v16941_v46 = vpack.c.bf16 %v15467_v44, %v15466_v43 }
0x107d   :  { %v4628_v54 = vpop.f32.mrb[40].mxu1 }
0x107e   :  { %4856 = vxpose.xlu1.b32.start.end [1/1] (short) (narrow) %v4628_v54, 8  ;;  %v16299_v55 = vpop.f32.mrb[41].mxu1 }
0x10e7   :  { %v4648_v2 = vpop.trf.xlu0 }
0x10e8   :  { %4888 = vxpose.xlu0.b32.start [1/4] (short) (narrow) %v4648_v2, 8 }
0x10eb   :  { %v4680_v9 = vpop.trf.xlu0 }
0x10ec   :  { %4889 = vxpose.xlu0.b32.cont [2/4] (short) (narrow) %v4680_v9, 8 }
0x10ef   :  { %v4712_v62 = vpop.trf.xlu0 }
0x10f0   :  { %4890 = vxpose.xlu0.b32.cont [3/4] (short) (narrow) %v4712_v62, 8  ;;  %v15477_v62 = vld [vmem:[%s19163_s2 + $0xd0] sm:$0xff] }
0x10f3   :  { %v4776_v16 = vpop.trf.xlu1 }
0x10f4   :  { %4920 = vxpose.xlu1.b32.start [1/4] (short) (narrow) %v4776_v16, 8  ;;  %v15478_v16 = vld [vmem:[%s19163_s2 + $0xd8] sm:$0xff] }
0x10f7   :  { %v4808_v63 = vpop.trf.xlu0 }
0x10f8   :  { %4921 = vxpose.xlu1.b32.cont [2/4] (short) (narrow) %v4808_v63, 8 }
0x10fa   :  { %v4840_v6 = vpop.trf.xlu1 }
0x10fb   :  { %v4744_v3 = vpop.trf.xlu0 }
0x10fc   :  { %4922 = vxpose.xlu1.b32.cont [3/4] (short) (narrow) %v4840_v6, 8  ;;  %4891 = vxpose.xlu0.b32.end [4/4] (short) (narrow) %v4744_v3, 8  ;;  %v16953_v3 = vpack.c.bf16 %v15478_v16, %v15477_v62  ;;  %v18148_v62 = vld [vmem:[%s19162_s1 + $0x10] sm:$0xff] }
0x10fe   :  { %v4872_v4 = vpop.trf.xlu1 }
0x1100   :  { %4923 = vxpose.xlu1.b32.end [4/4] (short) (narrow) %v4872_v4, 8  ;;  %v17393_v4 = vld [vmem:[%s19161_s0 + $0x10] sm:$0xff] }
0x1170   :  { %v4904_v12 = vpop.trf.xlu0 }
0x1171   :  { %16308 = vmatprep.mubr.msk.f32.mxu0 %vm68_vm1, %v4904_v12  ;;  %v18052_v12 = vsel %vm49_vm6, %v17515_v15, %v17393_v4 }
0x1174   :  { %v4936_v5 = vpop.trf.xlu1 }
0x1175   :  { %16309 = vmatmul.mubr.msk.f32.vlgmr.msra.gmra.mrb[36].mxu0 %vm68_vm1, %v4936_v5  ;;  %v15358_v5 = vld [vmem:[%s19161_s0 + $0x48] sm:$0xff] }
0x1176   :  { %16936 = vmatpush3.bf16.msra.mxu0 %v16933_v39  ;;  %vm50_vm7 = vcmp.gt.f32.partialorder %v15358_v5, 0.5 }
0x1177   :  { %16938 = vmatprep.subr.bf16.mxu0 %v16937_v42 }
0x117a   :  { %16940 = vmatpush3.bf16.msra.mxu0 %v16937_v42 }
0x117b   :  { %16942 = vmatprep.subr.bf16.mxu0 %v16941_v46 }
0x117e   :  { %16944 = vmatpush3.bf16.msra.mxu0 %v16941_v46 }
0x1248   :  { %v16310_v8 = vpop.f32.mrb[36].mxu0 }
0x1249   :  { %v5034_v10 = vadd.f32 %v16310_v8, %v15450_v7  ;;  %v5028_v23 = vpop.f32.mrb[37].mxu0  ;;  %v15468_v8 = vld [vmem:[%s19164_s3 + $0x70] sm:$0xff] }
0x124a   :  { %v5029_v48 = vadd.f32 %v15450_v7, %v5028_v23  ;;  %v17394_v7 = vld [vmem:[%s19161_s0 + $0x18] sm:$0xff] }
0x124b   :  { %v5038_v45 = vadd.f32 %v5034_v10, %v17826_v1  ;;  %v18065_v15 = vsel %vm50_vm7, %v17527_v19, %v17394_v7  ;;  %v15469_v10 = vld [vmem:[%s19164_s3 + $0x78] sm:$0xff]  ;;  %v15459_v19 = vld [vmem:[%s19165_s4 + $0xe] ss:$0 sm:$0xff] }
0x124c   :  { %v5037_v20 = vadd.f32 %v5029_v48, %v17828_v52  ;;  %v15455_v52 = vld [vmem:[%s19163_s2 + $0xa0] sm:$0xff]  ;;  %v16945_v23 = vpack.c.bf16 %v15469_v10, %v15468_v8  ;;  %v18155_v8 = vld [vmem:[%s19162_s1 + $0x8] sm:$0xff] }
0x124d   :  { %v5044_v11 = vsel %vm68_vm1, %v5038_v45, 0.0  ;;  %v16925_v30 = vpack.c.bf16 %v15456_v26, %v15455_v52 }
0x124e   :  { %5045 = vadd.xlane.f32.xlu1 %v5044_v11  ;;  %v5041_v13 = vsel %vm68_vm1, %v5037_v20, 0.0  ;;  %16946 = vmatprep.subr.bf16.mxu0 %v16945_v23 }
0x124f   :  { %5042 = vadd.xlane.f32.xlu0 %v5041_v13  ;;  %16926 = vmatprep.subr.bf16.mxu1 %v16925_v30 }
0x1250   :  { %16928 = vmatpush3.bf16.msra.mxu1 %v16925_v30  ;;  %16948 = vmatpush3.bf16.msra.mxu0 %v16945_v23 }
0x1251   :  { %16930 = vmatprep.subr.bf16.mxu1 %v16929_v32  ;;  %16362 = vmatprep.subr.mxu0 %v17444_v47 }
0x1254   :  { %16932 = vmatpush3.bf16.msra.mxu1 %v16929_v32 }
0x1255   :  { %16950 = vmatprep.subr.bf16.mxu1 %v16949_v34 }
0x1265   :  { %5415 = vrot.lane.b32.xlu0 %v15486_v35, %s17442_s20 }
0x12db   :  { %v5046_v14 = vpop.xlane.xlu1 %5045 }
0x12dc   :  { %v5048_v17 = vmul.f32 0.03125, %v5046_v14  ;;  %v5043_v18 = vpop.xlane.xlu0 %5042 }
0x12dd   :  { %v5047_v21 = vmul.f32 0.03125, %v5043_v18  ;;  %v15485_v18 = vld [vmem:[%s19165_s4 + $0x14] ss:$0 sm:$0xff] }
0x12de   :  { %v5050_v29 = vsub.f32 %v5038_v45, %v5048_v17 }
0x12df   :  { %v5049_v22 = vsub.f32 %v5037_v20, %v5047_v21 }
0x12e0   :  { %v5052_v25 = vmul.f32 %v5050_v29, %v5050_v29  ;;  %v5416_v17 = vpop.permute.xlu0 %5415 }
0x12e1   :  { %v5051_v28 = vmul.f32 %v5049_v22, %v5049_v22 }
0x12e2   :  { %v5056_v1 = vsel %vm68_vm1, %v5052_v25, 0.0 }
0x12e3   :  { %v5053_v24 = vsel %vm68_vm1, %v5051_v28, 0.0 }
0x12e4   :  { %5054 = vadd.xlane.f32.xlu1 %v5053_v24 }
0x12e8   :  { %5057 = vadd.xlane.f32.xlu1 %v5056_v1 }
0x1371   :  { %v5055_v49 = vpop.xlane.xlu1 %5054 }
0x1372   :  { %v5059_v50 = vmul.f32 0.03125, %v5055_v49 }
0x1374   :  { %v5061_v51 = vadd.f32 1e-05, %v5059_v50 }
0x1375   :  { %v5058_v0 = vpop.xlane.xlu1 %5057 }
0x1376   :  { %17233 = vrsqrt.f32 %v5061_v51  ;;  %v5060_v53 = vmul.f32 0.03125, %v5058_v0 }
0x1378   :  { %v5062_v54 = vadd.f32 1e-05, %v5060_v53 }
0x137a   :  { %17235 = vrsqrt.f32 %v5062_v54 }
0x1380   :  { %v17234_v55 = vpop.eup %17233 }
0x1381   :  { %v5065_v57 = vmul.f32 %v17234_v55, %v5049_v22 }
0x1383   :  { %v5071_v59 = vmul.f32 %v15453_v56, %v5065_v57 }
0x1384   :  { %v17236_v61 = vpop.eup %17235 }
0x1385   :  { %v5066_v2 = vmul.f32 %v17236_v61, %v5050_v29  ;;  %v18036_v9 = vadd.f32 %v15454_v58, %v5071_v59 }
0x1387   :  { %v5072_v63 = vmul.f32 %v15453_v56, %v5066_v2  ;;  %16319 = vmatprep.mubr.msk.f32.mxu1 %vm68_vm1, %v18036_v9 }
0x1389   :  { %v18046_v6 = vadd.f32 %v15454_v58, %v5072_v63  ;;  %v18138_v58 = vld [vmem:[%s19162_s1] sm:$0xff] }
0x138b   :  { %16320 = vmatmul.mubr.msk.f32.vlgmr.msra.gmra.mrb[42].mxu1 %vm68_vm1, %v18046_v6 }
0x138c   :  { %16952 = vmatpush3.bf16.msra.mxu1 %v16949_v34  ;;  %16349 = vmatprep.mubr.msk.f32.mxu1 %vm68_vm1, %v18052_v12 }
0x138d   :  { %16954 = vmatprep.subr.bf16.mxu1 %v16953_v3 }
0x1390   :  { %16956 = vmatpush3.bf16.msra.mxu1 %v16953_v3 }
0x1391   :  { %16352 = vmatprep.subr.mxu1 %v17444_v47 }
0x1393   :  { %16350 = vmatmul.mubr.msk.f32.vlgmr.msra.gmra.mrb[44].mxu1 %vm68_vm1, %v18065_v15 }
0x1394   :  { %16354 = vmatprep.mubr.msk.f32.mxu1 %vm17445_vm3, %v17444_v47 }
0x145e   :  { %v16321_v48 = vpop.f32.mrb[42].mxu1 }
0x145f   :  { %v5167_v45 = vadd.f32 %v16321_v48, %v15459_v19  ;;  %v5161_v20 = vpop.f32.mrb[43].mxu1 }
0x1460   :  { %v5162_v11 = vadd.f32 %v15459_v19, %v5161_v20 }
0x1461   :  { %v5171_v14 = vmax.f32 %v5167_v45, 0.0  ;;  %v18162_v45 = vld [vmem:[%s19162_s1 + $0x18] sm:$0xff] }
0x1462   :  { %v5170_v13 = vmax.f32 %v5162_v11, 0.0 }
0x1464   :  { %16338 = vmatprep.mubr.msk.f32.mxu0 %vm2558_vm5, %v5170_v13  ;;  %v18168_v13 = vld [vmem:[%s19162_s1 + $0x20] sm:$0xff] }
0x1465   :  { %16339 = vmatmul.mubr.msk.f32.vlgmr.msra.gmra.mrb[38].mxu0 %vm2558_vm5, %v5171_v14 }
0x1466   :  { %v18087_v21 = vpop.f32.mrb[44].mxu1  ;;  %16364 = vmatprep.mubr.msk.f32.mxu0 %vm17445_vm3, %v17444_v47 }
0x1467   :  { %v5419_v29 = vadd.f32 %v18087_v21, %v5416_v17  ;;  %v18092_v22 = vpop.f32.mrb[45].mxu1  ;;  %v5409_v25 = vadd.f32 %v18087_v21, %v15485_v18 }
0x1468   :  { %v5408_v28 = vadd.f32 %v15485_v18, %v18092_v22  ;;  %v5418_v24 = vadd.f32 %v5416_v17, %v18092_v22 }
0x1469   :  { %5754 = vrot.lane.b32.xlu1 %v5419_v29, %s17443_s21 }
0x146a   :  { %5430 = vxpose.xlu0.b32.start.end [1/1] (short) (narrow) %v5408_v28, 32  ;;  %v18175_v28 = vld [vmem:[%s19162_s1 + $0x28] sm:$0xff] }
0x146d   :  { %5752 = vrot.lane.b32.xlu1 %v5418_v24, %s17443_s21 }
0x1496   :  { %5462 = vxpose.xlu1.b32.start.end [1/1] (short) (narrow) %v5409_v25, 32 }
0x14db   :  { %v5755_v27 = vpop.permute.xlu1 %5754 }
0x14df   :  { %v5753_v30 = vpop.permute.xlu1 %5752 }
0x14ea   :  { %v5446_v1 = vpop.trf.xlu0 }
0x14eb   :  { %5494 = vxpose.xlu0.b32.start.end [1/1] (short) (narrow) %v5446_v1, 8  ;;  %v18181_v1 = vld [vmem:[%s19162_s1 + $0x30] sm:$0xff] }
0x14ee   :  { %v5447_v52 = vpop.trf.xlu0 }
0x14f2   :  { %v5448_v26 = vpop.trf.xlu0 }
0x14f3   :  { %5558 = vxpose.xlu0.b32.start.end [1/1] (short) (narrow) %v5448_v26, 8 }
0x14f6   :  { %v5449_v38 = vpop.trf.xlu0 }
0x14f7   :  { %5790 = vxpose.xlu0.b32.start.end [1/1] (short) (narrow) %v5755_v27, 32 }
0x1504   :  { %5758 = vxpose.xlu0.b32.start.end [1/1] (short) (narrow) %v5753_v30, 32 }
0x1516   :  { %v5478_v31 = vpop.trf.xlu1 }
0x1517   :  { %5622 = vxpose.xlu1.b32.start.end [1/1] (short) (narrow) %v5478_v31, 8 }
0x151a   :  { %v5479_v32 = vpop.trf.xlu1 }
0x151b   :  { %5526 = vxpose.xlu1.b32.start.end [1/1] (short) (narrow) %v5447_v52, 8  ;;  %5654 = vxpose.xlu0.b32.start.end [1/1] (short) (narrow) %v5479_v32, 8  ;;  %v18189_v32 = vld [vmem:[%s19162_s1 + $0x38] sm:$0xff] }
0x151e   :  { %v5480_v33 = vpop.trf.xlu1 }
0x151f   :  { %5590 = vxpose.xlu1.b32.start.end [1/1] (short) (narrow) %v5449_v38, 8 }
0x1522   :  { %v5481_v34 = vpop.trf.xlu1 }
0x1523   :  { %5686 = vxpose.xlu1.b32.start.end [1/1] (short) (narrow) %v5480_v33, 8 }
0x1527   :  { %5718 = vxpose.xlu1.b32.start.end [1/1] (short) (narrow) %v5481_v34, 8 }
0x1538   :  { %v18099_v35 = vpop.f32.mrb[38].mxu0 }
0x1539   :  { %v18101_v36 = vpop.f32.mrb[39].mxu0 }
0x156b   :  { %v5510_v37 = vpop.trf.xlu0 }
0x1573   :  { %v5574_v39 = vpop.trf.xlu0 }
0x1577   :  { %v5806_v40 = vpop.trf.xlu0 }
0x157b   :  { %v5807_v41 = vpop.trf.xlu0 }
0x157f   :  { %v5808_v42 = vpop.trf.xlu0 }
0x1583   :  { %v5809_v43 = vpop.trf.xlu0 }
0x1587   :  { %v5774_v44 = vpop.trf.xlu0 }
0x1588   :  { %16353 = vmatpush3.msra.mxu1 %v5774_v44 }
0x1589   :  { %16355 = vmatmul.mubr.msk.f32.vlgmr.msra.gmra.mrb[46].mxu1 %vm723_vm4, %v5510_v37  ;;  %16357 = vmatprep.subr.mxu1 %v17444_v47 }
0x158a   :  { %16359 = vmatprep.mubr.msk.f32.mxu1 %vm17445_vm3, %v17444_v47 }
0x158b   :  { %v5775_v46 = vpop.trf.xlu0 }
0x158c   :  { %16358 = vmatpush3.msra.mxu1 %v5775_v46 }
0x158d   :  { %16367 = vmatprep.subr.mxu1 %v17444_v47 }
0x158f   :  { %v5776_v49 = vpop.trf.xlu0 }
0x1590   :  { %16363 = vmatpush3.msra.mxu0 %v5776_v49 }
0x1591   :  { %16365 = vmatmul.mubr.msk.f32.vlgmr.msra.gmra.mrb[40].mxu0 %vm723_vm4, %v5574_v39  ;;  %16372 = vmatprep.subr.mxu0 %v17444_v47  ;;  %v15487_v39 = vld [vmem:[%s19165_s4 + $0x16] ss:$0 sm:$0xff] }
0x1592   :  { %16373 = vmatpush3.msra.mxu0 %v5806_v40  ;;  %16374 = vmatprep.mubr.msk.f32.mxu0 %vm17445_vm3, %v17444_v47 }
0x1593   :  { %16382 = vmatprep.subr.mxu0 %v17444_v47  ;;  %v5777_v51 = vpop.trf.xlu0 }
0x1597   :  { %v5638_v50 = vpop.trf.xlu1 }
0x1598   :  { %16375 = vmatmul.mubr.msk.f32.vlgmr.msra.gmra.mrb[42].mxu0 %vm723_vm4, %v5638_v50 }
0x1599   :  { %16383 = vmatpush3.msra.mxu0 %v5808_v42  ;;  %16384 = vmatprep.mubr.msk.f32.mxu0 %vm17445_vm3, %v17444_v47 }
0x159a   :  { %16392 = vmatprep.subr.mxu0 %v17444_v47 }
0x159b   :  { %v5542_v0 = vpop.trf.xlu1  ;;  %v5670_v54 = vpop.trf.xlu0 }
0x159c   :  { %16360 = vmatmul.mubr.msk.f32.vlgmr.msra.gmra.mrb[48].mxu1 %vm723_vm4, %v5542_v0 }
0x159d   :  { %16368 = vmatpush3.msra.mxu1 %v5777_v51  ;;  %16369 = vmatprep.mubr.msk.f32.mxu1 %vm17445_vm3, %v17444_v47 }
0x159e   :  { %16377 = vmatprep.subr.mxu1 %v17444_v47 }
0x159f   :  { %v5606_v53 = vpop.trf.xlu1 }
0x15a0   :  { %16370 = vmatmul.mubr.msk.f32.vlgmr.msra.gmra.mrb[50].mxu1 %vm723_vm4, %v5606_v53 }
0x15a1   :  { %16378 = vmatpush3.msra.mxu1 %v5807_v41  ;;  %16379 = vmatprep.mubr.msk.f32.mxu1 %vm17445_vm3, %v17444_v47 }
0x15a2   :  { %16387 = vmatprep.subr.mxu1 %v17444_v47 }
0x15a3   :  { %v5702_v55 = vpop.trf.xlu1 }
0x15a4   :  { %16380 = vmatmul.mubr.msk.f32.vlgmr.msra.gmra.mrb[52].mxu1 %vm723_vm4, %v5670_v54  ;;  %16385 = vmatmul.mubr.msk.f32.vlgmr.msra.gmra.mrb[44].mxu0 %vm723_vm4, %v5702_v55 }
0x15a5   :  { %16388 = vmatpush3.msra.mxu1 %v5809_v43  ;;  %16389 = vmatprep.mubr.msk.f32.mxu1 %vm17445_vm3, %v17444_v47 }
0x15a6   :  { %16394 = vmatprep.mubr.msk.f32.mxu0 %vm17445_vm3, %v17444_v47  ;;  %16397 = vmatprep.subr.mxu1 %v17444_v47 }
0x15a7   :  { %v5734_v56 = vpop.trf.xlu1 }
0x15a8   :  { %16390 = vmatmul.mubr.msk.f32.vlgmr.msra.gmra.mrb[54].mxu1 %vm723_vm4, %v5734_v56 }
0x15a9   :  { %16399 = vmatprep.mubr.msk.f32.mxu1 %vm17445_vm3, %v17444_v47 }
0x165c   :  { %v5963_v57 = vpop.f32.mrb[46].mxu1 }
0x165d   :  { %v18141_v59 = vadd.f32 %v18138_v58, %v5963_v57  ;;  %v16356_v60 = vpop.f32.mrb[47].mxu1 }
0x165f   :  { %v6478_v61 = vsel %vm723_vm4, %v18141_v59, -inf }
0x1660   :  { %6479 = vmax.xlane.f32.xlu1 %v6478_v61 }
0x1664   :  { %v6109_v2 = vpop.f32.mrb[40].mxu0 }
0x1665   :  { %v6110_v16 = vadd.f32 %v18148_v62, %v6109_v2  ;;  %v16366_v63 = vpop.f32.mrb[41].mxu0 }
0x1667   :  { %v6484_v3 = vsel %vm723_vm4, %v6110_v16, -inf }
0x1668   :  { %6485 = vmax.xlane.f32.xlu1 %v6484_v3 }
0x166b   :  { %v6255_v4 = vpop.f32.mrb[42].mxu0 }
0x166c   :  { %v16376_v5 = vpop.f32.mrb[43].mxu0  ;;  %v6256_v14 = vadd.f32 %v18168_v13, %v6255_v4 }
0x166e   :  { %v6490_v27 = vsel %vm723_vm4, %v6256_v14, -inf }
0x166f   :  { %v6036_v7 = vpop.f32.mrb[48].mxu1 }
0x1670   :  { %v6037_v10 = vadd.f32 %v18155_v8, %v6036_v7  ;;  %v16361_v23 = vpop.f32.mrb[49].mxu1 }
0x1672   :  { %v6481_v19 = vsel %vm723_vm4, %v6037_v10, -inf }
0x1673   :  { %6482 = vmax.xlane.f32.xlu0 %v6481_v19  ;;  %v6182_v48 = vpop.f32.mrb[50].mxu1 }
0x1674   :  { %v6183_v20 = vadd.f32 %v18162_v45, %v6182_v48  ;;  %v16371_v11 = vpop.f32.mrb[51].mxu1 }
0x1676   :  { %v6487_v17 = vsel %vm723_vm4, %v6183_v20, -inf }
0x1677   :  { %6488 = vmax.xlane.f32.xlu1 %v6487_v17  ;;  %v6328_v18 = vpop.f32.mrb[52].mxu1  ;;  %v6401_v29 = vpop.f32.mrb[44].mxu0 }
0x1678   :  { %v6329_v24 = vadd.f32 %v18175_v28, %v6328_v18  ;;  %v16381_v25 = vpop.f32.mrb[53].mxu1  ;;  %v6402_v52 = vadd.f32 %v18181_v1, %v6401_v29  ;;  %v16386_v26 = vpop.f32.mrb[45].mxu0 }
0x167a   :  { %v6493_v30 = vsel %vm723_vm4, %v6329_v24, -inf  ;;  %v6496_v33 = vsel %vm723_vm4, %v6402_v52, -inf }
0x167b   :  { %6491 = vmax.xlane.f32.xlu1 %v6490_v27  ;;  %6494 = vmax.xlane.f32.xlu0 %v6493_v30  ;;  %v6474_v31 = vpop.f32.mrb[54].mxu1 }
0x167c   :  { %v6475_v38 = vadd.f32 %v18189_v32, %v6474_v31  ;;  %v16391_v34 = vpop.f32.mrb[55].mxu1 }
0x167e   :  { %v6499_v37 = vsel %vm723_vm4, %v6475_v38, -inf }
0x167f   :  { %6497 = vmax.xlane.f32.xlu1 %v6496_v33  ;;  %6500 = vmax.xlane.f32.xlu0 %v6499_v37 }
0x1690   :  { %5425 = vrot.lane.b32.xlu1 %v15487_v39, %s17441_s15 }
0x16ed   :  { %v6480_v40 = vpop.xlane.xlu1 %6479 }
0x16ee   :  { %v6502_v55 = vsub.f32 %v18141_v59, %v6480_v40 }
0x16f0   :  { %v6510_v61 = vmul.f32 1.442695, %v6502_v55 }
0x16f5   :  { %v6486_v41 = vpop.xlane.xlu1 %6485 }
0x16f6   :  { %v6504_v53 = vsub.f32 %v6110_v16, %v6486_v41 }
0x16f8   :  { %v6514_v56 = vmul.f32 1.442695, %v6504_v53 }
0x1700   :  { %v6483_v51 = vpop.xlane.xlu0 %6482 }
0x1701   :  { %v6503_v0 = vsub.f32 %v6037_v10, %v6483_v51 }
0x1703   :  { %v6512_v54 = vmul.f32 1.442695, %v6503_v0 }
0x1704   :  { %v6489_v42 = vpop.xlane.xlu1 %6488 }
0x1705   :  { %17237 = vpow2.f32 %v6512_v54  ;;  %v6505_v2 = vsub.f32 %v6183_v20, %v6489_v42 }
0x1706   :  { %17239 = vpow2.f32 %v6514_v56 }
0x1707   :  { %17241 = vpow2.f32 %v6510_v61 }
0x1708   :  { %v6492_v43 = vpop.xlane.xlu1 %6491  ;;  %v6495_v60 = vpop.xlane.xlu0 %6494 }
0x1709   :  { %v6506_v57 = vsub.f32 %v6256_v14, %v6492_v43  ;;  %v6507_v3 = vsub.f32 %v6329_v24, %v6495_v60 }
0x170b   :  { %v6520_v16 = vmul.f32 1.442695, %v6507_v3 }
0x170c   :  { %v6498_v44 = vpop.xlane.xlu1 %6497  ;;  %v6501_v4 = vpop.xlane.xlu0 %6500 }
0x170d   :  { %v6508_v63 = vsub.f32 %v6402_v52, %v6498_v44  ;;  %v6509_v7 = vsub.f32 %v6475_v38, %v6501_v4 }
0x170f   :  { %v6522_v5 = vmul.f32 1.442695, %v6508_v63  ;;  %v17238_v10 = vpop.eup %17237  ;;  %v6524_v59 = vmul.f32 1.442695, %v6509_v7 }
0x1710   :  { %v5426_v46 = vpop.permute.xlu1 %5425  ;;  %v6529_v23 = vsel %vm723_vm4, %v17238_v10, 0.0  ;;  %v18204_v19 = vpop.eup %17239 }
0x1711   :  { %v5428_v49 = vadd.f32 %v5426_v46, %v18092_v22  ;;  %v5429_v50 = vadd.f32 %v18087_v21, %v5426_v46  ;;  %v6518_v22 = vmul.f32 1.442695, %v6506_v57  ;;  %v6516_v21 = vmul.f32 1.442695, %v6505_v2  ;;  %v17242_v48 = vpop.eup %17241 }
0x1712   :  { %v6532_v20 = vsel %vm723_vm4, %v18204_v19, 0.0  ;;  %v6526_v14 = vsel %vm723_vm4, %v17242_v48, 0.0 }
0x1713   :  { %5826 = vrot.lane.b32.xlu1 %v5429_v50, %s17441_s15  ;;  %5824 = vrot.lane.b32.xlu0 %v5428_v49, %s17441_s15  ;;  %17243 = vpow2.f32 %v6518_v22 }
0x1714   :  { %17245 = vpow2.f32 %v6516_v21 }
0x1715   :  { %17247 = vpow2.f32 %v6522_v5 }
0x1716   :  { %17249 = vpow2.f32 %v6520_v16 }
0x1717   :  { %17251 = vpow2.f32 %v6524_v59 }
0x171d   :  { %v18208_v11 = vpop.eup %17243 }
0x171e   :  { %v18211_v17 = vpop.eup %17245  ;;  %v6538_v18 = vsel %vm723_vm4, %v18208_v11, 0.0 }
0x171f   :  { %v18215_v29 = vpop.eup %17247  ;;  %v6535_v24 = vsel %vm723_vm4, %v18211_v17, 0.0 }
0x1720   :  { %v18219_v25 = vpop.eup %17249  ;;  %v6544_v52 = vsel %vm723_vm4, %v18215_v29, 0.0 }
0x1721   :  { %v6541_v26 = vsel %vm723_vm4, %v18219_v25, 0.0  ;;  %v18225_v27 = vpop.eup %17251 }
0x1722   :  { %v6547_v30 = vsel %vm723_vm4, %v18225_v27, 0.0 }
0x1732   :  { %6530 = vadd.xlane.f32.xlu0 %v6529_v23 }
0x1736   :  { %6533 = vadd.xlane.f32.xlu0 %v6532_v20 }
0x1737   :  { %6527 = vadd.xlane.f32.xlu1 %v6526_v14 }
0x173a   :  { %6539 = vadd.xlane.f32.xlu0 %v6538_v18 }
0x173b   :  { %6536 = vadd.xlane.f32.xlu1 %v6535_v24 }
0x173e   :  { %6545 = vadd.xlane.f32.xlu0 %v6544_v52 }
0x173f   :  { %6542 = vadd.xlane.f32.xlu1 %v6541_v26 }
0x1743   :  { %6548 = vadd.xlane.f32.xlu1 %v6547_v30 }
0x1785   :  { %v5827_v31 = vpop.permute.xlu1 %5826  ;;  %v5825_v38 = vpop.permute.xlu0 %5824 }
0x1786   :  { %5862 = vxpose.xlu1.b32.start.end [1/1] (short) (narrow) %v5827_v31, 32  ;;  %5830 = vxpose.xlu0.b32.start.end [1/1] (short) (narrow) %v5825_v38, 32  ;;  %v15479_v38 = vld [vmem:[%s19163_s2 + $0xe0] sm:$0xff] }
0x17bf   :  { %v6531_v33 = vpop.xlane.xlu0 %6530 }
0x17c3   :  { %v6534_v37 = vpop.xlane.xlu0 %6533 }
0x17c4   :  { %v6528_v34 = vpop.xlane.xlu1 %6527 }
0x17c5   :  { %17253 = vrcp.f32 %v6528_v34  ;;  %v15481_v34 = vld [vmem:[%s19163_s2 + $0xf0] sm:$0xff] }
0x17c6   :  { %17255 = vrcp.f32 %v6531_v33  ;;  %v15480_v33 = vld [vmem:[%s19163_s2 + $0xe8] sm:$0xff] }
0x17c7   :  { %v6540_v40 = vpop.xlane.xlu0 %6539  ;;  %17257 = vrcp.f32 %v6534_v37  ;;  %v16957_v37 = vpack.c.bf16 %v15480_v33, %v15479_v38  ;;  %v15517_v38 = vld [vmem:[%s19163_s2 + $0x100] sm:$0xff]  ;;  %v15518_v33 = vld [vmem:[%s19163_s2 + $0x108] sm:$0xff] }
0x17c8   :  { %v6537_v39 = vpop.xlane.xlu1 %6536  ;;  %17259 = vrcp.f32 %v6540_v40 }
0x17c9   :  { %17261 = vrcp.f32 %v6537_v39  ;;  %v15482_v39 = vld [vmem:[%s19163_s2 + $0xf8] sm:$0xff] }
0x17ca   :  { %v16961_v40 = vpack.c.bf16 %v15482_v39, %v15481_v34  ;;  %v17121_v34 = vpack.i.bf16 %v15518_v33, %v15517_v38 }
0x17cb   :  { %v6546_v42 = vpop.xlane.xlu0 %6545 }
0x17cc   :  { %v6543_v41 = vpop.xlane.xlu1 %6542  ;;  %17263 = vrcp.f32 %v6546_v42 }
0x17cd   :  { %17265 = vrcp.f32 %v6543_v41 }
0x17cf   :  { %v17254_v44 = vpop.eup %17253 }
0x17d0   :  { %v6549_v43 = vpop.xlane.xlu1 %6548  ;;  %v6558_v50 = vmul.f32 %v17254_v44, %v17242_v48  ;;  %v17256_v51 = vpop.eup %17255 }
0x17d1   :  { %v6559_v53 = vmul.f32 %v17256_v51, %v17238_v10  ;;  %v17258_v55 = vpop.eup %17257  ;;  %17267 = vrcp.f32 %v6549_v43 }
0x17d2   :  { %v17260_v57 = vpop.eup %17259  ;;  %v6560_v60 = vmul.f32 %v17258_v55, %v18204_v19  ;;  %v15470_v55 = vld [vmem:[%s19165_s4 + $0xf] ss:$0 sm:$0xff] }
0x17d3   :  { %v17262_v61 = vpop.eup %17261  ;;  %v6562_v3 = vmul.f32 %v17260_v57, %v18208_v11 }
0x17d4   :  { %v6561_v21 = vmul.f32 %v17262_v61, %v18211_v17  ;;  %v5259_v61 = vadd.f32 %v15470_v55, %v18101_v36 }
0x17d6   :  { %v17264_v63 = vpop.eup %17263 }
0x17d7   :  { %v17266_v4 = vpop.eup %17265  ;;  %v6564_v7 = vmul.f32 %v17264_v63, %v18215_v29 }
0x17d8   :  { %v6563_v16 = vmul.f32 %v17266_v4, %v18219_v25  ;;  %v5267_v4 = vadd.f32 %v5259_v61, %v18036_v9 }
0x17db   :  { %v17268_v10 = vpop.eup %17267 }
0x17dc   :  { %v6565_v59 = vmul.f32 %v17268_v10, %v18225_v27 }
0x1806   :  { %v5846_v46 = vpop.trf.xlu0  ;;  %v5878_v49 = vpop.trf.xlu1 }
0x1807   :  { %16393 = vmatpush3.xpose.msk.msra.mxu0 %vm723_vm4, %v5846_v46 }
0x1808   :  { %16402 = vmatprep.subr.mxu0 %v17444_v47 }
0x180a   :  { %16395 = vmatmul.mubr.msk.f32.vlgmr.msra.gmra.mrb[46].mxu0 %vm723_vm4, %v6558_v50  ;;  %v5847_v0 = vpop.trf.xlu0  ;;  %v5879_v54 = vpop.trf.xlu1 }
0x180b   :  { %16398 = vmatpush3.xpose.msk.msra.mxu1 %vm723_vm4, %v5847_v0  ;;  %16404 = vmatprep.mubr.msk.f32.mxu0 %vm17445_vm3, %v17444_v47 }
0x180c   :  { %16407 = vmatprep.subr.mxu1 %v17444_v47 }
0x180e   :  { %16400 = vmatmul.mubr.msk.f32.vlgmr.msra.gmra.mrb[56].mxu1 %vm723_vm4, %v6559_v53  ;;  %v5848_v56 = vpop.trf.xlu0  ;;  %v5880_v22 = vpop.trf.xlu1 }
0x180f   :  { %16403 = vmatpush3.xpose.msk.msra.mxu0 %vm723_vm4, %v5848_v56  ;;  %16409 = vmatprep.mubr.msk.f32.mxu1 %vm17445_vm3, %v17444_v47 }
0x1810   :  { %16412 = vmatprep.subr.mxu0 %v17444_v47 }
0x1812   :  { %16405 = vmatmul.mubr.msk.f32.vlgmr.msra.gmra.mrb[48].mxu0 %vm723_vm4, %v6560_v60  ;;  %v5849_v2 = vpop.trf.xlu0  ;;  %v5881_v5 = vpop.trf.xlu1 }
0x1813   :  { %16408 = vmatpush3.xpose.msk.msra.mxu1 %vm723_vm4, %v5849_v2  ;;  %16413 = vmatpush3.xpose.msk.msra.mxu0 %vm723_vm4, %v5878_v49 }
0x1814   :  { %16414 = vmatprep.mubr.msk.f32.mxu0 %vm17445_vm3, %v17444_v47  ;;  %16417 = vmatprep.subr.mxu1 %v17444_v47 }
0x1815   :  { %16422 = vmatprep.subr.mxu0 %v17444_v47 }
0x1816   :  { %16410 = vmatmul.mubr.msk.f32.vlgmr.msra.gmra.mrb[58].mxu1 %vm723_vm4, %v6561_v21  ;;  %16415 = vmatmul.mubr.msk.f32.vlgmr.msra.gmra.mrb[50].mxu0 %vm723_vm4, %v6562_v3  ;;  %v5264_v3 = vadd.f32 %v18099_v35, %v15470_v55 }
0x1817   :  { %16418 = vmatpush3.xpose.msk.msra.mxu1 %vm723_vm4, %v5879_v54  ;;  %16423 = vmatpush3.xpose.msk.msra.mxu0 %vm723_vm4, %v5880_v22  ;;  %v15512_v54 = vld [vmem:[%s19165_s4 + $0x17] ss:$0 sm:$0xff] }
0x1818   :  { %16419 = vmatprep.mubr.msk.f32.mxu1 %vm17445_vm3, %v17444_v47  ;;  %16424 = vmatprep.mubr.msk.f32.mxu0 %vm17445_vm3, %v17444_v47 }
0x1819   :  { %16427 = vmatprep.subr.mxu1 %v17444_v47  ;;  %16958 = vmatprep.subr.bf16.mxu0 %v16957_v37 }
0x181a   :  { %16420 = vmatmul.mubr.msk.f32.vlgmr.msra.gmra.mrb[60].mxu1 %vm723_vm4, %v6563_v16  ;;  %16425 = vmatmul.mubr.msk.f32.vlgmr.msra.gmra.mrb[52].mxu0 %vm723_vm4, %v6564_v7  ;;  %v5268_v16 = vadd.f32 %v5264_v3, %v18046_v6  ;;  %v5271_v7 = vsel %vm68_vm1, %v5267_v4, 0.0 }
0x181b   :  { %16428 = vmatpush3.xpose.msk.msra.mxu1 %vm723_vm4, %v5881_v5  ;;  %16429 = vmatprep.mubr.msk.f32.mxu1 %vm17445_vm3, %v17444_v47 }
0x181c   :  { %16960 = vmatpush3.bf16.msra.mxu0 %v16957_v37  ;;  %v5274_v36 = vsel %vm68_vm1, %v5268_v16, 0.0  ;;  %v16965_v37 = vpack.c.bf16 %v15518_v33, %v15517_v38  ;;  %v17404_v38 = vld [vmem:[%s19161_s0 + $0x28] sm:$0xff] }
0x181d   :  { %16962 = vmatprep.subr.bf16.mxu0 %v16961_v40 }
0x181e   :  { %16430 = vmatmul.mubr.msk.f32.vlgmr.msra.gmra.mrb[62].mxu1 %vm723_vm4, %v6565_v59  ;;  %16966 = vmatprep.subr.bf16.mxu1 %v16965_v37 }
0x181f   :  { %16968 = vmatpush3.bf16.msra.mxu1 %v16965_v37 }
0x1820   :  { %16964 = vmatpush3.bf16.msra.mxu0 %v16961_v40 }
0x18dd   :  { %v6638_v23 = vpop.f32.mrb[46].mxu0 }
0x18de   :  { %7174 = vxpose.xlu0.b32.start.end [1/1] (short) (narrow) %v6638_v23, 8  ;;  %v16396_v19 = vpop.f32.mrb[47].mxu0 }
0x18e1   :  { %v6714_v48 = vpop.f32.mrb[56].mxu1 }
0x18e2   :  { %7206 = vxpose.xlu0.b32.start.end [1/1] (short) (narrow) %v6714_v48, 8  ;;  %v16401_v20 = vpop.f32.mrb[57].mxu1 }
0x18e5   :  { %v6790_v11 = vpop.f32.mrb[48].mxu0 }
0x18e6   :  { %v16406_v14 = vpop.f32.mrb[49].mxu0 }
0x18e9   :  { %v6866_v17 = vpop.f32.mrb[58].mxu1  ;;  %v6942_v18 = vpop.f32.mrb[50].mxu0 }
0x18ea   :  { %7302 = vxpose.xlu1.b32.start.end [1/1] (short) (narrow) %v6942_v18, 8  ;;  %v16411_v29 = vpop.f32.mrb[59].mxu1  ;;  %v16416_v24 = vpop.f32.mrb[51].mxu0 }
0x18ed   :  { %v7018_v25 = vpop.f32.mrb[60].mxu1  ;;  %v7094_v52 = vpop.f32.mrb[52].mxu0 }
0x18ee   :  { %7238 = vxpose.xlu1.b32.start.end [1/1] (short) (narrow) %v6790_v11, 8  ;;  %v16426_v26 = vpop.f32.mrb[53].mxu0  ;;  %7334 = vxpose.xlu0.b32.start.end [1/1] (short) (narrow) %v7018_v25, 8  ;;  %v16421_v27 = vpop.f32.mrb[61].mxu1 }
0x18ef   :  { %v15519_v27 = vld [vmem:[%s19163_s2 + $0x110] sm:$0xff] }
0x18f1   :  { %v7170_v30 = vpop.f32.mrb[62].mxu1 }
0x18f2   :  { %7270 = vxpose.xlu1.b32.start.end [1/1] (short) (narrow) %v6866_v17, 8  ;;  %7366 = vxpose.xlu0.b32.start.end [1/1] (short) (narrow) %v7094_v52, 8  ;;  %v16431_v31 = vpop.f32.mrb[63].mxu1 }
0x18f6   :  { %7398 = vxpose.xlu0.b32.start.end [1/1] (short) (narrow) %v7170_v30, 8  ;;  %v15520_v30 = vld [vmem:[%s19163_s2 + $0x118] sm:$0xff] }
0x18f7   :  { %v17126_v31 = vpack.i.bf16 %v15520_v30, %v15519_v27  ;;  %v16969_v39 = vpack.c.bf16 %v15520_v30, %v15519_v27  ;;  %v17403_v27 = vld [vmem:[%s19161_s0 + $0x20] sm:$0xff] }
0x18f9   :  { %16970 = vmatprep.subr.bf16.mxu1 %v16969_v39 }
0x18fa   :  { %16972 = vmatpush3.bf16.msra.mxu1 %v16969_v39 }
0x195e   :  { %v7190_v41 = vpop.trf.xlu0 }
0x195f   :  { %7430 = vxpose.xlu1.b32.start [1/4] (short) (narrow) %v7190_v41, 8 }
0x1962   :  { %v7222_v42 = vpop.trf.xlu0 }
0x1963   :  { %7431 = vxpose.xlu1.b32.cont [2/4] (short) (narrow) %v7222_v42, 8 }
0x196a   :  { %v7318_v43 = vpop.trf.xlu1 }
0x196b   :  { %7462 = vxpose.xlu0.b32.start [1/4] (short) (narrow) %v7318_v43, 8 }
0x196e   :  { %v7350_v44 = vpop.trf.xlu0  ;;  %v7254_v46 = vpop.trf.xlu1 }
0x196f   :  { %7463 = vxpose.xlu0.b32.cont [2/4] (short) (narrow) %v7350_v44, 8  ;;  %7432 = vxpose.xlu1.b32.cont [3/4] (short) (narrow) %v7254_v46, 8 }
0x1972   :  { %v7382_v49 = vpop.trf.xlu0  ;;  %v7286_v50 = vpop.trf.xlu1 }
0x1973   :  { %7464 = vxpose.xlu0.b32.cont [3/4] (short) (narrow) %v7382_v49, 8  ;;  %7433 = vxpose.xlu1.b32.end [4/4] (short) (narrow) %v7286_v50, 8 }
0x1976   :  { %v7414_v51 = vpop.trf.xlu0 }
0x1977   :  { %7465 = vxpose.xlu0.b32.end [4/4] (short) (narrow) %v7414_v51, 8 }
0x19e7   :  { %v7446_v0 = vpop.trf.xlu1 }
0x19e8   :  { %16440 = vmatprep.mubr.msk.f32.mxu0 %vm68_vm1, %v7446_v0 }
0x19eb   :  { %v7478_v53 = vpop.trf.xlu0 }
0x19ec   :  { %16441 = vmatmul.mubr.msk.f32.vlgmr.msra.gmra.mrb[54].mxu0 %vm68_vm1, %v7478_v53 }
0x1abf   :  { %v16442_v56 = vpop.f32.mrb[54].mxu0 }
0x1ac0   :  { %v7576_v57 = vadd.f32 %v16442_v56, %v15512_v54  ;;  %v7570_v60 = vpop.f32.mrb[55].mxu0 }
0x1ac1   :  { %v7571_v2 = vadd.f32 %v15512_v54, %v7570_v60 }
0x1ac2   :  { %v7580_v22 = vadd.f32 %v7576_v57, %v18065_v15 }
0x1ac3   :  { %v7579_v63 = vadd.f32 %v7571_v2, %v18052_v12 }
0x1ac4   :  { %v7586_v21 = vsel %vm68_vm1, %v7580_v22, 0.0 }
0x1ac5   :  { %7587 = vadd.xlane.f32.xlu0 %v7586_v21  ;;  %v7583_v5 = vsel %vm68_vm1, %v7579_v63, 0.0  ;;  %v15515_v21 = vld [vmem:[%s19165_s4 + $0x1e] ss:$0 sm:$0xff] }
0x1ac6   :  { %7584 = vadd.xlane.f32.xlu1 %v7583_v5 }
0x1aca   :  { %5272 = vadd.xlane.f32.xlu1 %v5271_v7 }
0x1ace   :  { %5275 = vadd.xlane.f32.xlu1 %v5274_v36 }
0x1b52   :  { %v7588_v15 = vpop.xlane.xlu0 %7587 }
0x1b53   :  { %v7590_v12 = vmul.f32 0.03125, %v7588_v15  ;;  %v7585_v10 = vpop.xlane.xlu1 %7584 }
0x1b54   :  { %v7589_v59 = vmul.f32 0.03125, %v7585_v10 }
0x1b55   :  { %v18299_v23 = vsub.f32 %v7580_v22, %v7590_v12  ;;  %v15516_v12 = vld [vmem:[%s19165_s4 + $0x1f] ss:$0 sm:$0xff] }
0x1b56   :  { %v18301_v35 = vsub.f32 %v7579_v63, %v7589_v59 }
0x1b57   :  { %v5273_v9 = vpop.xlane.xlu1 %5272  ;;  %v7594_v19 = vmul.f32 %v18299_v23, %v18299_v23 }
0x1b58   :  { %v5277_v48 = vmul.f32 0.03125, %v5273_v9  ;;  %v7593_v6 = vmul.f32 %v18301_v35, %v18301_v35 }
0x1b59   :  { %v7598_v20 = vsel %vm68_vm1, %v7594_v19, 0.0 }
0x1b5a   :  { %v18308_v11 = vsub.f32 %v5267_v4, %v5277_v48  ;;  %7599 = vadd.xlane.f32.xlu1 %v7598_v20  ;;  %v7595_v14 = vsel %vm68_vm1, %v7593_v6, 0.0 }
0x1b5b   :  { %7596 = vadd.xlane.f32.xlu0 %v7595_v14  ;;  %v5276_v17 = vpop.xlane.xlu1 %5275 }
0x1b5c   :  { %v5278_v18 = vmul.f32 0.03125, %v5276_v17  ;;  %v5281_v29 = vmul.f32 %v18308_v11, %v18308_v11 }
0x1b5e   :  { %v18313_v24 = vsub.f32 %v5268_v16, %v5278_v18  ;;  %v5283_v25 = vsel %vm68_vm1, %v5281_v29, 0.0  ;;  %v15474_v18 = vld [vmem:[%s19165_s4 + $0x13] ss:$0 sm:$0xff] }
0x1b5f   :  { %5284 = vadd.xlane.f32.xlu0 %v5283_v25 }
0x1b60   :  { %v5282_v52 = vmul.f32 %v18313_v24, %v18313_v24 }
0x1b62   :  { %v5286_v26 = vsel %vm68_vm1, %v5282_v52, 0.0 }
0x1b63   :  { %5287 = vadd.xlane.f32.xlu1 %v5286_v26 }
0x1b74   :  { %17127 = vrot.lane.b32.xlu1 %v17126_v31, %s17443_s21 }
0x1b75   :  { %17122 = vrot.lane.b32.xlu0 %v17121_v34, %s17443_s21 }
0x1b78   :  { %17132 = vrot.lane.b32.xlu1 %v17121_v34, %s17441_s15  ;;  %v15525_v34 = vld [vmem:[%s19165_s4 + $0x18] ss:$0 sm:$0xff] }
0x1b7c   :  { %17137 = vrot.lane.b32.xlu1 %v17126_v31, %s17441_s15 }
0x1be7   :  { %v7600_v40 = vpop.xlane.xlu1 %7599 }
0x1be8   :  { %v7602_v41 = vmul.f32 0.03125, %v7600_v40  ;;  %v7597_v42 = vpop.xlane.xlu0 %7596 }
0x1be9   :  { %v7601_v43 = vmul.f32 0.03125, %v7597_v42  ;;  %v15528_v42 = vld [vmem:[%s19165_s4 + $0x19] ss:$0 sm:$0xff] }
0x1bea   :  { %v7604_v44 = vadd.f32 1e-05, %v7602_v41 }
0x1beb   :  { %v7603_v46 = vadd.f32 1e-05, %v7601_v43 }
0x1bec   :  { %17269 = vrsqrt.f32 %v7604_v44  ;;  %v5285_v49 = vpop.xlane.xlu0 %5284 }
0x1bed   :  { %17271 = vrsqrt.f32 %v7603_v46  ;;  %v5289_v50 = vmul.f32 0.03125, %v5285_v49 }
0x1bef   :  { %v5291_v51 = vadd.f32 1e-05, %v5289_v50 }
0x1bf0   :  { %v5288_v0 = vpop.xlane.xlu1 %5287  ;;  %v17123_v53 = vpop.permute.xlu0 %17122 }
0x1bf1   :  { %17273 = vrsqrt.f32 %v5291_v51  ;;  %v5290_v54 = vmul.f32 0.03125, %v5288_v0  ;;  %v17125_v55 = vunpack.i.h.bf16 %v17123_v53  ;;  %v17124_v56 = vunpack.i.l.bf16 %v17123_v53 }
0x1bf3   :  { %v5292_v57 = vadd.f32 1e-05, %v5290_v54  ;;  %v16973_v60 = vpack.c.bf16 %v17125_v55, %v17124_v56 }
0x1bf4   :  { %v17128_v61 = vpop.permute.xlu1 %17127 }
0x1bf5   :  { %17275 = vrsqrt.f32 %v5292_v57  ;;  %v17130_v2 = vunpack.i.h.bf16 %v17128_v61  ;;  %v17129_v22 = vunpack.i.l.bf16 %v17128_v61  ;;  %16974 = vmatprep.subr.bf16.mxu0 %v16973_v60 }
0x1bf6   :  { %v17270_v63 = vpop.eup %17269  ;;  %16976 = vmatpush3.bf16.msra.mxu0 %v16973_v60 }
0x1bf7   :  { %v17272_v3 = vpop.eup %17271  ;;  %v7608_v4 = vmul.f32 %v17270_v63, %v18299_v23  ;;  %v16977_v5 = vpack.c.bf16 %v17130_v2, %v17129_v22  ;;  %v15473_v23 = vld [vmem:[%s19165_s4 + $0x12] ss:$0 sm:$0xff] }
0x1bf8   :  { %v17133_v16 = vpop.permute.xlu1 %17132  ;;  %v7607_v7 = vmul.f32 %v17272_v3, %v18301_v35 }
0x1bf9   :  { %v17135_v36 = vunpack.i.h.bf16 %v17133_v16  ;;  %v17134_v15 = vunpack.i.l.bf16 %v17133_v16  ;;  %v7614_v10 = vmul.f32 %v15515_v21, %v7608_v4  ;;  %16978 = vmatprep.subr.bf16.mxu0 %v16977_v5 }
0x1bfa   :  { %v7613_v59 = vmul.f32 %v15515_v21, %v7607_v7  ;;  %16980 = vmatpush3.bf16.msra.mxu0 %v16977_v5 }
0x1bfb   :  { %v17274_v9 = vpop.eup %17273  ;;  %v16981_v19 = vpack.c.bf16 %v17135_v36, %v17134_v15  ;;  %16476 = vmatprep.subr.mxu0 %v17444_v47  ;;  %v18350_v17 = vadd.f32 %v15516_v12, %v7614_v10 }
0x1bfc   :  { %v5295_v35 = vmul.f32 %v17274_v9, %v18308_v11  ;;  %v17138_v48 = vpop.permute.xlu1 %17137  ;;  %v18348_v6 = vadd.f32 %v15516_v12, %v7613_v59 }
0x1bfd   :  { %v17140_v20 = vunpack.i.h.bf16 %v17138_v48  ;;  %v17139_v14 = vunpack.i.l.bf16 %v17138_v48  ;;  %16982 = vmatprep.subr.bf16.mxu1 %v16981_v19 }
0x1bfe   :  { %16451 = vmatprep.mubr.msk.f32.mxu1 %vm68_vm1, %v18348_v6  ;;  %v5301_v29 = vmul.f32 %v15473_v23, %v5295_v35 }
0x1bff   :  { %v17276_v25 = vpop.eup %17275  ;;  %16452 = vmatmul.mubr.msk.f32.vlgmr.msra.gmra.mrb[64].mxu1 %vm68_vm1, %v18350_v17  ;;  %v16985_v11 = vpack.c.bf16 %v17140_v20, %v17139_v14 }
0x1c00   :  { %v5296_v52 = vmul.f32 %v17276_v25, %v18313_v24  ;;  %16984 = vmatpush3.bf16.msra.mxu1 %v16981_v19  ;;  %v18360_v26 = vadd.f32 %v15474_v18, %v5301_v29 }
0x1c01   :  { %16986 = vmatprep.subr.bf16.mxu1 %v16985_v11 }
0x1c02   :  { %16473 = vmatprep.mubr.msk.f32.mxu1 %vm68_vm1, %v18360_v26  ;;  %v18368_v30 = vadd.f32 %v17403_v27, %v18360_v26  ;;  %v5302_v31 = vmul.f32 %v15473_v23, %v5296_v52 }
0x1c04   :  { %16988 = vmatpush3.bf16.msra.mxu1 %v16985_v11  ;;  %16462 = vmatprep.mubr.msk.f32.mxu0 %vm68_vm1, %v18368_v30  ;;  %v18372_v24 = vadd.f32 %v15474_v18, %v5302_v31 }
0x1c05   :  { %16481 = vmatprep.subr.mxu1 %v17444_v47 }
0x1c06   :  { %v18379_v33 = vadd.f32 %v17404_v38, %v18372_v24 }
0x1c07   :  { %16474 = vmatmul.mubr.msk.f32.vlgmr.msra.gmra.mrb[66].mxu1 %vm68_vm1, %v18372_v24 }
0x1c08   :  { %16463 = vmatmul.mubr.msk.f32.vlgmr.msra.gmra.mrb[56].mxu0 %vm68_vm1, %v18379_v33  ;;  %16483 = vmatprep.mubr.msk.f32.mxu1 %vm17445_vm3, %v17444_v47 }
0x1c09   :  { %16478 = vmatprep.mubr.msk.f32.mxu0 %vm17445_vm3, %v17444_v47 }
0x1cd2   :  { %v16453_v37 = vpop.f32.mrb[64].mxu1 }
0x1cd3   :  { %v7719_v39 = vadd.f32 %v16453_v37, %v15525_v34  ;;  %v7713_v40 = vpop.f32.mrb[65].mxu1 }
0x1cd4   :  { %v7714_v41 = vadd.f32 %v15525_v34, %v7713_v40 }
0x1cd5   :  { %7952 = vxpose.xlu1.b32.start.end [1/1] (short) (narrow) %v7719_v39, 32 }
0x1cd6   :  { %7920 = vxpose.xlu0.b32.start.end [1/1] (short) (narrow) %v7714_v41, 32 }
0x1cda   :  { %v18395_v43 = vpop.f32.mrb[66].mxu1 }
0x1cdb   :  { %v18397_v44 = vpop.f32.mrb[67].mxu1  ;;  %v16464_v46 = vpop.f32.mrb[56].mxu0 }
0x1cdc   :  { %v7820_v49 = vadd.f32 %v16464_v46, %v15528_v42  ;;  %v7814_v50 = vpop.f32.mrb[57].mxu0 }
0x1cdd   :  { %v7815_v51 = vadd.f32 %v15528_v42, %v7814_v50 }
0x1ce3   :  { %8240 = vxpose.xlu0.b32.start.end [1/1] (short) (narrow) %v7815_v51, 32 }
0x1d55   :  { %v7968_v54 = vpop.trf.xlu1 }
0x1d56   :  { %v7936_v0 = vpop.trf.xlu0 }
0x1d57   :  { %7984 = vxpose.xlu0.b32.start.end [1/1] (short) (narrow) %v7936_v0, 8 }
0x1d59   :  { %v7969_v56 = vpop.trf.xlu1 }
0x1d5a   :  { %v7937_v53 = vpop.trf.xlu0 }
0x1d5b   :  { %8016 = vxpose.xlu1.b32.start.end [1/1] (short) (narrow) %v7937_v53, 8 }
0x1d5d   :  { %v7970_v60 = vpop.trf.xlu1 }
0x1d5e   :  { %v7938_v55 = vpop.trf.xlu0 }
0x1d5f   :  { %8112 = vxpose.xlu1.b32.start.end [1/1] (short) (narrow) %v7968_v54, 8  ;;  %8048 = vxpose.xlu0.b32.start.end [1/1] (short) (narrow) %v7938_v55, 8 }
0x1d61   :  { %v7971_v2 = vpop.trf.xlu1 }
0x1d62   :  { %v7939_v57 = vpop.trf.xlu0 }
0x1d63   :  { %8080 = vxpose.xlu1.b32.start.end [1/1] (short) (narrow) %v7939_v57, 8  ;;  %8272 = vxpose.xlu0.b32.start.end [1/1] (short) (narrow) %v7820_v49, 32 }
0x1d66   :  { %v8256_v61 = vpop.trf.xlu0 }
0x1d67   :  { %8176 = vxpose.xlu1.b32.start.end [1/1] (short) (narrow) %v7970_v60, 8  ;;  %16477 = vmatpush3.msra.mxu0 %v8256_v61 }
0x1d68   :  { %16486 = vmatprep.subr.mxu0 %v17444_v47 }
0x1d6a   :  { %v8257_v22 = vpop.trf.xlu0 }
0x1d6b   :  { %8208 = vxpose.xlu1.b32.start.end [1/1] (short) (narrow) %v7971_v2, 8  ;;  %16482 = vmatpush3.msra.mxu1 %v8257_v22 }
0x1d6c   :  { %16491 = vmatprep.subr.mxu1 %v17444_v47 }
0x1d6e   :  { %v8258_v63 = vpop.trf.xlu0 }
0x1d70   :  { %8144 = vxpose.xlu0.b32.start.end [1/1] (short) (narrow) %v7969_v56, 8 }
0x1d72   :  { %v8259_v21 = vpop.trf.xlu0 }
0x1dd7   :  { %v8000_v3 = vpop.trf.xlu0 }
0x1dd8   :  { %16479 = vmatmul.mubr.msk.f32.vlgmr.msra.gmra.mrb[58].mxu0 %vm723_vm4, %v8000_v3 }
0x1dd9   :  { %16487 = vmatpush3.msra.mxu0 %v8258_v63  ;;  %16488 = vmatprep.mubr.msk.f32.mxu0 %vm17445_vm3, %v17444_v47 }
0x1dda   :  { %16496 = vmatprep.subr.mxu0 %v17444_v47 }
0x1ddb   :  { %v8032_v4 = vpop.trf.xlu1 }
0x1ddc   :  { %16484 = vmatmul.mubr.msk.f32.vlgmr.msra.gmra.mrb[68].mxu1 %vm723_vm4, %v8032_v4 }
0x1ddd   :  { %16492 = vmatpush3.msra.mxu1 %v8259_v21  ;;  %16493 = vmatprep.mubr.msk.f32.mxu1 %vm17445_vm3, %v17444_v47 }
0x1dde   :  { %16501 = vmatprep.subr.mxu1 %v17444_v47 }
0x1ddf   :  { %v8128_v5 = vpop.trf.xlu1  ;;  %v8064_v16 = vpop.trf.xlu0 }
0x1de0   :  { %16489 = vmatmul.mubr.msk.f32.vlgmr.msra.gmra.mrb[60].mxu0 %vm723_vm4, %v8064_v16 }
0x1de1   :  { %16498 = vmatprep.mubr.msk.f32.mxu0 %vm17445_vm3, %v17444_v47 }
0x1de3   :  { %v8096_v7 = vpop.trf.xlu1  ;;  %v8288_v36 = vpop.trf.xlu0 }
0x1de4   :  { %16494 = vmatmul.mubr.msk.f32.vlgmr.msra.gmra.mrb[70].mxu1 %vm723_vm4, %v8096_v7  ;;  %16497 = vmatpush3.msra.mxu0 %v8288_v36 }
0x1de5   :  { %16499 = vmatmul.mubr.msk.f32.vlgmr.msra.gmra.mrb[62].mxu0 %vm723_vm4, %v8128_v5  ;;  %16506 = vmatprep.subr.mxu0 %v17444_v47 }
0x1de6   :  { %16508 = vmatprep.mubr.msk.f32.mxu0 %vm17445_vm3, %v17444_v47  ;;  %16503 = vmatprep.mubr.msk.f32.mxu1 %vm17445_vm3, %v17444_v47 }
0x1de7   :  { %v8289_v15 = vpop.trf.xlu0  ;;  %v8192_v12 = vpop.trf.xlu1 }
0x1de8   :  { %16502 = vmatpush3.msra.mxu1 %v8289_v15 }
0x1de9   :  { %16511 = vmatprep.subr.mxu1 %v17444_v47 }
0x1deb   :  { %v8290_v10 = vpop.trf.xlu0  ;;  %v8224_v19 = vpop.trf.xlu1 }
0x1dec   :  { %16507 = vmatpush3.msra.mxu0 %v8290_v10 }
0x1ded   :  { %16509 = vmatmul.mubr.msk.f32.vlgmr.msra.gmra.mrb[64].mxu0 %vm723_vm4, %v8192_v12  ;;  %16516 = vmatprep.subr.mxu0 %v17444_v47 }
0x1dee   :  { %16518 = vmatprep.mubr.msk.f32.mxu0 %vm17445_vm3, %v17444_v47 }
0x1def   :  { %v8291_v59 = vpop.trf.xlu0 }
0x1df3   :  { %v8160_v9 = vpop.trf.xlu0 }
0x1df4   :  { %16504 = vmatmul.mubr.msk.f32.vlgmr.msra.gmra.mrb[72].mxu1 %vm723_vm4, %v8160_v9 }
0x1df5   :  { %16512 = vmatpush3.msra.mxu1 %v8291_v59  ;;  %16513 = vmatprep.mubr.msk.f32.mxu1 %vm17445_vm3, %v17444_v47 }
0x1df6   :  { %16521 = vmatprep.subr.mxu1 %v17444_v47 }
0x1df8   :  { %16514 = vmatmul.mubr.msk.f32.vlgmr.msra.gmra.mrb[74].mxu1 %vm723_vm4, %v8224_v19 }
0x1df9   :  { %16523 = vmatprep.mubr.msk.f32.mxu1 %vm17445_vm3, %v17444_v47 }
0x1eab   :  { %v8437_v23 = vpop.f32.mrb[58].mxu0 }
0x1eac   :  { %v8438_v35 = vadd.f32 %v18138_v58, %v8437_v23  ;;  %v16480_v48 = vpop.f32.mrb[59].mxu0 }
0x1eae   :  { %v8952_v20 = vsel %vm723_vm4, %v8438_v35, -inf }
0x1eaf   :  { %v8510_v14 = vpop.f32.mrb[68].mxu1  ;;  %8953 = vmax.xlane.f32.xlu1 %v8952_v20 }
0x1eb0   :  { %v8511_v18 = vadd.f32 %v18155_v8, %v8510_v14  ;;  %v16485_v29 = vpop.f32.mrb[69].mxu1 }
0x1eb2   :  { %v8955_v25 = vsel %vm723_vm4, %v8511_v18, -inf }
0x1eb3   :  { %8956 = vmax.xlane.f32.xlu0 %v8955_v25  ;;  %v8583_v11 = vpop.f32.mrb[60].mxu0 }
0x1eb4   :  { %v8584_v52 = vadd.f32 %v18148_v62, %v8583_v11  ;;  %v16490_v27 = vpop.f32.mrb[61].mxu0 }
0x1eb6   :  { %v8958_v31 = vsel %vm723_vm4, %v8584_v52, -inf }
0x1eb7   :  { %v8656_v38 = vpop.f32.mrb[70].mxu1  ;;  %8959 = vmax.xlane.f32.xlu1 %v8958_v31 }
0x1eb8   :  { %v8657_v58 = vadd.f32 %v18162_v45, %v8656_v38  ;;  %v16495_v34 = vpop.f32.mrb[71].mxu1  ;;  %v8729_v37 = vpop.f32.mrb[62].mxu0 }
0x1eb9   :  { %v16500_v39 = vpop.f32.mrb[63].mxu0  ;;  %v8730_v40 = vadd.f32 %v18168_v13, %v8729_v37 }
0x1eba   :  { %v8961_v8 = vsel %vm723_vm4, %v8657_v58, -inf }
0x1ebb   :  { %8962 = vmax.xlane.f32.xlu1 %v8961_v8  ;;  %v8964_v41 = vsel %vm723_vm4, %v8730_v40, -inf }
0x1ebf   :  { %8965 = vmax.xlane.f32.xlu1 %v8964_v41 }
0x1ec0   :  { %v8875_v42 = vpop.f32.mrb[64].mxu0 }
0x1ec1   :  { %v8876_v62 = vadd.f32 %v18181_v1, %v8875_v42  ;;  %v16510_v46 = vpop.f32.mrb[65].mxu0 }
0x1ec3   :  { %v8970_v49 = vsel %vm723_vm4, %v8876_v62, -inf }
0x1ec4   :  { %8971 = vmax.xlane.f32.xlu1 %v8970_v49 }
0x1ec7   :  { %v8802_v50 = vpop.f32.mrb[72].mxu1 }
0x1ec8   :  { %v8803_v45 = vadd.f32 %v18175_v28, %v8802_v50  ;;  %v16505_v51 = vpop.f32.mrb[73].mxu1 }
0x1eca   :  { %v8967_v0 = vsel %vm723_vm4, %v8803_v45, -inf }
0x1ecb   :  { %8968 = vmax.xlane.f32.xlu0 %v8967_v0  ;;  %v8948_v13 = vpop.f32.mrb[74].mxu1 }
0x1ecc   :  { %v8949_v53 = vadd.f32 %v18189_v32, %v8948_v13  ;;  %v16515_v54 = vpop.f32.mrb[75].mxu1 }
0x1ece   :  { %v8973_v55 = vsel %vm723_vm4, %v8949_v53, -inf }
0x1ecf   :  { %8974 = vmax.xlane.f32.xlu0 %v8973_v55 }
0x1f3c   :  { %v8954_v56 = vpop.xlane.xlu1 %8953 }
0x1f3d   :  { %v8976_v1 = vsub.f32 %v8438_v35, %v8954_v56 }
0x1f3f   :  { %v8984_v57 = vmul.f32 1.442695, %v8976_v1 }
0x1f40   :  { %v8957_v60 = vpop.xlane.xlu0 %8956 }
0x1f41   :  { %17277 = vpow2.f32 %v8984_v57  ;;  %v8977_v61 = vsub.f32 %v8511_v18, %v8957_v60 }
0x1f43   :  { %v8986_v2 = vmul.f32 1.442695, %v8977_v61 }
0x1f44   :  { %v8960_v22 = vpop.xlane.xlu1 %8959 }
0x1f45   :  { %17279 = vpow2.f32 %v8986_v2  ;;  %v8978_v28 = vsub.f32 %v8584_v52, %v8960_v22 }
0x1f47   :  { %v8988_v63 = vmul.f32 1.442695, %v8978_v28 }
0x1f48   :  { %v8963_v21 = vpop.xlane.xlu1 %8962 }
0x1f49   :  { %17281 = vpow2.f32 %v8988_v63  ;;  %v8979_v3 = vsub.f32 %v8657_v58, %v8963_v21 }
0x1f4b   :  { %v18447_v4 = vpop.eup %17277  ;;  %v8990_v32 = vmul.f32 1.442695, %v8979_v3 }
0x1f4c   :  { %v8966_v5 = vpop.xlane.xlu1 %8965  ;;  %v9000_v16 = vsel %vm723_vm4, %v18447_v4, 0.0 }
0x1f4d   :  { %17283 = vpow2.f32 %v8990_v32  ;;  %v8980_v7 = vsub.f32 %v8730_v40, %v8966_v5  ;;  %9001 = vadd.xlane.f32.xlu1 %v9000_v16  ;;  %v15531_v40 = vld [vmem:[%s19165_s4 + $0x1a] ss:$0 sm:$0xff] }
0x1f4e   :  { %v7912_v8 = vadd.f32 %v15531_v40, %v18397_v44  ;;  %v7917_v41 = vadd.f32 %v18395_v43, %v15531_v40 }
0x1f4f   :  { %v18451_v36 = vpop.eup %17279  ;;  %v8992_v15 = vmul.f32 1.442695, %v8980_v7 }
0x1f50   :  { %v9003_v12 = vsel %vm723_vm4, %v18451_v36, 0.0 }
0x1f51   :  { %17285 = vpow2.f32 %v8992_v15  ;;  %v8972_v10 = vpop.xlane.xlu1 %8971  ;;  %9004 = vadd.xlane.f32.xlu0 %v9003_v12 }
0x1f52   :  { %v8982_v59 = vsub.f32 %v8876_v62, %v8972_v10 }
0x1f53   :  { %v18455_v9 = vpop.eup %17281 }
0x1f54   :  { %v8996_v19 = vmul.f32 1.442695, %v8982_v59  ;;  %v9006_v23 = vsel %vm723_vm4, %v18455_v9, 0.0 }
0x1f55   :  { %9007 = vadd.xlane.f32.xlu1 %v9006_v23 }
0x1f56   :  { %17287 = vpow2.f32 %v8996_v19 }
0x1f57   :  { %v18459_v35 = vpop.eup %17283 }
0x1f58   :  { %v8969_v48 = vpop.xlane.xlu0 %8968  ;;  %v9009_v20 = vsel %vm723_vm4, %v18459_v35, 0.0 }
0x1f59   :  { %v8981_v14 = vsub.f32 %v8803_v45, %v8969_v48  ;;  %9010 = vadd.xlane.f32.xlu0 %v9009_v20 }
0x1f5b   :  { %v18463_v18 = vpop.eup %17285  ;;  %v8994_v29 = vmul.f32 1.442695, %v8981_v14 }
0x1f5c   :  { %v8975_v25 = vpop.xlane.xlu0 %8974  ;;  %v9012_v11 = vsel %vm723_vm4, %v18463_v18, 0.0 }
0x1f5d   :  { %17289 = vpow2.f32 %v8994_v29  ;;  %v8983_v52 = vsub.f32 %v8949_v53, %v8975_v25  ;;  %9013 = vadd.xlane.f32.xlu1 %v9012_v11 }
0x1f5f   :  { %v8998_v27 = vmul.f32 1.442695, %v8983_v52 }
0x1f60   :  { %v18467_v31 = vpop.eup %17287 }
0x1f61   :  { %17291 = vpow2.f32 %v8998_v27  ;;  %v9018_v38 = vsel %vm723_vm4, %v18467_v31, 0.0 }
0x1f62   :  { %9019 = vadd.xlane.f32.xlu1 %v9018_v38  ;;  %v15522_v38 = vld [vmem:[%s19163_s2 + $0x128] sm:$0xff] }
0x1f67   :  { %v18471_v58 = vpop.eup %17289 }
0x1f68   :  { %v9015_v34 = vsel %vm723_vm4, %v18471_v58, 0.0 }
0x1f69   :  { %9016 = vadd.xlane.f32.xlu0 %v9015_v34 }
0x1f6b   :  { %v18475_v37 = vpop.eup %17291 }
0x1f6c   :  { %v9021_v39 = vsel %vm723_vm4, %v18475_v37, 0.0 }
0x1f6d   :  { %9022 = vadd.xlane.f32.xlu0 %v9021_v39 }
0x1f95   :  { %8304 = vxpose.xlu1.b32.start.end [1/1] (short) (narrow) %v7912_v8, 32 }
0x1f9a   :  { %8336 = vxpose.xlu0.b32.start.end [1/1] (short) (narrow) %v7917_v41, 32 }
0x1fda   :  { %v9002_v42 = vpop.xlane.xlu1 %9001 }
0x1fdb   :  { %17293 = vrcp.f32 %v9002_v42 }
0x1fde   :  { %v9005_v46 = vpop.xlane.xlu0 %9004 }
0x1fdf   :  { %17295 = vrcp.f32 %v9005_v46 }
0x1fe2   :  { %v9008_v62 = vpop.xlane.xlu1 %9007 }
0x1fe3   :  { %17297 = vrcp.f32 %v9008_v62 }
0x1fe5   :  { %v17294_v0 = vpop.eup %17293 }
0x1fe6   :  { %v9011_v50 = vpop.xlane.xlu0 %9010  ;;  %v9032_v43 = vmul.f32 %v17294_v0, %v18447_v4  ;;  %v15558_v0 = vld [vmem:[%s19165_s4 + $0x1b] ss:$0 sm:$0xff] }
0x1fe7   :  { %17299 = vrcp.f32 %v9011_v50 }
0x1fe9   :  { %v17296_v44 = vpop.eup %17295 }
0x1fea   :  { %v9014_v49 = vpop.xlane.xlu1 %9013  ;;  %v9033_v56 = vmul.f32 %v17296_v44, %v18451_v36 }
0x1feb   :  { %17301 = vrcp.f32 %v9014_v49 }
0x1fed   :  { %v17298_v1 = vpop.eup %17297 }
0x1fee   :  { %v9034_v2 = vmul.f32 %v17298_v1, %v18455_v9 }
0x1fef   :  { %v9020_v51 = vpop.xlane.xlu1 %9019 }
0x1ff0   :  { %17303 = vrcp.f32 %v9020_v51 }
0x1ff1   :  { %v17300_v61 = vpop.eup %17299 }
0x1ff2   :  { %v9035_v3 = vmul.f32 %v17300_v61, %v18459_v35 }
0x1ff5   :  { %v17302_v22 = vpop.eup %17301 }
0x1ff6   :  { %v9017_v45 = vpop.xlane.xlu0 %9016  ;;  %v9036_v4 = vmul.f32 %v17302_v22, %v18463_v18 }
0x1ff7   :  { %17305 = vrcp.f32 %v9017_v45 }
0x1ffa   :  { %v9023_v53 = vpop.xlane.xlu0 %9022  ;;  %v17304_v21 = vpop.eup %17303 }
0x1ffb   :  { %17307 = vrcp.f32 %v9023_v53  ;;  %v9038_v16 = vmul.f32 %v17304_v21, %v18467_v31  ;;  %v15521_v31 = vld [vmem:[%s19163_s2 + $0x120] sm:$0xff] }
0x1ffc   :  { %v16989_v34 = vpack.c.bf16 %v15522_v38, %v15521_v31  ;;  %v15562_v31 = vld [vmem:[%s19165_s4 + $0x21] ss:$0 sm:$0xff] }
0x2001   :  { %v17306_v32 = vpop.eup %17305 }
0x2002   :  { %v9037_v5 = vmul.f32 %v17306_v32, %v18471_v58  ;;  %v15523_v58 = vld [vmem:[%s19163_s2 + $0x130] sm:$0xff] }
0x2003   :  { %v15565_v32 = vld [vmem:[%s19163_s2 + $0x150] sm:$0xff] }
0x2005   :  { %v17308_v36 = vpop.eup %17307 }
0x2006   :  { %v9039_v15 = vmul.f32 %v17308_v36, %v18475_v37  ;;  %v15524_v37 = vld [vmem:[%s19163_s2 + $0x138] sm:$0xff]  ;;  %v15570_v36 = vld [vmem:[%s19164_s3 + $0x80] sm:$0xff] }
0x2007   :  { %v16993_v39 = vpack.c.bf16 %v15524_v37, %v15523_v58 }
0x2015   :  { %v8320_v13 = vpop.trf.xlu1 }
0x2016   :  { %16517 = vmatpush3.xpose.msk.msra.mxu0 %vm723_vm4, %v8320_v13 }
0x2017   :  { %16526 = vmatprep.subr.mxu0 %v17444_v47 }
0x2019   :  { %16519 = vmatmul.mubr.msk.f32.vlgmr.msra.gmra.mrb[66].mxu0 %vm723_vm4, %v9032_v43  ;;  %v8321_v54 = vpop.trf.xlu1 }
0x201a   :  { %16522 = vmatpush3.xpose.msk.msra.mxu1 %vm723_vm4, %v8321_v54  ;;  %v8352_v55 = vpop.trf.xlu0  ;;  %16528 = vmatprep.mubr.msk.f32.mxu0 %vm17445_vm3, %v17444_v47 }
0x201b   :  { %16531 = vmatprep.subr.mxu1 %v17444_v47 }
0x201d   :  { %v8322_v57 = vpop.trf.xlu1  ;;  %16524 = vmatmul.mubr.msk.f32.vlgmr.msra.gmra.mrb[76].mxu1 %vm723_vm4, %v9033_v56 }
0x201e   :  { %16527 = vmatpush3.xpose.msk.msra.mxu0 %vm723_vm4, %v8322_v57  ;;  %v8353_v60 = vpop.trf.xlu0  ;;  %16533 = vmatprep.mubr.msk.f32.mxu1 %vm17445_vm3, %v17444_v47 }
0x201f   :  { %16536 = vmatprep.subr.mxu0 %v17444_v47 }
0x2021   :  { %16529 = vmatmul.mubr.msk.f32.vlgmr.msra.gmra.mrb[68].mxu0 %vm723_vm4, %v9034_v2  ;;  %v8323_v28 = vpop.trf.xlu1 }
0x2022   :  { %16532 = vmatpush3.xpose.msk.msra.mxu1 %vm723_vm4, %v8323_v28  ;;  %16537 = vmatpush3.xpose.msk.msra.mxu0 %vm723_vm4, %v8352_v55  ;;  %v8354_v63 = vpop.trf.xlu0 }
0x2023   :  { %16538 = vmatprep.mubr.msk.f32.mxu0 %vm17445_vm3, %v17444_v47  ;;  %16541 = vmatprep.subr.mxu1 %v17444_v47 }
0x2024   :  { %16546 = vmatprep.subr.mxu0 %v17444_v47 }
0x2025   :  { %16534 = vmatmul.mubr.msk.f32.vlgmr.msra.gmra.mrb[78].mxu1 %vm723_vm4, %v9035_v3  ;;  %16539 = vmatmul.mubr.msk.f32.vlgmr.msra.gmra.mrb[70].mxu0 %vm723_vm4, %v9036_v4  ;;  %v15564_v4 = vld [vmem:[%s19163_s2 + $0x148] sm:$0xff] }
0x2026   :  { %16542 = vmatpush3.xpose.msk.msra.mxu1 %vm723_vm4, %v8353_v60  ;;  %16547 = vmatpush3.xpose.msk.msra.mxu0 %vm723_vm4, %v8354_v63  ;;  %v8355_v7 = vpop.trf.xlu0 }
0x2027   :  { %16543 = vmatprep.mubr.msk.f32.mxu1 %vm17445_vm3, %v17444_v47  ;;  %16548 = vmatprep.mubr.msk.f32.mxu0 %vm17445_vm3, %v17444_v47 }
0x2028   :  { %16551 = vmatprep.subr.mxu1 %v17444_v47  ;;  %16990 = vmatprep.subr.bf16.mxu0 %v16989_v34 }
0x2029   :  { %16544 = vmatmul.mubr.msk.f32.vlgmr.msra.gmra.mrb[80].mxu1 %vm723_vm4, %v9037_v5  ;;  %16549 = vmatmul.mubr.msk.f32.vlgmr.msra.gmra.mrb[72].mxu0 %vm723_vm4, %v9038_v16  ;;  %v15566_v16 = vld [vmem:[%s19163_s2 + $0x158] sm:$0xff] }
0x202a   :  { %16552 = vmatpush3.xpose.msk.msra.mxu1 %vm723_vm4, %v8355_v7  ;;  %16553 = vmatprep.mubr.msk.f32.mxu1 %vm17445_vm3, %v17444_v47  ;;  %v17001_v7 = vpack.c.bf16 %v15566_v16, %v15565_v32  ;;  %v15584_v32 = vld [vmem:[%s19163_s2 + $0x168] sm:$0xff]  ;;  %v15585_v16 = vld [vmem:[%s19163_s2 + $0x170] sm:$0xff] }
0x202b   :  { %16992 = vmatpush3.bf16.msra.mxu0 %v16989_v34 }
0x202c   :  { %16994 = vmatprep.subr.bf16.mxu0 %v16993_v39 }
0x202d   :  { %16554 = vmatmul.mubr.msk.f32.vlgmr.msra.gmra.mrb[82].mxu1 %vm723_vm4, %v9039_v15  ;;  %v15571_v15 = vld [vmem:[%s19164_s3 + $0x88] sm:$0xff] }
0x202f   :  { %16996 = vmatpush3.bf16.msra.mxu0 %v16993_v39 }
0x20ec   :  { %v9112_v12 = vpop.f32.mrb[66].mxu0 }
0x20ed   :  { %v16520_v10 = vpop.f32.mrb[67].mxu0  ;;  %9648 = vxpose.xlu0.b32.start.end [1/1] (short) (narrow) %v9112_v12, 8  ;;  %v15572_v12 = vld [vmem:[%s19164_s3 + $0x90] sm:$0xff] }
0x20ee   :  { %v17005_v10 = vpack.c.bf16 %v15571_v15, %v15570_v36  ;;  %v15594_v15 = vld [vmem:[%s19165_s4 + $0x25] ss:$0 sm:$0xff] }
0x20f0   :  { %v9188_v59 = vpop.f32.mrb[76].mxu1  ;;  %17006 = vmatprep.subr.bf16.mxu0 %v17005_v10 }
0x20f1   :  { %9680 = vxpose.xlu0.b32.start.end [1/1] (short) (narrow) %v9188_v59, 8  ;;  %v16525_v9 = vpop.f32.mrb[77].mxu1  ;;  %v15573_v59 = vld [vmem:[%s19164_s3 + $0x98] sm:$0xff] }
0x20f2   :  { %v17009_v9 = vpack.c.bf16 %v15573_v59, %v15572_v12 }
0x20f4   :  { %v9264_v19 = vpop.f32.mrb[68].mxu0 }
0x20f5   :  { %v16530_v23 = vpop.f32.mrb[69].mxu0 }
0x20f6   :  { %v15575_v23 = vld [vmem:[%s19164_s3 + $0xa8] sm:$0xff] }
0x20f8   :  { %v9340_v35 = vpop.f32.mrb[78].mxu1  ;;  %v9416_v48 = vpop.f32.mrb[70].mxu0 }
0x20f9   :  { %v16535_v20 = vpop.f32.mrb[79].mxu1  ;;  %9776 = vxpose.xlu1.b32.start.end [1/1] (short) (narrow) %v9416_v48, 8  ;;  %v16540_v14 = vpop.f32.mrb[71].mxu0 }
0x20fc   :  { %v9492_v18 = vpop.f32.mrb[80].mxu1  ;;  %v9568_v29 = vpop.f32.mrb[72].mxu0 }
0x20fd   :  { %9712 = vxpose.xlu1.b32.start.end [1/1] (short) (narrow) %v9264_v19, 8  ;;  %9808 = vxpose.xlu0.b32.start.end [1/1] (short) (narrow) %v9492_v18, 8  ;;  %v16545_v25 = vpop.f32.mrb[81].mxu1  ;;  %v16550_v11 = vpop.f32.mrb[73].mxu0  ;;  %v15574_v19 = vld [vmem:[%s19164_s3 + $0xa0] sm:$0xff] }
0x2100   :  { %v9644_v52 = vpop.f32.mrb[82].mxu1 }
0x2101   :  { %9744 = vxpose.xlu1.b32.start.end [1/1] (short) (narrow) %v9340_v35, 8  ;;  %9840 = vxpose.xlu0.b32.start.end [1/1] (short) (narrow) %v9568_v29, 8  ;;  %v16555_v27 = vpop.f32.mrb[83].mxu1  ;;  %v17013_v35 = vpack.c.bf16 %v15575_v23, %v15574_v19 }
0x2105   :  { %9872 = vxpose.xlu0.b32.start.end [1/1] (short) (narrow) %v9644_v52, 8  ;;  %v15561_v52 = vld [vmem:[%s19165_s4 + $0x20] ss:$0 sm:$0xff] }
0x216d   :  { %v9664_v40 = vpop.trf.xlu0 }
0x216e   :  { %9904 = vxpose.xlu1.b32.start [1/4] (short) (narrow) %v9664_v40, 8 }
0x2171   :  { %v9696_v8 = vpop.trf.xlu0 }
0x2172   :  { %9905 = vxpose.xlu1.b32.cont [2/4] (short) (narrow) %v9696_v8, 8  ;;  %v15576_v8 = vld [vmem:[%s19164_s3 + $0xb0] sm:$0xff] }
0x2179   :  { %v9792_v41 = vpop.trf.xlu1 }
0x217a   :  { %9936 = vxpose.xlu0.b32.start [1/4] (short) (narrow) %v9792_v41, 8  ;;  %v15577_v41 = vld [vmem:[%s19164_s3 + $0xb8] sm:$0xff] }
0x217d   :  { %v9824_v42 = vpop.trf.xlu0  ;;  %v9728_v62 = vpop.trf.xlu1 }
0x217e   :  { %9937 = vxpose.xlu0.b32.cont [2/4] (short) (narrow) %v9824_v42, 8  ;;  %9906 = vxpose.xlu1.b32.cont [3/4] (short) (narrow) %v9728_v62, 8  ;;  %v17017_v42 = vpack.c.bf16 %v15577_v41, %v15576_v8  ;;  %v15567_v62 = vld [vmem:[%s19165_s4 + $0x1c] ss:$0 sm:$0xff] }
0x2181   :  { %v9856_v46 = vpop.trf.xlu0  ;;  %v9760_v49 = vpop.trf.xlu1 }
0x2182   :  { %9938 = vxpose.xlu0.b32.cont [3/4] (short) (narrow) %v9856_v46, 8  ;;  %9907 = vxpose.xlu1.b32.end [4/4] (short) (narrow) %v9760_v49, 8 }
0x2185   :  { %v9888_v50 = vpop.trf.xlu0 }
0x2186   :  { %9939 = vxpose.xlu0.b32.end [4/4] (short) (narrow) %v9888_v50, 8 }
0x21f6   :  { %v9920_v45 = vpop.trf.xlu1 }
0x21f7   :  { %16564 = vmatprep.mubr.msk.f32.mxu0 %vm68_vm1, %v9920_v45 }
0x21fa   :  { %v9952_v51 = vpop.trf.xlu0 }
0x21fb   :  { %16565 = vmatmul.mubr.msk.f32.vlgmr.msra.gmra.mrb[74].mxu0 %vm68_vm1, %v9952_v51 }
0x21fc   :  { %17008 = vmatpush3.bf16.msra.mxu0 %v17005_v10 }
0x21fd   :  { %17010 = vmatprep.subr.bf16.mxu0 %v17009_v9 }
0x2200   :  { %17012 = vmatpush3.bf16.msra.mxu0 %v17009_v9 }
0x2201   :  { %17014 = vmatprep.subr.bf16.mxu0 %v17013_v35 }
0x2204   :  { %17016 = vmatpush3.bf16.msra.mxu0 %v17013_v35 }
0x2205   :  { %17018 = vmatprep.subr.bf16.mxu0 %v17017_v42 }
0x2208   :  { %17020 = vmatpush3.bf16.msra.mxu0 %v17017_v42 }
0x2209   :  { %16618 = vmatprep.subr.mxu0 %v17444_v47 }
0x22ce   :  { %v16566_v13 = vpop.f32.mrb[74].mxu0 }
0x22cf   :  { %v10050_v53 = vadd.f32 %v16566_v13, %v15558_v0  ;;  %v10044_v43 = vpop.f32.mrb[75].mxu0  ;;  %v15578_v13 = vld [vmem:[%s19165_s4 + $0x1d] ss:$0 sm:$0xff] }
0x22d0   :  { %v10045_v44 = vadd.f32 %v15558_v0, %v10044_v43 }
0x22d1   :  { %v10054_v54 = vadd.f32 %v10050_v53, %v18350_v17 }
0x22d2   :  { %v10053_v55 = vadd.f32 %v10045_v44, %v18348_v6  ;;  %v15563_v6 = vld [vmem:[%s19163_s2 + $0x140] sm:$0xff] }
0x22d3   :  { %v10060_v56 = vsel %vm68_vm1, %v10054_v54, 0.0  ;;  %v16997_v5 = vpack.c.bf16 %v15564_v4, %v15563_v6  ;;  %v15583_v4 = vld [vmem:[%s19163_s2 + $0x160] sm:$0xff] }
0x22d4   :  { %10061 = vadd.xlane.f32.xlu0 %v10060_v56  ;;  %v10057_v1 = vsel %vm68_vm1, %v10053_v55, 0.0 }
0x22d5   :  { %10058 = vadd.xlane.f32.xlu1 %v10057_v1  ;;  %16998 = vmatprep.subr.bf16.mxu1 %v16997_v5 }
0x22d6   :  { %17000 = vmatpush3.bf16.msra.mxu1 %v16997_v5  ;;  %v17021_v5 = vpack.c.bf16 %v15584_v32, %v15583_v4 }
0x22d7   :  { %17002 = vmatprep.subr.bf16.mxu1 %v17001_v7 }
0x22da   :  { %17004 = vmatpush3.bf16.msra.mxu1 %v17001_v7  ;;  %v15586_v7 = vld [vmem:[%s19163_s2 + $0x178] sm:$0xff] }
0x22db   :  { %v17025_v36 = vpack.c.bf16 %v15586_v7, %v15585_v16  ;;  %17022 = vmatprep.subr.bf16.mxu1 %v17021_v5 }
0x2361   :  { %v10062_v57 = vpop.xlane.xlu0 %10061 }
0x2362   :  { %v10064_v60 = vmul.f32 0.03125, %v10062_v57  ;;  %v10059_v61 = vpop.xlane.xlu1 %10058 }
0x2363   :  { %v10063_v2 = vmul.f32 0.03125, %v10059_v61 }
0x2364   :  { %v10066_v22 = vsub.f32 %v10054_v54, %v10064_v60 }
0x2365   :  { %v10065_v28 = vsub.f32 %v10053_v55, %v10063_v2 }
0x2366   :  { %v10068_v3 = vmul.f32 %v10066_v22, %v10066_v22 }
0x2367   :  { %v10067_v63 = vmul.f32 %v10065_v28, %v10065_v28 }
0x2368   :  { %v10072_v17 = vsel %vm68_vm1, %v10068_v3, 0.0 }
0x2369   :  { %v10069_v21 = vsel %vm68_vm1, %v10067_v63, 0.0 }
0x236a   :  { %10070 = vadd.xlane.f32.xlu1 %v10069_v21 }
0x236e   :  { %10073 = vadd.xlane.f32.xlu1 %v10072_v17 }
0x23f7   :  { %v10071_v48 = vpop.xlane.xlu1 %10070 }
0x23f8   :  { %v10075_v20 = vmul.f32 0.03125, %v10071_v48  ;;  %v15581_v48 = vld [vmem:[%s19165_s4 + $0x22] ss:$0 sm:$0xff] }
0x23fa   :  { %v10077_v14 = vadd.f32 1e-05, %v10075_v20 }
0x23fb   :  { %v10074_v18 = vpop.xlane.xlu1 %10073 }
0x23fc   :  { %17309 = vrsqrt.f32 %v10077_v14  ;;  %v10076_v29 = vmul.f32 0.03125, %v10074_v18  ;;  %v17405_v18 = vld [vmem:[%s19161_s0 + $0x30] sm:$0xff] }
0x23fe   :  { %v10078_v25 = vadd.f32 1e-05, %v10076_v29  ;;  %v17406_v29 = vld [vmem:[%s19161_s0 + $0x40] sm:$0xff] }
0x2400   :  { %17311 = vrsqrt.f32 %v10078_v25  ;;  %v18634_v25 = vmul.f32 %v17406_v29, %v17405_v18  ;;  %v18730_v18 = vld [vmem:[%s19162_s1 + $0x10] sm:$0xff] }
0x2402   :  { %vm10325_vm8 = vcmp.gt.f32.partialorder %v18634_v25, 0.5 }
0x2406   :  { %v17310_v11 = vpop.eup %17309 }
0x2407   :  { %v10081_v27 = vmul.f32 %v17310_v11, %v10065_v28  ;;  %v15582_v11 = vld [vmem:[%s19165_s4 + $0x23] ss:$0 sm:$0xff] }
0x2409   :  { %v10087_v38 = vmul.f32 %v15561_v52, %v10081_v27  ;;  %v17407_v27 = vld [vmem:[%s19161_s0 + $0x38] sm:$0xff] }
0x240a   :  { %v17312_v58 = vpop.eup %17311 }
0x240b   :  { %v10082_v34 = vmul.f32 %v17312_v58, %v10066_v22  ;;  %v10093_v37 = vadd.f32 %v15562_v31, %v10087_v38 }
0x240d   :  { %v10088_v39 = vmul.f32 %v15561_v52, %v10082_v34  ;;  %16575 = vmatprep.mubr.msk.f32.mxu1 %vm68_vm1, %v10093_v37 }
0x240f   :  { %v10094_v40 = vadd.f32 %v15562_v31, %v10088_v39  ;;  %v17408_v31 = vld [vmem:[%s19161_s0 + $0x48] sm:$0xff] }
0x2410   :  { %v18645_v38 = vmul.f32 %v17408_v31, %v17407_v27 }
0x2411   :  { %16576 = vmatmul.mubr.msk.f32.vlgmr.msra.gmra.mrb[84].mxu1 %vm68_vm1, %v10094_v40 }
0x2412   :  { %17024 = vmatpush3.bf16.msra.mxu1 %v17021_v5  ;;  %vm10326_vm9 = vcmp.gt.f32.partialorder %v18645_v38, 0.5 }
0x2413   :  { %17026 = vmatprep.subr.bf16.mxu1 %v17025_v36 }
0x2416   :  { %17028 = vmatpush3.bf16.msra.mxu1 %v17025_v36 }
0x2417   :  { %16608 = vmatprep.subr.mxu1 %v17444_v47 }
0x24e4   :  { %v16577_v46 = vpop.f32.mrb[84].mxu1 }
0x24e5   :  { %v10183_v49 = vadd.f32 %v16577_v46, %v15567_v62  ;;  %v10177_v50 = vpop.f32.mrb[85].mxu1 }
0x24e6   :  { %v10178_v45 = vadd.f32 %v15567_v62, %v10177_v50  ;;  %v15593_v50 = vld [vmem:[%s19165_s4 + $0x24] ss:$0 sm:$0xff] }
0x24e7   :  { %v10187_v0 = vmax.f32 %v10183_v49, 0.0 }
0x24e8   :  { %v10186_v51 = vmax.f32 %v10178_v45, 0.0 }
0x24ea   :  { %16594 = vmatprep.mubr.msk.f32.mxu0 %vm2558_vm5, %v10186_v51 }
0x24eb   :  { %16595 = vmatmul.mubr.msk.f32.vlgmr.msra.gmra.mrb[76].mxu0 %vm2558_vm5, %v10187_v0 }
0x24ec   :  { %16620 = vmatprep.mubr.msk.f32.mxu0 %vm17445_vm3, %v17444_v47 }
0x25be   :  { %v16596_v53 = vpop.f32.mrb[76].mxu0 }
0x25bf   :  { %v10280_v43 = vadd.f32 %v16596_v53, %v15578_v13  ;;  %v10274_v44 = vpop.f32.mrb[77].mxu0 }
0x25c0   :  { %v10275_v54 = vadd.f32 %v15578_v13, %v10274_v44 }
0x25c1   :  { %v10284_v55 = vadd.f32 %v10280_v43, %v10094_v40 }
0x25c2   :  { %v10283_v56 = vadd.f32 %v10275_v54, %v10093_v37 }
0x25c3   :  { %v10290_v1 = vsel %vm68_vm1, %v10284_v55, 0.0 }
0x25c4   :  { %10291 = vadd.xlane.f32.xlu0 %v10290_v1  ;;  %v10287_v57 = vsel %vm68_vm1, %v10283_v56, 0.0 }
0x25c5   :  { %10288 = vadd.xlane.f32.xlu1 %v10287_v57 }
0x2651   :  { %v10292_v60 = vpop.xlane.xlu0 %10291 }
0x2652   :  { %v10294_v61 = vmul.f32 0.03125, %v10292_v60  ;;  %v10289_v2 = vpop.xlane.xlu1 %10288 }
0x2653   :  { %v10293_v22 = vmul.f32 0.03125, %v10289_v2 }
0x2654   :  { %v10296_v28 = vsub.f32 %v10284_v55, %v10294_v61 }
0x2655   :  { %v10295_v63 = vsub.f32 %v10283_v56, %v10293_v22 }
0x2656   :  { %v10298_v21 = vmul.f32 %v10296_v28, %v10296_v28 }
0x2657   :  { %v10297_v3 = vmul.f32 %v10295_v63, %v10295_v63 }
0x2658   :  { %v10302_v17 = vsel %vm68_vm1, %v10298_v21, 0.0 }
0x2659   :  { %10303 = vadd.xlane.f32.xlu0 %v10302_v17  ;;  %v10299_v6 = vsel %vm68_vm1, %v10297_v3, 0.0 }
0x265a   :  { %10300 = vadd.xlane.f32.xlu1 %v10299_v6 }
0x266b   :  { %10435 = vrot.lane.b32.xlu1 %v15594_v15, %s17442_s20 }
0x26e6   :  { %v10304_v12 = vpop.xlane.xlu0 %10303 }
0x26e7   :  { %v10306_v10 = vmul.f32 0.03125, %v10304_v12  ;;  %v10301_v59 = vpop.xlane.xlu1 %10300  ;;  %v18713_v12 = vld [vmem:[%s19162_s1] sm:$0xff] }
0x26e8   :  { %v10305_v9 = vmul.f32 0.03125, %v10301_v59 }
0x26e9   :  { %v10308_v19 = vadd.f32 1e-05, %v10306_v10 }
0x26ea   :  { %v10307_v23 = vadd.f32 1e-05, %v10305_v9 }
0x26eb   :  { %17313 = vrsqrt.f32 %v10308_v19  ;;  %v10436_v41 = vpop.permute.xlu1 %10435 }
0x26ec   :  { %17315 = vrsqrt.f32 %v10307_v23  ;;  %v18720_v23 = vld [vmem:[%s19162_s1 + $0x8] sm:$0xff] }
0x26f5   :  { %v17314_v35 = vpop.eup %17313 }
0x26f6   :  { %v17316_v20 = vpop.eup %17315  ;;  %v10312_v14 = vmul.f32 %v17314_v35, %v10296_v28 }
0x26f7   :  { %v10311_v52 = vmul.f32 %v17316_v20, %v10295_v63 }
0x26f8   :  { %v10318_v58 = vmul.f32 %v15581_v48, %v10312_v14 }
0x26f9   :  { %v10317_v34 = vmul.f32 %v15581_v48, %v10311_v52 }
0x26fa   :  { %v10324_v37 = vadd.f32 %v15582_v11, %v10318_v58  ;;  %v18737_v58 = vld [vmem:[%s19162_s1 + $0x18] sm:$0xff] }
0x26fb   :  { %v10323_v39 = vadd.f32 %v15582_v11, %v10317_v34 }
0x26fc   :  { %v18659_v8 = vsel %vm10326_vm9, %v18372_v24, %v10324_v37  ;;  %v18743_v37 = vld [vmem:[%s19162_s1 + $0x20] sm:$0xff] }
0x26fd   :  { %v18652_v40 = vsel %vm10325_vm8, %v18360_v26, %v10323_v39 }
0x26fe   :  { %16605 = vmatprep.mubr.msk.f32.mxu1 %vm68_vm1, %v18652_v40 }
0x26ff   :  { %16606 = vmatmul.mubr.msk.f32.vlgmr.msra.gmra.mrb[86].mxu1 %vm68_vm1, %v18659_v8 }
0x2700   :  { %16610 = vmatprep.mubr.msk.f32.mxu1 %vm17445_vm3, %v17444_v47 }
0x27d2   :  { %v18665_v42 = vpop.f32.mrb[86].mxu1 }
0x27d3   :  { %v10439_v62 = vadd.f32 %v18665_v42, %v10436_v41  ;;  %v18668_v46 = vpop.f32.mrb[87].mxu1  ;;  %v10429_v45 = vadd.f32 %v18665_v42, %v15593_v50 }
0x27d4   :  { %v10438_v49 = vadd.f32 %v10436_v41, %v18668_v46  ;;  %v10428_v51 = vadd.f32 %v15593_v50, %v18668_v46 }
0x27d5   :  { %10774 = vrot.lane.b32.xlu1 %v10439_v62, %s17443_s21 }
0x27d6   :  { %10772 = vrot.lane.b32.xlu0 %v10438_v49, %s17443_s21 }
0x27f4   :  { %10482 = vxpose.xlu0.b32.start.end [1/1] (short) (narrow) %v10429_v45, 32 }
0x27fe   :  { %10450 = vxpose.xlu1.b32.start.end [1/1] (short) (narrow) %v10428_v51, 32 }
0x2847   :  { %v10775_v53 = vpop.permute.xlu1 %10774 }
0x2848   :  { %v10773_v0 = vpop.permute.xlu0 %10772 }
0x2874   :  { %v10498_v13 = vpop.trf.xlu0 }
0x2875   :  { %10642 = vxpose.xlu0.b32.start.end [1/1] (short) (narrow) %v10498_v13, 8 }
0x2878   :  { %v10499_v56 = vpop.trf.xlu0 }
0x287c   :  { %v10500_v1 = vpop.trf.xlu0 }
0x287e   :  { %v10466_v43 = vpop.trf.xlu1 }
0x287f   :  { %10514 = vxpose.xlu1.b32.start.end [1/1] (short) (narrow) %v10466_v43, 8 }
0x2880   :  { %v10501_v57 = vpop.trf.xlu0 }
0x2882   :  { %v10467_v44 = vpop.trf.xlu1 }
0x2883   :  { %10546 = vxpose.xlu0.b32.start.end [1/1] (short) (narrow) %v10467_v44, 8 }
0x2886   :  { %v10468_v54 = vpop.trf.xlu1 }
0x2887   :  { %10578 = vxpose.xlu1.b32.start.end [1/1] (short) (narrow) %v10468_v54, 8 }
0x288a   :  { %v10469_v55 = vpop.trf.xlu1 }
0x288b   :  { %10810 = vxpose.xlu1.b32.start.end [1/1] (short) (narrow) %v10775_v53, 32  ;;  %10610 = vxpose.xlu0.b32.start.end [1/1] (short) (narrow) %v10469_v55, 8  ;;  %v18760_v53 = vld [vmem:[%s19162_s1 + $0x30] sm:$0xff] }
0x288f   :  { %10778 = vxpose.xlu0.b32.start.end [1/1] (short) (narrow) %v10773_v0, 32  ;;  %v18754_v0 = vld [vmem:[%s19162_s1 + $0x28] sm:$0xff] }
0x2898   :  { %10674 = vxpose.xlu1.b32.start.end [1/1] (short) (narrow) %v10499_v56, 8 }
0x289c   :  { %10706 = vxpose.xlu0.b32.start.end [1/1] (short) (narrow) %v10500_v1, 8 }
0x28a0   :  { %10738 = vxpose.xlu0.b32.start.end [1/1] (short) (narrow) %v10501_v57, 8  ;;  %v18771_v57 = vld [vmem:[%s19162_s1 + $0x38] sm:$0xff] }
0x28f5   :  { %v10658_v60 = vpop.trf.xlu0 }
0x28ff   :  { %v10530_v61 = vpop.trf.xlu1 }
0x2903   :  { %v10562_v2 = vpop.trf.xlu0 }
0x2907   :  { %v10594_v22 = vpop.trf.xlu1 }
0x290b   :  { %v10626_v28 = vpop.trf.xlu0  ;;  %v10826_v63 = vpop.trf.xlu1 }
0x290f   :  { %v10794_v21 = vpop.trf.xlu0  ;;  %v10827_v3 = vpop.trf.xlu1 }
0x2910   :  { %16609 = vmatpush3.msra.mxu1 %v10794_v21 }
0x2911   :  { %16611 = vmatmul.mubr.msk.f32.vlgmr.msra.gmra.mrb[88].mxu1 %vm723_vm4, %v10530_v61  ;;  %16613 = vmatprep.subr.mxu1 %v17444_v47 }
0x2912   :  { %16615 = vmatprep.mubr.msk.f32.mxu1 %vm17445_vm3, %v17444_v47 }
0x2913   :  { %v10795_v17 = vpop.trf.xlu0  ;;  %v10828_v6 = vpop.trf.xlu1 }
0x2914   :  { %16614 = vmatpush3.msra.mxu1 %v10795_v17 }
0x2915   :  { %16616 = vmatmul.mubr.msk.f32.vlgmr.msra.gmra.mrb[90].mxu1 %vm723_vm4, %v10562_v2  ;;  %16623 = vmatprep.subr.mxu1 %v17444_v47 }
0x2916   :  { %16625 = vmatprep.mubr.msk.f32.mxu1 %vm17445_vm3, %v17444_v47 }
0x2917   :  { %v10796_v4 = vpop.trf.xlu0  ;;  %v10829_v32 = vpop.trf.xlu1 }
0x2918   :  { %16619 = vmatpush3.msra.mxu0 %v10796_v4 }
0x2919   :  { %16621 = vmatmul.mubr.msk.f32.vlgmr.msra.gmra.mrb[78].mxu0 %vm723_vm4, %v10594_v22  ;;  %16628 = vmatprep.subr.mxu0 %v17444_v47  ;;  %v15595_v22 = vld [vmem:[%s19165_s4 + $0x26] ss:$0 sm:$0xff] }
0x291a   :  { %16629 = vmatpush3.msra.mxu0 %v10826_v63  ;;  %16630 = vmatprep.mubr.msk.f32.mxu0 %vm17445_vm3, %v17444_v47 }
0x291b   :  { %v10797_v5 = vpop.trf.xlu0  ;;  %16638 = vmatprep.subr.mxu0 %v17444_v47  ;;  %v10690_v16 = vpop.trf.xlu1 }
0x291c   :  { %16624 = vmatpush3.msra.mxu1 %v10797_v5 }
0x291d   :  { %16626 = vmatmul.mubr.msk.f32.vlgmr.msra.gmra.mrb[92].mxu1 %vm723_vm4, %v10626_v28  ;;  %16631 = vmatmul.mubr.msk.f32.vlgmr.msra.gmra.mrb[80].mxu0 %vm723_vm4, %v10658_v60 }
0x291e   :  { %16633 = vmatprep.subr.mxu1 %v17444_v47  ;;  %16635 = vmatprep.mubr.msk.f32.mxu1 %vm17445_vm3, %v17444_v47 }
0x291f   :  { %16634 = vmatpush3.msra.mxu1 %v10827_v3  ;;  %16639 = vmatpush3.msra.mxu0 %v10828_v6  ;;  %v10722_v7 = vpop.trf.xlu0 }
0x2920   :  { %16640 = vmatprep.mubr.msk.f32.mxu0 %vm17445_vm3, %v17444_v47  ;;  %16643 = vmatprep.subr.mxu1 %v17444_v47 }
0x2921   :  { %16636 = vmatmul.mubr.msk.f32.vlgmr.msra.gmra.mrb[94].mxu1 %vm723_vm4, %v10690_v16  ;;  %16641 = vmatmul.mubr.msk.f32.vlgmr.msra.gmra.mrb[82].mxu0 %vm723_vm4, %v10722_v7 }
0x2922   :  { %16644 = vmatpush3.msra.mxu1 %v10829_v32  ;;  %16645 = vmatprep.mubr.msk.f32.mxu1 %vm17445_vm3, %v17444_v47 }
0x2923   :  { %v10754_v36 = vpop.trf.xlu0  ;;  %16648 = vmatprep.subr.mxu0 %v17444_v47  ;;  %16650 = vmatprep.mubr.msk.f32.mxu0 %vm17445_vm3, %v17444_v47 }
0x2924   :  { %16653 = vmatprep.subr.mxu1 %v17444_v47 }
0x2925   :  { %16646 = vmatmul.mubr.msk.f32.vlgmr.msra.gmra.mrb[96].mxu1 %vm723_vm4, %v10754_v36 }
0x2926   :  { %16655 = vmatprep.mubr.msk.f32.mxu1 %vm17445_vm3, %v17444_v47 }
0x29e4   :  { %v10983_v15 = vpop.f32.mrb[88].mxu1 }
0x29e5   :  { %v10984_v10 = vadd.f32 %v18713_v12, %v10983_v15  ;;  %v16612_v59 = vpop.f32.mrb[89].mxu1 }
0x29e7   :  { %v11498_v9 = vsel %vm723_vm4, %v10984_v10, -inf }
0x29e8   :  { %11499 = vmax.xlane.f32.xlu0 %v11498_v9  ;;  %v11056_v19 = vpop.f32.mrb[90].mxu1 }
0x29e9   :  { %v18723_v35 = vadd.f32 %v18720_v23, %v11056_v19  ;;  %v16617_v48 = vpop.f32.mrb[91].mxu1 }
0x29eb   :  { %v11501_v20 = vsel %vm723_vm4, %v18723_v35, -inf }
0x29ec   :  { %11502 = vmax.xlane.f32.xlu1 %v11501_v20  ;;  %v11129_v14 = vpop.f32.mrb[78].mxu0 }
0x29ed   :  { %v11130_v29 = vadd.f32 %v18730_v18, %v11129_v14  ;;  %v16622_v11 = vpop.f32.mrb[79].mxu0 }
0x29ef   :  { %v11504_v52 = vsel %vm723_vm4, %v11130_v29, -inf }
0x29f0   :  { %11505 = vmax.xlane.f32.xlu1 %v11504_v52  ;;  %v11202_v27 = vpop.f32.mrb[92].mxu1  ;;  %v11275_v31 = vpop.f32.mrb[80].mxu0 }
0x29f1   :  { %v11203_v34 = vadd.f32 %v18737_v58, %v11202_v27  ;;  %v18746_v39 = vadd.f32 %v18743_v37, %v11275_v31  ;;  %v16627_v41 = vpop.f32.mrb[93].mxu1  ;;  %v16632_v62 = vpop.f32.mrb[81].mxu0 }
0x29f3   :  { %v11510_v49 = vsel %vm723_vm4, %v18746_v39, -inf  ;;  %v11507_v50 = vsel %vm723_vm4, %v11203_v34, -inf }
0x29f4   :  { %11511 = vmax.xlane.f32.xlu0 %v11510_v49  ;;  %11508 = vmax.xlane.f32.xlu1 %v11507_v50  ;;  %v11348_v45 = vpop.f32.mrb[94].mxu1  ;;  %v11421_v51 = vpop.f32.mrb[82].mxu0 }
0x29f5   :  { %v11349_v13 = vadd.f32 %v18754_v0, %v11348_v45  ;;  %v18763_v43 = vadd.f32 %v18760_v53, %v11421_v51  ;;  %v16642_v44 = vpop.f32.mrb[83].mxu0  ;;  %v16637_v54 = vpop.f32.mrb[95].mxu1 }
0x29f7   :  { %v11513_v55 = vsel %vm723_vm4, %v11349_v13, -inf  ;;  %v11516_v56 = vsel %vm723_vm4, %v18763_v43, -inf }
0x29f8   :  { %11514 = vmax.xlane.f32.xlu1 %v11513_v55  ;;  %11517 = vmax.xlane.f32.xlu0 %v11516_v56  ;;  %v11494_v1 = vpop.f32.mrb[96].mxu1 }
0x29f9   :  { %v11495_v60 = vadd.f32 %v18771_v57, %v11494_v1  ;;  %v16647_v61 = vpop.f32.mrb[97].mxu1 }
0x29fb   :  { %v11519_v2 = vsel %vm723_vm4, %v11495_v60, -inf }
0x29fc   :  { %11520 = vmax.xlane.f32.xlu1 %v11519_v2 }
0x2a0e   :  { %10445 = vrot.lane.b32.xlu0 %v15595_v22, %s17441_s15 }
0x2a75   :  { %v11500_v28 = vpop.xlane.xlu0 %11499 }
0x2a76   :  { %v11522_v63 = vsub.f32 %v10984_v10, %v11500_v28 }
0x2a78   :  { %v11530_v21 = vmul.f32 1.442695, %v11522_v63 }
0x2a79   :  { %v11503_v3 = vpop.xlane.xlu1 %11502 }
0x2a7a   :  { %17317 = vpow2.f32 %v11530_v21  ;;  %v11523_v50 = vsub.f32 %v18723_v35, %v11503_v3 }
0x2a7c   :  { %v11532_v45 = vmul.f32 1.442695, %v11523_v50 }
0x2a7d   :  { %v11506_v17 = vpop.xlane.xlu1 %11505 }
0x2a7e   :  { %v11524_v6 = vsub.f32 %v11130_v29, %v11506_v17 }
0x2a80   :  { %v11534_v4 = vmul.f32 1.442695, %v11524_v6 }
0x2a81   :  { %v11509_v32 = vpop.xlane.xlu1 %11508  ;;  %v11512_v5 = vpop.xlane.xlu0 %11511 }
0x2a82   :  { %17319 = vpow2.f32 %v11534_v4  ;;  %v11525_v16 = vsub.f32 %v11203_v34, %v11509_v32  ;;  %v11526_v51 = vsub.f32 %v18746_v39, %v11512_v5 }
0x2a84   :  { %v18779_v7 = vpop.eup %17317  ;;  %v11536_v36 = vmul.f32 1.442695, %v11525_v16 }
0x2a85   :  { %v11515_v15 = vpop.xlane.xlu1 %11514  ;;  %v11518_v59 = vpop.xlane.xlu0 %11517  ;;  %v11546_v9 = vsel %vm723_vm4, %v18779_v7, 0.0 }
0x2a86   :  { %17321 = vpow2.f32 %v11536_v36  ;;  %v11527_v10 = vsub.f32 %v11349_v13, %v11515_v15  ;;  %11547 = vadd.xlane.f32.xlu0 %v11546_v9  ;;  %v11538_v13 = vmul.f32 1.442695, %v11526_v51  ;;  %v11528_v44 = vsub.f32 %v18763_v43, %v11518_v59 }
0x2a88   :  { %v11540_v19 = vmul.f32 1.442695, %v11527_v10  ;;  %v11542_v54 = vmul.f32 1.442695, %v11528_v44 }
0x2a89   :  { %v11521_v48 = vpop.xlane.xlu1 %11520  ;;  %v10446_v20 = vpop.permute.xlu0 %10445 }
0x2a8a   :  { %17323 = vpow2.f32 %v11540_v19  ;;  %v11529_v14 = vsub.f32 %v11495_v60, %v11521_v48  ;;  %v10448_v29 = vadd.f32 %v10446_v20, %v18668_v46  ;;  %v10449_v31 = vadd.f32 %v18665_v42, %v10446_v20 }
0x2a8c   :  { %v18784_v11 = vpop.eup %17319  ;;  %v11544_v52 = vmul.f32 1.442695, %v11529_v14  ;;  %10844 = vrot.lane.b32.xlu1 %v10448_v29, %s17441_s15 }
0x2a8d   :  { %v11552_v27 = vsel %vm723_vm4, %v18784_v11, 0.0 }
0x2a8e   :  { %17325 = vpow2.f32 %v11544_v52  ;;  %11553 = vadd.xlane.f32.xlu0 %v11552_v27 }
0x2a8f   :  { %17327 = vpow2.f32 %v11532_v45 }
0x2a90   :  { %v18790_v34 = vpop.eup %17321  ;;  %10846 = vrot.lane.b32.xlu1 %v10449_v31, %s17441_s15  ;;  %17329 = vpow2.f32 %v11538_v13 }
0x2a91   :  { %v11555_v41 = vsel %vm723_vm4, %v18790_v34, 0.0  ;;  %17331 = vpow2.f32 %v11542_v54 }
0x2a92   :  { %11556 = vadd.xlane.f32.xlu0 %v11555_v41 }
0x2a94   :  { %v18795_v46 = vpop.eup %17323 }
0x2a95   :  { %v11561_v62 = vsel %vm723_vm4, %v18795_v46, 0.0 }
0x2a96   :  { %11562 = vadd.xlane.f32.xlu0 %v11561_v62 }
0x2a98   :  { %v18799_v49 = vpop.eup %17325 }
0x2a99   :  { %v11567_v42 = vsel %vm723_vm4, %v18799_v49, 0.0  ;;  %v17328_v55 = vpop.eup %17327 }
0x2a9a   :  { %11568 = vadd.xlane.f32.xlu0 %v11567_v42  ;;  %v11549_v56 = vsel %vm723_vm4, %v17328_v55, 0.0  ;;  %v17330_v1 = vpop.eup %17329 }
0x2a9b   :  { %v11558_v60 = vsel %vm723_vm4, %v17330_v1, 0.0  ;;  %v18808_v61 = vpop.eup %17331 }
0x2a9c   :  { %v11564_v35 = vsel %vm723_vm4, %v18808_v61, 0.0 }
0x2ab4   :  { %11550 = vadd.xlane.f32.xlu1 %v11549_v56 }
0x2ab8   :  { %11559 = vadd.xlane.f32.xlu1 %v11558_v60 }
0x2abc   :  { %11565 = vadd.xlane.f32.xlu1 %v11564_v35 }
0x2afe   :  { %v10845_v39 = vpop.permute.xlu1 %10844 }
0x2aff   :  { %10850 = vxpose.xlu1.b32.start.end [1/1] (short) (narrow) %v10845_v39, 32 }
0x2b02   :  { %v10847_v43 = vpop.permute.xlu1 %10846 }
0x2b03   :  { %10882 = vxpose.xlu0.b32.start.end [1/1] (short) (narrow) %v10847_v43, 32 }
0x2b13   :  { %v11548_v2 = vpop.xlane.xlu0 %11547 }
0x2b14   :  { %17333 = vrcp.f32 %v11548_v2 }
0x2b1b   :  { %v11554_v22 = vpop.xlane.xlu0 %11553 }
0x2b1e   :  { %v17334_v6 = vpop.eup %17333 }
0x2b1f   :  { %v11557_v63 = vpop.xlane.xlu0 %11556  ;;  %v11578_v5 = vmul.f32 %v17334_v6, %v18779_v7 }
0x2b23   :  { %v11563_v3 = vpop.xlane.xlu0 %11562 }
0x2b27   :  { %v11569_v4 = vpop.xlane.xlu0 %11568 }
0x2b41   :  { %v11551_v28 = vpop.xlane.xlu1 %11550 }
0x2b42   :  { %17335 = vrcp.f32 %v11551_v28  ;;  %v15588_v28 = vld [vmem:[%s19163_s2 + $0x188] sm:$0xff] }
0x2b43   :  { %17337 = vrcp.f32 %v11554_v22  ;;  %v15587_v22 = vld [vmem:[%s19163_s2 + $0x180] sm:$0xff] }
0x2b44   :  { %17339 = vrcp.f32 %v11557_v63  ;;  %v15589_v63 = vld [vmem:[%s19163_s2 + $0x190] sm:$0xff] }
0x2b45   :  { %v11560_v21 = vpop.xlane.xlu1 %11559 }
0x2b46   :  { %17341 = vrcp.f32 %v11560_v21  ;;  %v17029_v21 = vpack.c.bf16 %v15588_v28, %v15587_v22 }
0x2b47   :  { %17343 = vrcp.f32 %v11563_v3  ;;  %v15590_v3 = vld [vmem:[%s19163_s2 + $0x198] sm:$0xff] }
0x2b49   :  { %v11566_v17 = vpop.xlane.xlu1 %11565 }
0x2b4a   :  { %17345 = vrcp.f32 %v11566_v17  ;;  %v17033_v17 = vpack.c.bf16 %v15590_v3, %v15589_v63 }
0x2b4b   :  { %17347 = vrcp.f32 %v11569_v4 }
0x2b4c   :  { %v17336_v16 = vpop.eup %17335 }
0x2b4d   :  { %v11579_v59 = vmul.f32 %v17336_v16, %v17328_v55  ;;  %v17338_v9 = vpop.eup %17337 }
0x2b4e   :  { %v17340_v19 = vpop.eup %17339  ;;  %v11580_v48 = vmul.f32 %v17338_v9, %v18784_v11 }
0x2b4f   :  { %v11581_v31 = vmul.f32 %v17340_v19, %v18790_v34 }
0x2b50   :  { %v17342_v20 = vpop.eup %17341 }
0x2b51   :  { %v17344_v52 = vpop.eup %17343  ;;  %v11582_v27 = vmul.f32 %v17342_v20, %v17330_v1 }
0x2b52   :  { %v11583_v41 = vmul.f32 %v17344_v52, %v18795_v46 }
0x2b54   :  { %v17346_v11 = vpop.eup %17345 }
0x2b55   :  { %v11584_v62 = vmul.f32 %v17346_v11, %v18808_v61  ;;  %v17348_v42 = vpop.eup %17347  ;;  %v15628_v11 = vld [vmem:[%s19163_s2 + $0x1b8] sm:$0xff] }
0x2b56   :  { %v11585_v46 = vmul.f32 %v17348_v42, %v18799_v49 }
0x2b7f   :  { %v10866_v32 = vpop.trf.xlu1 }
0x2b80   :  { %16649 = vmatpush3.xpose.msk.msra.mxu0 %vm723_vm4, %v10866_v32 }
0x2b81   :  { %16658 = vmatprep.subr.mxu0 %v17444_v47 }
0x2b83   :  { %v10867_v36 = vpop.trf.xlu1  ;;  %16651 = vmatmul.mubr.msk.f32.vlgmr.msra.gmra.mrb[84].mxu0 %vm723_vm4, %v11578_v5  ;;  %v10898_v15 = vpop.trf.xlu0 }
0x2b84   :  { %16654 = vmatpush3.xpose.msk.msra.mxu1 %vm723_vm4, %v10867_v36  ;;  %16660 = vmatprep.mubr.msk.f32.mxu0 %vm17445_vm3, %v17444_v47 }
0x2b85   :  { %16663 = vmatprep.subr.mxu1 %v17444_v47 }
0x2b87   :  { %16656 = vmatmul.mubr.msk.f32.vlgmr.msra.gmra.mrb[98].mxu1 %vm723_vm4, %v11579_v59  ;;  %v10868_v7 = vpop.trf.xlu1  ;;  %v10899_v10 = vpop.trf.xlu0 }
0x2b88   :  { %16659 = vmatpush3.xpose.msk.msra.mxu0 %vm723_vm4, %v10868_v7  ;;  %16665 = vmatprep.mubr.msk.f32.mxu1 %vm17445_vm3, %v17444_v47 }
0x2b89   :  { %16668 = vmatprep.subr.mxu0 %v17444_v47 }
0x2b8b   :  { %v10869_v14 = vpop.trf.xlu1  ;;  %16661 = vmatmul.mubr.msk.f32.vlgmr.msra.gmra.mrb[86].mxu0 %vm723_vm4, %v11580_v48  ;;  %v10900_v29 = vpop.trf.xlu0 }
0x2b8c   :  { %16664 = vmatpush3.xpose.msk.msra.mxu1 %vm723_vm4, %v10869_v14  ;;  %16669 = vmatpush3.xpose.msk.msra.mxu0 %vm723_vm4, %v10898_v15 }
0x2b8d   :  { %16670 = vmatprep.mubr.msk.f32.mxu0 %vm17445_vm3, %v17444_v47  ;;  %16673 = vmatprep.subr.mxu1 %v17444_v47 }
0x2b8e   :  { %16678 = vmatprep.subr.mxu0 %v17444_v47 }
0x2b8f   :  { %16666 = vmatmul.mubr.msk.f32.vlgmr.msra.gmra.mrb[100].mxu1 %vm723_vm4, %v11581_v31  ;;  %16671 = vmatmul.mubr.msk.f32.vlgmr.msra.gmra.mrb[88].mxu0 %vm723_vm4, %v11582_v27  ;;  %v10901_v34 = vpop.trf.xlu0 }
0x2b90   :  { %16674 = vmatpush3.xpose.msk.msra.mxu1 %vm723_vm4, %v10899_v10  ;;  %16679 = vmatpush3.xpose.msk.msra.mxu0 %vm723_vm4, %v10900_v29  ;;  %v15620_v10 = vld [vmem:[%s19165_s4 + $0x27] ss:$0 sm:$0xff] }
0x2b91   :  { %16675 = vmatprep.mubr.msk.f32.mxu1 %vm17445_vm3, %v17444_v47  ;;  %16680 = vmatprep.mubr.msk.f32.mxu0 %vm17445_vm3, %v17444_v47 }
0x2b92   :  { %16683 = vmatprep.subr.mxu1 %v17444_v47  ;;  %17030 = vmatprep.subr.bf16.mxu0 %v17029_v21 }
0x2b93   :  { %16676 = vmatmul.mubr.msk.f32.vlgmr.msra.gmra.mrb[102].mxu1 %vm723_vm4, %v11583_v41  ;;  %16681 = vmatmul.mubr.msk.f32.vlgmr.msra.gmra.mrb[90].mxu0 %vm723_vm4, %v11584_v62 }
0x2b94   :  { %16684 = vmatpush3.xpose.msk.msra.mxu1 %vm723_vm4, %v10901_v34  ;;  %16685 = vmatprep.mubr.msk.f32.mxu1 %vm17445_vm3, %v17444_v47 }
0x2b95   :  { %17032 = vmatpush3.bf16.msra.mxu0 %v17029_v21 }
0x2b96   :  { %17034 = vmatprep.subr.bf16.mxu0 %v17033_v17 }
0x2b97   :  { %16686 = vmatmul.mubr.msk.f32.vlgmr.msra.gmra.mrb[104].mxu1 %vm723_vm4, %v11585_v46 }
0x2b99   :  { %17036 = vmatpush3.bf16.msra.mxu0 %v17033_v17 }
0x2c56   :  { %v11658_v50 = vpop.f32.mrb[84].mxu0 }
0x2c57   :  { %12194 = vxpose.xlu0.b32.start.end [1/1] (short) (narrow) %v11658_v50, 8  ;;  %v16652_v45 = vpop.f32.mrb[85].mxu0 }
0x2c5a   :  { %v11734_v51 = vpop.f32.mrb[98].mxu1 }
0x2c5b   :  { %v16657_v13 = vpop.f32.mrb[99].mxu1  ;;  %12226 = vxpose.xlu0.b32.start.end [1/1] (short) (narrow) %v11734_v51, 8 }
0x2c5e   :  { %v11810_v44 = vpop.f32.mrb[86].mxu0 }
0x2c5f   :  { %v16662_v54 = vpop.f32.mrb[87].mxu0 }
0x2c60   :  { %v15626_v54 = vld [vmem:[%s19163_s2 + $0x1a8] sm:$0xff] }
0x2c62   :  { %v11886_v55 = vpop.f32.mrb[100].mxu1  ;;  %v11962_v56 = vpop.f32.mrb[88].mxu0 }
0x2c63   :  { %v16667_v1 = vpop.f32.mrb[101].mxu1  ;;  %12322 = vxpose.xlu1.b32.start.end [1/1] (short) (narrow) %v11962_v56, 8  ;;  %v16672_v60 = vpop.f32.mrb[89].mxu0 }
0x2c66   :  { %v12038_v61 = vpop.f32.mrb[102].mxu1  ;;  %v12114_v35 = vpop.f32.mrb[90].mxu0 }
0x2c67   :  { %12258 = vxpose.xlu1.b32.start.end [1/1] (short) (narrow) %v11810_v44, 8  ;;  %12354 = vxpose.xlu0.b32.start.end [1/1] (short) (narrow) %v12038_v61, 8  ;;  %v16677_v49 = vpop.f32.mrb[103].mxu1  ;;  %v16682_v39 = vpop.f32.mrb[91].mxu0  ;;  %v15625_v44 = vld [vmem:[%s19163_s2 + $0x1a0] sm:$0xff] }
0x2c68   :  { %v17037_v56 = vpack.c.bf16 %v15626_v54, %v15625_v44 }
0x2c6a   :  { %v12190_v43 = vpop.f32.mrb[104].mxu1  ;;  %17038 = vmatprep.subr.bf16.mxu1 %v17037_v56 }
0x2c6b   :  { %12290 = vxpose.xlu1.b32.start.end [1/1] (short) (narrow) %v11886_v55, 8  ;;  %12386 = vxpose.xlu0.b32.start.end [1/1] (short) (narrow) %v12114_v35, 8  ;;  %v16687_v2 = vpop.f32.mrb[105].mxu1  ;;  %v17141_v55 = vpack.i.bf16 %v15626_v54, %v15625_v44 }
0x2c6c   :  { %17040 = vmatpush3.bf16.msra.mxu1 %v17037_v56 }
0x2c6f   :  { %12418 = vxpose.xlu0.b32.start.end [1/1] (short) (narrow) %v12190_v43, 8 }
0x2cd7   :  { %v12210_v6 = vpop.trf.xlu0 }
0x2cd8   :  { %12450 = vxpose.xlu1.b32.start [1/4] (short) (narrow) %v12210_v6, 8 }
0x2cdb   :  { %v12242_v4 = vpop.trf.xlu0 }
0x2cdc   :  { %12451 = vxpose.xlu1.b32.cont [2/4] (short) (narrow) %v12242_v4, 8 }
0x2ce3   :  { %v12338_v32 = vpop.trf.xlu1 }
0x2ce4   :  { %12482 = vxpose.xlu0.b32.start [1/4] (short) (narrow) %v12338_v32, 8 }
0x2ce7   :  { %v12370_v5 = vpop.trf.xlu0  ;;  %v12274_v16 = vpop.trf.xlu1 }
0x2ce8   :  { %12483 = vxpose.xlu0.b32.cont [2/4] (short) (narrow) %v12370_v5, 8  ;;  %12452 = vxpose.xlu1.b32.cont [3/4] (short) (narrow) %v12274_v16, 8 }
0x2ceb   :  { %v12402_v36 = vpop.trf.xlu0  ;;  %v12306_v15 = vpop.trf.xlu1 }
0x2cec   :  { %12484 = vxpose.xlu0.b32.cont [3/4] (short) (narrow) %v12402_v36, 8  ;;  %12453 = vxpose.xlu1.b32.end [4/4] (short) (narrow) %v12306_v15, 8  ;;  %v15623_v15 = vld [vmem:[%s19165_s4 + $0x2e] ss:$0 sm:$0xff] }
0x2cef   :  { %v12434_v59 = vpop.trf.xlu0 }
0x2cf0   :  { %12485 = vxpose.xlu0.b32.end [4/4] (short) (narrow) %v12434_v59, 8 }
0x2d60   :  { %v12466_v9 = vpop.trf.xlu1 }
0x2d61   :  { %16696 = vmatprep.mubr.msk.f32.mxu0 %vm68_vm1, %v12466_v9  ;;  %v15624_v9 = vld [vmem:[%s19165_s4 + $0x2f] ss:$0 sm:$0xff] }
0x2d64   :  { %v12498_v7 = vpop.trf.xlu0 }
0x2d65   :  { %16697 = vmatmul.mubr.msk.f32.vlgmr.msra.gmra.mrb[92].mxu0 %vm68_vm1, %v12498_v7 }
0x2d66   :  { %16718 = vmatprep.mubr.msk.f32.mxu0 %vm68_vm1, %v18368_v30  ;;  %v15627_v30 = vld [vmem:[%s19163_s2 + $0x1b0] sm:$0xff] }
0x2d67   :  { %v17146_v41 = vpack.i.bf16 %v15628_v11, %v15627_v30  ;;  %v17041_v1 = vpack.c.bf16 %v15628_v11, %v15627_v30 }
0x2d69   :  { %17042 = vmatprep.subr.bf16.mxu1 %v17041_v1 }
0x2d6a   :  { %17044 = vmatpush3.bf16.msra.mxu1 %v17041_v1 }
0x2e38   :  { %v16698_v19 = vpop.f32.mrb[92].mxu0 }
0x2e39   :  { %v12596_v48 = vadd.f32 %v16698_v19, %v15620_v10  ;;  %v12590_v20 = vpop.f32.mrb[93].mxu0 }
0x2e3a   :  { %v12591_v14 = vadd.f32 %v15620_v10, %v12590_v20 }
0x2e3b   :  { %v12600_v29 = vadd.f32 %v12596_v48, %v18659_v8 }
0x2e3c   :  { %v12599_v52 = vadd.f32 %v12591_v14, %v18652_v40 }
0x2e3d   :  { %v12606_v27 = vsel %vm68_vm1, %v12600_v29, 0.0 }
0x2e3e   :  { %12607 = vadd.xlane.f32.xlu0 %v12606_v27  ;;  %v12603_v31 = vsel %vm68_vm1, %v12599_v52, 0.0 }
0x2e3f   :  { %12604 = vadd.xlane.f32.xlu1 %v12603_v31 }
0x2e54   :  { %17147 = vrot.lane.b32.xlu0 %v17146_v41, %s17443_s21 }
0x2e58   :  { %17157 = vrot.lane.b32.xlu0 %v17146_v41, %s17441_s15 }
0x2ecb   :  { %v12608_v40 = vpop.xlane.xlu0 %12607 }
0x2ecc   :  { %v12610_v8 = vmul.f32 0.03125, %v12608_v40  ;;  %v12605_v62 = vpop.xlane.xlu1 %12604  ;;  %v15633_v40 = vld [vmem:[%s19165_s4 + $0x28] ss:$0 sm:$0xff] }
0x2ecd   :  { %v12609_v34 = vmul.f32 0.03125, %v12605_v62 }
0x2ece   :  { %v12612_v42 = vsub.f32 %v12600_v29, %v12610_v8 }
0x2ecf   :  { %v12611_v46 = vsub.f32 %v12599_v52, %v12609_v34  ;;  %v17148_v39 = vpop.permute.xlu0 %17147 }
0x2ed0   :  { %v12614_v51 = vmul.f32 %v12612_v42, %v12612_v42  ;;  %v17150_v22 = vunpack.i.h.bf16 %v17148_v39  ;;  %v17149_v28 = vunpack.i.l.bf16 %v17148_v39 }
0x2ed1   :  { %v12613_v50 = vmul.f32 %v12611_v46, %v12611_v46 }
0x2ed2   :  { %v12618_v13 = vsel %vm68_vm1, %v12614_v51, 0.0  ;;  %v17049_v6 = vpack.c.bf16 %v17150_v22, %v17149_v28 }
0x2ed3   :  { %v12615_v45 = vsel %vm68_vm1, %v12613_v50, 0.0  ;;  %v17158_v7 = vpop.permute.xlu0 %17157 }
0x2ed4   :  { %12616 = vadd.xlane.f32.xlu1 %v12615_v45  ;;  %v17160_v14 = vunpack.i.h.bf16 %v17158_v7  ;;  %v17159_v29 = vunpack.i.l.bf16 %v17158_v7 }
0x2ed6   :  { %v17057_v31 = vpack.c.bf16 %v17160_v14, %v17159_v29 }
0x2ed8   :  { %12619 = vadd.xlane.f32.xlu1 %v12618_v13 }
0x2ee9   :  { %17142 = vrot.lane.b32.xlu1 %v17141_v55, %s17443_s21 }
0x2eed   :  { %17152 = vrot.lane.b32.xlu1 %v17141_v55, %s17441_s15  ;;  %s17446_s15 = smov [#allocation2]  }
0x2eee   :  { %s15340_s21 = sshll.u32 %s17446_s15, 4  ;;  %s15341_s21 = int_to_ptr.vmem [resolvable:$true] %s15340_s21 }
0x2eef   :  { %p17422_p1 = scmp.lt.s32.totalorder %s15341_s21, %s15341_s21 }
0x2f61   :  { %v12617_v60 = vpop.xlane.xlu1 %12616 }
0x2f62   :  { %v12621_v61 = vmul.f32 0.03125, %v12617_v60 }
0x2f64   :  { %v12623_v35 = vadd.f32 1e-05, %v12621_v61 }
0x2f65   :  { %v12620_v49 = vpop.xlane.xlu1 %12619 }
0x2f66   :  { %17349 = vrsqrt.f32 %v12623_v35  ;;  %v12622_v43 = vmul.f32 0.03125, %v12620_v49 }
0x2f68   :  { %v12624_v2 = vadd.f32 1e-05, %v12622_v43 }
0x2f69   :  { %v17143_v63 = vpop.permute.xlu1 %17142 }
0x2f6a   :  { %17351 = vrsqrt.f32 %v12624_v2  ;;  %v17145_v21 = vunpack.i.h.bf16 %v17143_v63  ;;  %v17144_v3 = vunpack.i.l.bf16 %v17143_v63 }
0x2f6c   :  { %v17045_v17 = vpack.c.bf16 %v17145_v21, %v17144_v3 }
0x2f6d   :  { %v17153_v4 = vpop.permute.xlu1 %17152 }
0x2f6e   :  { %17046 = vmatprep.subr.bf16.mxu0 %v17045_v17  ;;  %v17155_v32 = vunpack.i.h.bf16 %v17153_v4  ;;  %v17154_v5 = vunpack.i.l.bf16 %v17153_v4 }
0x2f6f   :  { %17048 = vmatpush3.bf16.msra.mxu0 %v17045_v17 }
0x2f70   :  { %v17350_v16 = vpop.eup %17349  ;;  %17050 = vmatprep.subr.bf16.mxu0 %v17049_v6  ;;  %v17053_v36 = vpack.c.bf16 %v17155_v32, %v17154_v5 }
0x2f71   :  { %v12627_v59 = vmul.f32 %v17350_v16, %v12611_v46 }
0x2f72   :  { %17054 = vmatprep.subr.bf16.mxu1 %v17053_v36 }
0x2f73   :  { %17052 = vmatpush3.bf16.msra.mxu0 %v17049_v6  ;;  %v12633_v10 = vmul.f32 %v15623_v15, %v12627_v59 }
0x2f74   :  { %v17352_v19 = vpop.eup %17351  ;;  %16732 = vmatprep.subr.mxu0 %v17444_v47 }
0x2f75   :  { %v12628_v48 = vmul.f32 %v17352_v19, %v12612_v42  ;;  %v18900_v20 = vadd.f32 %v15624_v9, %v12633_v10 }
0x2f76   :  { %16719 = vmatmul.mubr.msk.f32.vlgmr.msra.gmra.mrb[94].mxu0 %vm68_vm1, %v18379_v33  ;;  %v15636_v33 = vld [vmem:[%s19165_s4 + $0x29] ss:$0 sm:$0xff] }
0x2f77   :  { %v12634_v52 = vmul.f32 %v15623_v15, %v12628_v48  ;;  %16707 = vmatprep.mubr.msk.f32.mxu1 %vm68_vm1, %v18900_v20  ;;  %16734 = vmatprep.mubr.msk.f32.mxu0 %vm17445_vm3, %v17444_v47 }
0x2f79   :  { %v18908_v27 = vadd.f32 %v15624_v9, %v12634_v52 }
0x2f7b   :  { %16708 = vmatmul.mubr.msk.f32.vlgmr.msra.gmra.mrb[106].mxu1 %vm68_vm1, %v18908_v27 }
0x2f7c   :  { %17056 = vmatpush3.bf16.msra.mxu1 %v17053_v36  ;;  %16729 = vmatprep.mubr.msk.f32.mxu1 %vm68_vm1, %v18360_v26 }
0x2f7d   :  { %17058 = vmatprep.subr.bf16.mxu1 %v17057_v31 }
0x2f80   :  { %17060 = vmatpush3.bf16.msra.mxu1 %v17057_v31 }
0x2f81   :  { %16737 = vmatprep.subr.mxu1 %v17444_v47 }
0x2f83   :  { %16730 = vmatmul.mubr.msk.f32.vlgmr.msra.gmra.mrb[108].mxu1 %vm68_vm1, %v18372_v24 }
0x2f84   :  { %16739 = vmatprep.mubr.msk.f32.mxu1 %vm17445_vm3, %v17444_v47 }
0x3049   :  { %v16720_v30 = vpop.f32.mrb[94].mxu0 }
0x304a   :  { %v12832_v11 = vadd.f32 %v16720_v30, %v15636_v33  ;;  %v12826_v41 = vpop.f32.mrb[95].mxu0 }
0x304b   :  { %v12827_v45 = vadd.f32 %v15636_v33, %v12826_v41 }
0x304e   :  { %v16709_v8 = vpop.f32.mrb[106].mxu1 }
0x304f   :  { %v12737_v62 = vadd.f32 %v16709_v8, %v15633_v40  ;;  %v12731_v34 = vpop.f32.mrb[107].mxu1 }
0x3050   :  { %v12732_v42 = vadd.f32 %v15633_v40, %v12731_v34 }
0x3051   :  { %12958 = vxpose.xlu0.b32.start.end [1/1] (short) (narrow) %v12737_v62, 32 }
0x3052   :  { %12926 = vxpose.xlu1.b32.start.end [1/1] (short) (narrow) %v12732_v42, 32 }
0x3056   :  { %v18925_v46 = vpop.f32.mrb[108].mxu1 }
0x3057   :  { %v18927_v50 = vpop.f32.mrb[109].mxu1 }
0x305e   :  { %13246 = vxpose.xlu0.b32.start.end [1/1] (short) (narrow) %v12827_v45, 32 }
0x30d1   :  { %v12974_v51 = vpop.trf.xlu0 }
0x30d2   :  { %v12942_v13 = vpop.trf.xlu1 }
0x30d3   :  { %12990 = vxpose.xlu1.b32.start.end [1/1] (short) (narrow) %v12942_v13, 8 }
0x30d5   :  { %v12975_v44 = vpop.trf.xlu0 }
0x30d6   :  { %v12943_v54 = vpop.trf.xlu1 }
0x30d7   :  { %13118 = vxpose.xlu1.b32.start.end [1/1] (short) (narrow) %v12974_v51, 8  ;;  %13022 = vxpose.xlu0.b32.start.end [1/1] (short) (narrow) %v12943_v54, 8 }
0x30d9   :  { %v12976_v55 = vpop.trf.xlu0 }
0x30da   :  { %v12944_v56 = vpop.trf.xlu1 }
0x30db   :  { %13054 = vxpose.xlu1.b32.start.end [1/1] (short) (narrow) %v12944_v56, 8  ;;  %13278 = vxpose.xlu0.b32.start.end [1/1] (short) (narrow) %v12832_v11, 32 }
0x30dd   :  { %v12977_v1 = vpop.trf.xlu0 }
0x30de   :  { %v12945_v60 = vpop.trf.xlu1 }
0x30df   :  { %13086 = vxpose.xlu1.b32.start.end [1/1] (short) (narrow) %v12945_v60, 8 }
0x30e1   :  { %v13262_v61 = vpop.trf.xlu0 }
0x30e2   :  { %16733 = vmatpush3.msra.mxu0 %v13262_v61 }
0x30e3   :  { %13182 = vxpose.xlu1.b32.start.end [1/1] (short) (narrow) %v12976_v55, 8  ;;  %16742 = vmatprep.subr.mxu0 %v17444_v47 }
0x30e5   :  { %v13263_v35 = vpop.trf.xlu0 }
0x30e6   :  { %16738 = vmatpush3.msra.mxu1 %v13263_v35 }
0x30e7   :  { %13214 = vxpose.xlu1.b32.start.end [1/1] (short) (narrow) %v12977_v1, 8  ;;  %16747 = vmatprep.subr.mxu1 %v17444_v47 }
0x30e8   :  { %13150 = vxpose.xlu0.b32.start.end [1/1] (short) (narrow) %v12975_v44, 8 }
0x30e9   :  { %v13264_v49 = vpop.trf.xlu0 }
0x30ed   :  { %v13265_v39 = vpop.trf.xlu0 }
0x3153   :  { %v13006_v43 = vpop.trf.xlu1 }
0x3154   :  { %16735 = vmatmul.mubr.msk.f32.vlgmr.msra.gmra.mrb[96].mxu0 %vm723_vm4, %v13006_v43 }
0x3155   :  { %16743 = vmatpush3.msra.mxu0 %v13264_v49  ;;  %16744 = vmatprep.mubr.msk.f32.mxu0 %vm17445_vm3, %v17444_v47 }
0x3156   :  { %16752 = vmatprep.subr.mxu0 %v17444_v47 }
0x3157   :  { %v13134_v2 = vpop.trf.xlu1  ;;  %v13038_v22 = vpop.trf.xlu0 }
0x3158   :  { %16740 = vmatmul.mubr.msk.f32.vlgmr.msra.gmra.mrb[110].mxu1 %vm723_vm4, %v13038_v22 }
0x3159   :  { %16748 = vmatpush3.msra.mxu1 %v13265_v39  ;;  %16749 = vmatprep.mubr.msk.f32.mxu1 %vm17445_vm3, %v17444_v47 }
0x315a   :  { %16757 = vmatprep.subr.mxu1 %v17444_v47 }
0x315b   :  { %v13070_v28 = vpop.trf.xlu1  ;;  %v13294_v63 = vpop.trf.xlu0 }
0x315c   :  { %16745 = vmatmul.mubr.msk.f32.vlgmr.msra.gmra.mrb[98].mxu0 %vm723_vm4, %v13070_v28 }
0x315d   :  { %16753 = vmatpush3.msra.mxu0 %v13294_v63  ;;  %16754 = vmatprep.mubr.msk.f32.mxu0 %vm17445_vm3, %v17444_v47 }
0x315e   :  { %16762 = vmatprep.subr.mxu0 %v17444_v47 }
0x315f   :  { %v13102_v21 = vpop.trf.xlu1  ;;  %v13295_v3 = vpop.trf.xlu0 }
0x3160   :  { %16750 = vmatmul.mubr.msk.f32.vlgmr.msra.gmra.mrb[112].mxu1 %vm723_vm4, %v13102_v21  ;;  %16755 = vmatmul.mubr.msk.f32.vlgmr.msra.gmra.mrb[100].mxu0 %vm723_vm4, %v13134_v2 }
0x3161   :  { %16758 = vmatpush3.msra.mxu1 %v13295_v3  ;;  %16764 = vmatprep.mubr.msk.f32.mxu0 %vm17445_vm3, %v17444_v47 }
0x3162   :  { %16759 = vmatprep.mubr.msk.f32.mxu1 %vm17445_vm3, %v17444_v47  ;;  %16767 = vmatprep.subr.mxu1 %v17444_v47 }
0x3163   :  { %v13296_v17 = vpop.trf.xlu0  ;;  %v13198_v6 = vpop.trf.xlu1 }
0x3164   :  { %16763 = vmatpush3.msra.mxu0 %v13296_v17 }
0x3165   :  { %16765 = vmatmul.mubr.msk.f32.vlgmr.msra.gmra.mrb[102].mxu0 %vm723_vm4, %v13198_v6  ;;  %16772 = vmatprep.subr.mxu0 %v17444_v47 }
0x3166   :  { %16774 = vmatprep.mubr.msk.f32.mxu0 %vm17445_vm3, %v17444_v47 }
0x3167   :  { %v13297_v4 = vpop.trf.xlu0  ;;  %v13230_v5 = vpop.trf.xlu1 }
0x316b   :  { %v13166_v32 = vpop.trf.xlu0 }
0x316c   :  { %16760 = vmatmul.mubr.msk.f32.vlgmr.msra.gmra.mrb[114].mxu1 %vm723_vm4, %v13166_v32 }
0x316d   :  { %16768 = vmatpush3.msra.mxu1 %v13297_v4  ;;  %16769 = vmatprep.mubr.msk.f32.mxu1 %vm17445_vm3, %v17444_v47 }
0x316e   :  { %16777 = vmatprep.subr.mxu1 %v17444_v47 }
0x3170   :  { %16770 = vmatmul.mubr.msk.f32.vlgmr.msra.gmra.mrb[116].mxu1 %vm723_vm4, %v13230_v5 }
0x3171   :  { %16779 = vmatprep.mubr.msk.f32.mxu1 %vm17445_vm3, %v17444_v47 }
0x3227   :  { %v13443_v16 = vpop.f32.mrb[96].mxu0 }
0x3228   :  { %v13444_v36 = vadd.f32 %v18713_v12, %v13443_v16  ;;  %v16736_v15 = vpop.f32.mrb[97].mxu0 }
0x322a   :  { %v13958_v59 = vsel %vm723_vm4, %v13444_v36, -inf }
0x322b   :  { %13959 = vmax.xlane.f32.xlu1 %v13958_v59  ;;  %v13516_v9 = vpop.f32.mrb[110].mxu1 }
0x322c   :  { %v13517_v7 = vadd.f32 %v18720_v23, %v13516_v9  ;;  %v16741_v10 = vpop.f32.mrb[111].mxu1 }
0x322e   :  { %v13961_v19 = vsel %vm723_vm4, %v13517_v7, -inf }
0x322f   :  { %v13589_v48 = vpop.f32.mrb[98].mxu0  ;;  %13962 = vmax.xlane.f32.xlu0 %v13961_v19 }
0x3230   :  { %v13590_v14 = vadd.f32 %v18730_v18, %v13589_v48  ;;  %v16746_v29 = vpop.f32.mrb[99].mxu0 }
0x3232   :  { %v13964_v52 = vsel %vm723_vm4, %v13590_v14, -inf }
0x3233   :  { %13965 = vmax.xlane.f32.xlu1 %v13964_v52  ;;  %v13662_v31 = vpop.f32.mrb[112].mxu1  ;;  %v13735_v12 = vpop.f32.mrb[100].mxu0 }
0x3234   :  { %v13663_v33 = vadd.f32 %v18737_v58, %v13662_v31  ;;  %v16756_v30 = vpop.f32.mrb[101].mxu0  ;;  %v16751_v11 = vpop.f32.mrb[113].mxu1  ;;  %v13736_v41 = vadd.f32 %v18743_v37, %v13735_v12 }
0x3236   :  { %v13967_v23 = vsel %vm723_vm4, %v13663_v33, -inf  ;;  %v13970_v18 = vsel %vm723_vm4, %v13736_v41, -inf }
0x3237   :  { %13968 = vmax.xlane.f32.xlu1 %v13967_v23 }
0x3238   :  { %v13881_v40 = vpop.f32.mrb[102].mxu0 }
0x3239   :  { %v13882_v8 = vadd.f32 %v18760_v53, %v13881_v40  ;;  %v16766_v62 = vpop.f32.mrb[103].mxu0 }
0x323b   :  { %13971 = vmax.xlane.f32.xlu1 %v13970_v18  ;;  %v13976_v34 = vsel %vm723_vm4, %v13882_v8, -inf }
0x323f   :  { %13977 = vmax.xlane.f32.xlu1 %v13976_v34  ;;  %v13808_v42 = vpop.f32.mrb[114].mxu1 }
0x3240   :  { %v13809_v58 = vadd.f32 %v18754_v0, %v13808_v42  ;;  %v16761_v45 = vpop.f32.mrb[115].mxu1 }
0x3242   :  { %v13973_v51 = vsel %vm723_vm4, %v13809_v58, -inf }
0x3243   :  { %13974 = vmax.xlane.f32.xlu0 %v13973_v51  ;;  %v13954_v37 = vpop.f32.mrb[116].mxu1 }
0x3244   :  { %v13955_v13 = vadd.f32 %v18771_v57, %v13954_v37  ;;  %v16771_v44 = vpop.f32.mrb[117].mxu1 }
0x3246   :  { %v13979_v53 = vsel %vm723_vm4, %v13955_v13, -inf }
0x3247   :  { %13980 = vmax.xlane.f32.xlu0 %v13979_v53 }
0x32b8   :  { %v13960_v54 = vpop.xlane.xlu1 %13959 }
0x32b9   :  { %v13982_v55 = vsub.f32 %v13444_v36, %v13960_v54 }
0x32bb   :  { %v13990_v56 = vmul.f32 1.442695, %v13982_v55 }
0x32bc   :  { %v13963_v1 = vpop.xlane.xlu0 %13962 }
0x32bd   :  { %17353 = vpow2.f32 %v13990_v56  ;;  %v13983_v60 = vsub.f32 %v13517_v7, %v13963_v1 }
0x32bf   :  { %v13992_v61 = vmul.f32 1.442695, %v13983_v60 }
0x32c0   :  { %v13966_v35 = vpop.xlane.xlu1 %13965 }
0x32c1   :  { %17355 = vpow2.f32 %v13992_v61  ;;  %v13984_v0 = vsub.f32 %v13590_v14, %v13966_v35 }
0x32c3   :  { %v13994_v49 = vmul.f32 1.442695, %v13984_v0 }
0x32c4   :  { %v13969_v39 = vpop.xlane.xlu1 %13968 }
0x32c5   :  { %17357 = vpow2.f32 %v13994_v49  ;;  %v13985_v43 = vsub.f32 %v13663_v33, %v13969_v39 }
0x32c7   :  { %v18977_v2 = vpop.eup %17353  ;;  %v13996_v57 = vmul.f32 1.442695, %v13985_v43 }
0x32c8   :  { %v13972_v22 = vpop.xlane.xlu1 %13971  ;;  %v14006_v28 = vsel %vm723_vm4, %v18977_v2, 0.0 }
0x32c9   :  { %17359 = vpow2.f32 %v13996_v57  ;;  %v13986_v63 = vsub.f32 %v13736_v41, %v13972_v22  ;;  %14007 = vadd.xlane.f32.xlu1 %v14006_v28  ;;  %v15639_v41 = vld [vmem:[%s19165_s4 + $0x2a] ss:$0 sm:$0xff] }
0x32ca   :  { %v12918_v23 = vadd.f32 %v15639_v41, %v18927_v50  ;;  %v12923_v40 = vadd.f32 %v18925_v46, %v15639_v41 }
0x32cb   :  { %v18981_v21 = vpop.eup %17355  ;;  %v13998_v3 = vmul.f32 1.442695, %v13986_v63 }
0x32cc   :  { %v13978_v17 = vpop.xlane.xlu1 %13977  ;;  %v14009_v6 = vsel %vm723_vm4, %v18981_v21, 0.0 }
0x32cd   :  { %17361 = vpow2.f32 %v13998_v3  ;;  %v13988_v4 = vsub.f32 %v13882_v8, %v13978_v17  ;;  %14010 = vadd.xlane.f32.xlu0 %v14009_v6 }
0x32cf   :  { %v18985_v32 = vpop.eup %17357  ;;  %v14002_v5 = vmul.f32 1.442695, %v13988_v4 }
0x32d0   :  { %v13975_v16 = vpop.xlane.xlu0 %13974  ;;  %v14012_v36 = vsel %vm723_vm4, %v18985_v32, 0.0 }
0x32d1   :  { %17363 = vpow2.f32 %v14002_v5  ;;  %v13987_v15 = vsub.f32 %v13809_v58, %v13975_v16  ;;  %14013 = vadd.xlane.f32.xlu1 %v14012_v36 }
0x32d3   :  { %v18989_v59 = vpop.eup %17359  ;;  %v14000_v9 = vmul.f32 1.442695, %v13987_v15 }
0x32d4   :  { %v13981_v7 = vpop.xlane.xlu0 %13980  ;;  %v14015_v10 = vsel %vm723_vm4, %v18989_v59, 0.0 }
0x32d5   :  { %17365 = vpow2.f32 %v14000_v9  ;;  %v13989_v19 = vsub.f32 %v13955_v13, %v13981_v7  ;;  %14016 = vadd.xlane.f32.xlu0 %v14015_v10 }
0x32d7   :  { %v18993_v48 = vpop.eup %17361  ;;  %v14004_v14 = vmul.f32 1.442695, %v13989_v19 }
0x32d8   :  { %v14018_v29 = vsel %vm723_vm4, %v18993_v48, 0.0 }
0x32d9   :  { %17367 = vpow2.f32 %v14004_v14  ;;  %14019 = vadd.xlane.f32.xlu1 %v14018_v29  ;;  %v15629_v29 = vld [vmem:[%s19163_s2 + $0x1c0] sm:$0xff] }
0x32db   :  { %v18997_v52 = vpop.eup %17363 }
0x32dc   :  { %v14024_v31 = vsel %vm723_vm4, %v18997_v52, 0.0 }
0x32dd   :  { %14025 = vadd.xlane.f32.xlu1 %v14024_v31  ;;  %v15631_v31 = vld [vmem:[%s19163_s2 + $0x1d0] sm:$0xff] }
0x32df   :  { %v19001_v12 = vpop.eup %17365 }
0x32e0   :  { %v14021_v33 = vsel %vm723_vm4, %v19001_v12, 0.0 }
0x32e1   :  { %14022 = vadd.xlane.f32.xlu0 %v14021_v33  ;;  %v15632_v33 = vld [vmem:[%s19163_s2 + $0x1d8] sm:$0xff] }
0x32e3   :  { %v19005_v30 = vpop.eup %17367 }
0x32e4   :  { %v14027_v11 = vsel %vm723_vm4, %v19005_v30, 0.0 }
0x32e5   :  { %14028 = vadd.xlane.f32.xlu0 %v14027_v11 }
0x3310   :  { %13310 = vxpose.xlu1.b32.start.end [1/1] (short) (narrow) %v12918_v23, 32 }
0x3312   :  { %13342 = vxpose.xlu0.b32.start.end [1/1] (short) (narrow) %v12923_v40, 32 }
0x3356   :  { %v14008_v8 = vpop.xlane.xlu1 %14007 }
0x3357   :  { %17369 = vrcp.f32 %v14008_v8 }
0x335a   :  { %v14011_v62 = vpop.xlane.xlu0 %14010 }
0x335b   :  { %17371 = vrcp.f32 %v14011_v62 }
0x335e   :  { %v14014_v18 = vpop.xlane.xlu1 %14013 }
0x335f   :  { %17373 = vrcp.f32 %v14014_v18 }
0x3361   :  { %v17370_v37 = vpop.eup %17369 }
0x3362   :  { %v14017_v34 = vpop.xlane.xlu0 %14016  ;;  %v14038_v46 = vmul.f32 %v17370_v37, %v18977_v2 }
0x3363   :  { %17375 = vrcp.f32 %v14017_v34 }
0x3365   :  { %v17372_v44 = vpop.eup %17371 }
0x3366   :  { %v14020_v42 = vpop.xlane.xlu1 %14019  ;;  %v14039_v54 = vmul.f32 %v17372_v44, %v18981_v21 }
0x3367   :  { %17377 = vrcp.f32 %v14020_v42 }
0x3369   :  { %v17374_v56 = vpop.eup %17373 }
0x336a   :  { %v14026_v45 = vpop.xlane.xlu1 %14025  ;;  %v14040_v61 = vmul.f32 %v17374_v56, %v18985_v32 }
0x336b   :  { %17379 = vrcp.f32 %v14026_v45  ;;  %v15666_v45 = vld [vmem:[%s19165_s4 + $0x2b] ss:$0 sm:$0xff] }
0x336d   :  { %v17376_v60 = vpop.eup %17375 }
0x336e   :  { %v14023_v58 = vpop.xlane.xlu0 %14022  ;;  %v14041_v43 = vmul.f32 %v17376_v60, %v18989_v59 }
0x336f   :  { %17381 = vrcp.f32 %v14023_v58 }
0x3371   :  { %v17378_v35 = vpop.eup %17377 }
0x3372   :  { %v14029_v51 = vpop.xlane.xlu0 %14028  ;;  %v14042_v2 = vmul.f32 %v17378_v35, %v18993_v48 }
0x3373   :  { %17383 = vrcp.f32 %v14029_v51 }
0x3375   :  { %v17380_v39 = vpop.eup %17379 }
0x3376   :  { %v14044_v22 = vmul.f32 %v17380_v39, %v18997_v52  ;;  %v15630_v52 = vld [vmem:[%s19163_s2 + $0x1c8] sm:$0xff] }
0x3379   :  { %v17382_v57 = vpop.eup %17381 }
0x337a   :  { %v14043_v28 = vmul.f32 %v17382_v57, %v19001_v12  ;;  %v17061_v12 = vpack.c.bf16 %v15630_v52, %v15629_v29  ;;  %v15673_v57 = vld [vmem:[%s19163_s2 + $0x1f0] sm:$0xff] }
0x337b   :  { %v15670_v52 = vld [vmem:[%s19165_s4 + $0x31] ss:$0 sm:$0xff] }
0x337d   :  { %v17384_v21 = vpop.eup %17383 }
0x337e   :  { %v14045_v3 = vmul.f32 %v17384_v21, %v19005_v30  ;;  %v17065_v30 = vpack.c.bf16 %v15632_v33, %v15631_v31  ;;  %v15679_v21 = vld [vmem:[%s19164_s3 + $0xc8] sm:$0xff] }
0x3390   :  { %v13326_v13 = vpop.trf.xlu1 }
0x3391   :  { %16773 = vmatpush3.xpose.msk.msra.mxu0 %vm723_vm4, %v13326_v13 }
0x3392   :  { %16782 = vmatprep.subr.mxu0 %v17444_v47  ;;  %v13358_v50 = vpop.trf.xlu0 }
0x3394   :  { %16775 = vmatmul.mubr.msk.f32.vlgmr.msra.gmra.mrb[104].mxu0 %vm723_vm4, %v14038_v46  ;;  %v13327_v53 = vpop.trf.xlu1 }
0x3395   :  { %16778 = vmatpush3.xpose.msk.msra.mxu1 %vm723_vm4, %v13327_v53  ;;  %16784 = vmatprep.mubr.msk.f32.mxu0 %vm17445_vm3, %v17444_v47 }
0x3396   :  { %16787 = vmatprep.subr.mxu1 %v17444_v47  ;;  %v13359_v55 = vpop.trf.xlu0 }
0x3398   :  { %v13328_v1 = vpop.trf.xlu1  ;;  %16780 = vmatmul.mubr.msk.f32.vlgmr.msra.gmra.mrb[118].mxu1 %vm723_vm4, %v14039_v54 }
0x3399   :  { %16783 = vmatpush3.xpose.msk.msra.mxu0 %vm723_vm4, %v13328_v1  ;;  %16789 = vmatprep.mubr.msk.f32.mxu1 %vm17445_vm3, %v17444_v47 }
0x339a   :  { %16792 = vmatprep.subr.mxu0 %v17444_v47  ;;  %v13360_v49 = vpop.trf.xlu0 }
0x339c   :  { %16785 = vmatmul.mubr.msk.f32.vlgmr.msra.gmra.mrb[106].mxu0 %vm723_vm4, %v14040_v61  ;;  %v13329_v0 = vpop.trf.xlu1 }
0x339d   :  { %16788 = vmatpush3.xpose.msk.msra.mxu1 %vm723_vm4, %v13329_v0  ;;  %16793 = vmatpush3.xpose.msk.msra.mxu0 %vm723_vm4, %v13358_v50 }
0x339e   :  { %16794 = vmatprep.mubr.msk.f32.mxu0 %vm17445_vm3, %v17444_v47  ;;  %16797 = vmatprep.subr.mxu1 %v17444_v47  ;;  %v13361_v63 = vpop.trf.xlu0 }
0x339f   :  { %16802 = vmatprep.subr.mxu0 %v17444_v47 }
0x33a0   :  { %16790 = vmatmul.mubr.msk.f32.vlgmr.msra.gmra.mrb[120].mxu1 %vm723_vm4, %v14041_v43  ;;  %16795 = vmatmul.mubr.msk.f32.vlgmr.msra.gmra.mrb[108].mxu0 %vm723_vm4, %v14042_v2  ;;  %v15672_v43 = vld [vmem:[%s19163_s2 + $0x1e8] sm:$0xff] }
0x33a1   :  { %16798 = vmatpush3.xpose.msk.msra.mxu1 %vm723_vm4, %v13359_v55  ;;  %16803 = vmatpush3.xpose.msk.msra.mxu0 %vm723_vm4, %v13360_v49 }
0x33a2   :  { %16799 = vmatprep.mubr.msk.f32.mxu1 %vm17445_vm3, %v17444_v47  ;;  %16804 = vmatprep.mubr.msk.f32.mxu0 %vm17445_vm3, %v17444_v47 }
0x33a3   :  { %16807 = vmatprep.subr.mxu1 %v17444_v47  ;;  %17062 = vmatprep.subr.bf16.mxu0 %v17061_v12 }
0x33a4   :  { %16800 = vmatmul.mubr.msk.f32.vlgmr.msra.gmra.mrb[122].mxu1 %vm723_vm4, %v14043_v28  ;;  %16805 = vmatmul.mubr.msk.f32.vlgmr.msra.gmra.mrb[110].mxu0 %vm723_vm4, %v14044_v22  ;;  %v15674_v22 = vld [vmem:[%s19163_s2 + $0x1f8] sm:$0xff] }
0x33a5   :  { %16808 = vmatpush3.xpose.msk.msra.mxu1 %vm723_vm4, %v13361_v63  ;;  %16809 = vmatprep.mubr.msk.f32.mxu1 %vm17445_vm3, %v17444_v47  ;;  %v17073_v28 = vpack.c.bf16 %v15674_v22, %v15673_v57  ;;  %v15678_v63 = vld [vmem:[%s19164_s3 + $0xc0] sm:$0xff] }
0x33a6   :  { %17064 = vmatpush3.bf16.msra.mxu0 %v17061_v12 }
0x33a7   :  { %17066 = vmatprep.subr.bf16.mxu0 %v17065_v30 }
0x33a8   :  { %16810 = vmatmul.mubr.msk.f32.vlgmr.msra.gmra.mrb[124].mxu1 %vm723_vm4, %v14045_v3  ;;  %v15680_v3 = vld [vmem:[%s19164_s3 + $0xd0] sm:$0xff] }
0x33aa   :  { %17068 = vmatpush3.bf16.msra.mxu0 %v17065_v30 }
0x3467   :  { %v14118_v17 = vpop.f32.mrb[104].mxu0 }
0x3468   :  { %v16776_v6 = vpop.f32.mrb[105].mxu0  ;;  %14654 = vxpose.xlu0.b32.start.end [1/1] (short) (narrow) %v14118_v17, 8  ;;  %v17077_v17 = vpack.c.bf16 %v15679_v21, %v15678_v63  ;;  %v15689_v21 = vld [vmem:[%s19165_s4 + $0x32] ss:$0 sm:$0xff] }
0x3469   :  { %v15681_v6 = vld [vmem:[%s19164_s3 + $0xd8] sm:$0xff] }
0x346a   :  { %17078 = vmatprep.subr.bf16.mxu0 %v17077_v17 }
0x346b   :  { %v14194_v4 = vpop.f32.mrb[118].mxu1 }
0x346c   :  { %14686 = vxpose.xlu0.b32.start.end [1/1] (short) (narrow) %v14194_v4, 8  ;;  %v16781_v32 = vpop.f32.mrb[119].mxu1  ;;  %v17081_v4 = vpack.c.bf16 %v15681_v6, %v15680_v3 }
0x346d   :  { %v15682_v32 = vld [vmem:[%s19164_s3 + $0xe0] sm:$0xff] }
0x346f   :  { %v14270_v5 = vpop.f32.mrb[106].mxu0 }
0x3470   :  { %v16786_v16 = vpop.f32.mrb[107].mxu0  ;;  %14718 = vxpose.xlu0.b32.start.end [1/1] (short) (narrow) %v14270_v5, 8  ;;  %v15683_v5 = vld [vmem:[%s19164_s3 + $0xe8] sm:$0xff] }
0x3471   :  { %v17085_v16 = vpack.c.bf16 %v15683_v5, %v15682_v32 }
0x3473   :  { %v14346_v36 = vpop.f32.mrb[120].mxu1  ;;  %v14422_v15 = vpop.f32.mrb[108].mxu0 }
0x3474   :  { %14750 = vxpose.xlu0.b32.start.end [1/1] (short) (narrow) %v14346_v36, 8  ;;  %v16791_v59 = vpop.f32.mrb[121].mxu1  ;;  %14782 = vxpose.xlu1.b32.start.end [1/1] (short) (narrow) %v14422_v15, 8  ;;  %v16796_v9 = vpop.f32.mrb[109].mxu0 }
0x3477   :  { %v14498_v47 = vpop.f32.mrb[122].mxu1  ;;  %v14574_v7 = vpop.f32.mrb[110].mxu0 }
0x3478   :  { %14814 = vxpose.xlu1.b32.start.end [1/1] (short) (narrow) %v14498_v47, 8  ;;  %v16801_v10 = vpop.f32.mrb[123].mxu1  ;;  %v16806_v19 = vpop.f32.mrb[111].mxu0 }
0x3479   :  { %v15669_v19 = vld [vmem:[%s19165_s4 + $0x30] ss:$0 sm:$0xff] }
0x347b   :  { %v14650_v48 = vpop.f32.mrb[124].mxu1 }
0x347c   :  { %14846 = vxpose.xlu1.b32.start.end [1/1] (short) (narrow) %v14574_v7, 8  ;;  %v16811_v14 = vpop.f32.mrb[125].mxu1 }
0x3480   :  { %14878 = vxpose.xlu1.b32.start.end [1/1] (short) (narrow) %v14650_v48, 8 }
0x34e8   :  { %v14670_v11 = vpop.trf.xlu0 }
0x34e9   :  { %14910 = vxpose.xlu0.b32.start [1/4] (short) (narrow) %v14670_v11, 8  ;;  %v15684_v11 = vld [vmem:[%s19164_s3 + $0xf0] sm:$0xff] }
0x34ec   :  { %v14702_v41 = vpop.trf.xlu0 }
0x34ed   :  { %14911 = vxpose.xlu0.b32.cont [2/4] (short) (narrow) %v14702_v41, 8  ;;  %v15685_v41 = vld [vmem:[%s19164_s3 + $0xf8] sm:$0xff] }
0x34f0   :  { %v14734_v23 = vpop.trf.xlu0 }
0x34f1   :  { %14912 = vxpose.xlu0.b32.cont [3/4] (short) (narrow) %v14734_v23, 8  ;;  %v17089_v23 = vpack.c.bf16 %v15685_v41, %v15684_v11 }
0x34f4   :  { %v14798_v40 = vpop.trf.xlu1  ;;  %v14766_v8 = vpop.trf.xlu0 }
0x34f5   :  { %14942 = vxpose.xlu1.b32.start [1/4] (short) (narrow) %v14798_v40, 8  ;;  %14913 = vxpose.xlu0.b32.end [4/4] (short) (narrow) %v14766_v8, 8  ;;  %v15675_v40 = vld [vmem:[%s19165_s4 + $0x2c] ss:$0 sm:$0xff] }
0x34f8   :  { %v14830_v62 = vpop.trf.xlu1 }
0x34f9   :  { %14943 = vxpose.xlu1.b32.cont [2/4] (short) (narrow) %v14830_v62, 8 }
0x34fc   :  { %v14862_v18 = vpop.trf.xlu1 }
0x34fd   :  { %14944 = vxpose.xlu1.b32.cont [3/4] (short) (narrow) %v14862_v18, 8 }
0x3500   :  { %v14894_v34 = vpop.trf.xlu1 }
0x3501   :  { %14945 = vxpose.xlu1.b32.end [4/4] (short) (narrow) %v14894_v34, 8 }
0x3569   :  { %v14926_v42 = vpop.trf.xlu0 }
0x356a   :  { %16820 = vmatprep.mubr.msk.f32.mxu0 %vm68_vm1, %v14926_v42 }
0x3575   :  { %v14958_v58 = vpop.trf.xlu1 }
0x3576   :  { %16821 = vmatmul.mubr.msk.f32.vlgmr.msra.gmra.mrb[112].mxu0 %vm68_vm1, %v14958_v58 }
0x3577   :  { %17080 = vmatpush3.bf16.msra.mxu0 %v17077_v17 }
0x3578   :  { %17082 = vmatprep.subr.bf16.mxu0 %v17081_v4 }
0x357b   :  { %17084 = vmatpush3.bf16.msra.mxu0 %v17081_v4  ;;  %v15690_v4 = vld [vmem:[%s19165_s4 + $0x33] ss:$0 sm:$0xff] }
0x357c   :  { %17086 = vmatprep.subr.bf16.mxu0 %v17085_v16 }
0x357f   :  { %17088 = vmatpush3.bf16.msra.mxu0 %v17085_v16 }
0x3580   :  { %17090 = vmatprep.subr.bf16.mxu0 %v17089_v23 }
0x3583   :  { %17092 = vmatpush3.bf16.msra.mxu0 %v17089_v23 }
0x3649   :  { %v16822_v51 = vpop.f32.mrb[112].mxu0 }
0x364a   :  { %v15056_v37 = vadd.f32 %v16822_v51, %v15666_v45  ;;  %v15050_v13 = vpop.f32.mrb[113].mxu0 }
0x364b   :  { %v15051_v46 = vadd.f32 %v15666_v45, %v15050_v13  ;;  %v15686_v45 = vld [vmem:[%s19165_s4 + $0x2d] ss:$0 sm:$0xff]  ;;  %s17417_s4 = scalar_lea.vmem %s15341_s21, 256 }
0x364c   :  { %v15060_v50 = vadd.f32 %v15056_v37, %v18908_v27  ;;  %p17418_p0 = scmp.ne.s32.totalorder %s15341_s21, %s17417_s4  ;;  %p17423_p2 = scmp.lt.s32.totalorder %s17417_s4, %s17417_s4 }
0x364d   :  { %v15059_v44 = vadd.f32 %v15051_v46, %v18900_v20  ;;  %v15671_v20 = vld [vmem:[%s19163_s2 + $0x1e0] sm:$0xff] }
0x364e   :  { %v15066_v53 = vsel %vm68_vm1, %v15060_v50, 0.0  ;;  %v17069_v2 = vpack.c.bf16 %v15672_v43, %v15671_v20  ;;  %p17424_p3 = por %p17423_p2, %p17422_p1 }
0x364f   :  { %15067 = vadd.xlane.f32.xlu1 %v15066_v53  ;;  %v15063_v54 = vsel %vm68_vm1, %v15059_v44, 0.0 }
0x3650   :  { %15064 = vadd.xlane.f32.xlu0 %v15063_v54  ;;  %17070 = vmatprep.subr.bf16.mxu1 %v17069_v2  ;;  %p17425_p4 = pnand %p17424_p3, %p17418_p0 }
0x3651   :  { %17072 = vmatpush3.bf16.msra.mxu1 %v17069_v2 }
0x3652   :  { %17074 = vmatprep.subr.bf16.mxu1 %v17073_v28 }
0x3655   :  { %17076 = vmatpush3.bf16.msra.mxu1 %v17073_v28 }
0x36dc   :  { %v15068_v55 = vpop.xlane.xlu1 %15067 }
0x36dd   :  { %v15070_v56 = vmul.f32 0.03125, %v15068_v55  ;;  %v15065_v1 = vpop.xlane.xlu0 %15064 }
0x36de   :  { %v15069_v60 = vmul.f32 0.03125, %v15065_v1 }
0x36df   :  { %v15072_v61 = vsub.f32 %v15060_v50, %v15070_v56 }
0x36e0   :  { %v15071_v35 = vsub.f32 %v15059_v44, %v15069_v60 }
0x36e1   :  { %v15074_v0 = vmul.f32 %v15072_v61, %v15072_v61 }
0x36e2   :  { %v15073_v49 = vmul.f32 %v15071_v35, %v15071_v35 }
0x36e3   :  { %v15078_v39 = vsel %vm68_vm1, %v15074_v0, 0.0 }
0x36e4   :  { %15079 = vadd.xlane.f32.xlu0 %v15078_v39  ;;  %v15075_v27 = vsel %vm68_vm1, %v15073_v49, 0.0 }
0x36e5   :  { %15076 = vadd.xlane.f32.xlu1 %v15075_v27 }
0x3771   :  { %v15080_v36 = vpop.xlane.xlu0 %15079 }
0x3772   :  { %v15082_v15 = vmul.f32 0.03125, %v15080_v36  ;;  %v15077_v59 = vpop.xlane.xlu1 %15076 }
0x3773   :  { %v15081_v9 = vmul.f32 0.03125, %v15077_v59 }
0x3774   :  { %v15084_v47 = vadd.f32 1e-05, %v15082_v15 }
0x3775   :  { %v15083_v7 = vadd.f32 1e-05, %v15081_v9 }
0x3776   :  { %17385 = vrsqrt.f32 %v15084_v47 }
0x3777   :  { %17387 = vrsqrt.f32 %v15083_v7 }
0x3780   :  { %v17386_v10 = vpop.eup %17385 }
0x3781   :  { %v17388_v48 = vpop.eup %17387  ;;  %v15088_v14 = vmul.f32 %v17386_v10, %v15072_v61 }
0x3782   :  { %v15087_v29 = vmul.f32 %v17388_v48, %v15071_v35 }
0x3783   :  { %v15094_v31 = vmul.f32 %v15669_v19, %v15088_v14 }
0x3784   :  { %v15093_v12 = vmul.f32 %v15669_v19, %v15087_v29 }
0x3785   :  { %v15100_v30 = vadd.f32 %v15670_v52, %v15094_v31 }
0x3786   :  { %v15099_v33 = vadd.f32 %v15670_v52, %v15093_v12 }
0x3788   :  { %16831 = vmatprep.mubr.msk.f32.mxu1 %vm68_vm1, %v15099_v33 }
0x3789   :  { %16832 = vmatmul.mubr.msk.f32.vlgmr.msra.gmra.mrb[126].mxu1 %vm68_vm1, %v15100_v30 }
0x385c   :  { %v16833_v8 = vpop.f32.mrb[126].mxu1 }
0x385d   :  { %v15189_v62 = vadd.f32 %v16833_v8, %v15675_v40  ;;  %v15183_v18 = vpop.f32.mrb[127].mxu1 }
0x385e   :  { %v15184_v34 = vadd.f32 %v15675_v40, %v15183_v18 }
0x385f   :  { %v15193_v58 = vmax.f32 %v15189_v62, 0.0 }
0x3860   :  { %v15192_v42 = vmax.f32 %v15184_v34, 0.0 }
0x3862   :  { %16850 = vmatprep.mubr.msk.f32.mxu0 %vm2558_vm5, %v15192_v42 }
0x3863   :  { %16851 = vmatmul.mubr.msk.f32.vlgmr.msra.gmra.mrb[114].mxu0 %vm2558_vm5, %v15193_v58 }
0x3936   :  { %v16852_v51 = vpop.f32.mrb[114].mxu0 }
0x3937   :  { %v15286_v37 = vadd.f32 %v16852_v51, %v15686_v45  ;;  %v15280_v13 = vpop.f32.mrb[115].mxu0 }
0x3938   :  { %v15281_v46 = vadd.f32 %v15686_v45, %v15280_v13 }
0x3939   :  { %v15290_v50 = vadd.f32 %v15286_v37, %v15100_v30 }
0x393a   :  { %v15289_v44 = vadd.f32 %v15281_v46, %v15099_v33 }
0x393b   :  { %v15296_v53 = vsel %vm68_vm1, %v15290_v50, 0.0 }
0x393c   :  { %15297 = vadd.xlane.f32.xlu0 %v15296_v53  ;;  %v15293_v54 = vsel %vm68_vm1, %v15289_v44, 0.0 }
0x393d   :  { %15294 = vadd.xlane.f32.xlu1 %v15293_v54 }
0x39c9   :  { %v15298_v55 = vpop.xlane.xlu0 %15297 }
0x39ca   :  { %v15300_v56 = vmul.f32 0.03125, %v15298_v55  ;;  %v15295_v1 = vpop.xlane.xlu1 %15294 }
0x39cb   :  { %v15299_v60 = vmul.f32 0.03125, %v15295_v1 }
0x39cc   :  { %v15302_v61 = vsub.f32 %v15290_v50, %v15300_v56 }
0x39cd   :  { %v15301_v35 = vsub.f32 %v15289_v44, %v15299_v60 }
0x39ce   :  { %v15304_v0 = vmul.f32 %v15302_v61, %v15302_v61 }
0x39cf   :  { %v15303_v49 = vmul.f32 %v15301_v35, %v15301_v35 }
0x39d0   :  { %v15308_v39 = vsel %vm68_vm1, %v15304_v0, 0.0 }
0x39d1   :  { %15309 = vadd.xlane.f32.xlu0 %v15308_v39  ;;  %v15305_v27 = vsel %vm68_vm1, %v15303_v49, 0.0 }
0x39d2   :  { %15306 = vadd.xlane.f32.xlu1 %v15305_v27 }
0x3a5e   :  { %v15310_v20 = vpop.xlane.xlu0 %15309 }
0x3a5f   :  { %v15312_v43 = vmul.f32 0.03125, %v15310_v20  ;;  %v15307_v2 = vpop.xlane.xlu1 %15306 }
0x3a60   :  { %v15311_v57 = vmul.f32 0.03125, %v15307_v2 }
0x3a61   :  { %v15314_v22 = vadd.f32 1e-05, %v15312_v43 }
0x3a62   :  { %v15313_v28 = vadd.f32 1e-05, %v15311_v57 }
0x3a63   :  { %17389 = vrsqrt.f32 %v15314_v22 }
0x3a64   :  { %17391 = vrsqrt.f32 %v15313_v28 }
0x3a6d   :  { %v17390_v63 = vpop.eup %17389 }
0x3a6e   :  { %v17392_v3 = vpop.eup %17391  ;;  %v15318_v17 = vmul.f32 %v17390_v63, %v15302_v61 }
0x3a6f   :  { %v15317_v6 = vmul.f32 %v17392_v3, %v15301_v35 }
0x3a70   :  { %v15324_v32 = vmul.f32 %v15689_v21, %v15318_v17 }
0x3a71   :  { %v15323_v5 = vmul.f32 %v15689_v21, %v15317_v6 }
0x3a72   :  { %v15330_v16 = vadd.f32 %v15690_v4, %v15324_v32 }
0x3a73   :  { %v15329_v36 = vadd.f32 %v15690_v4, %v15323_v5 }
0x3a74   :  { %v15332_v15 = vsel %vm10326_vm9, %v18372_v24, %v15330_v16 }
0x3a75   :  { %v15331_v59 = vsel %vm10325_vm8, %v18360_v26, %v15329_v36  ;;  %15334 = vst.msk [vmem:[#allocation2 + $0x8] sm:$0xff] %vm68_vm1, %v15332_v15 }
0x3a76   :  { %15333 = vst.msk [vmem:[#allocation2] sm:$0xff] %vm68_vm1, %v15331_v59 }
0x3a77   :  { %17428 = shalt.err (!%p17425_p4)
}
0x3a78   :  { %s17429_s6 = scalar_lea.hbm %s19166_s5, 256 }
0x3a79   :  { %p17430_p5 = scmp.ne.s32.totalorder %s19166_s5, %s17429_s6  ;;  %p17433_p6 = scmp.lt.u32.totalorder %s17429_s6, %s19166_s5 }
0x3a7b   :  { %p17435_p7 = pnand %p17433_p6, %p17430_p5 }
0x3a7d   :  { %17438 = shalt.err (!%p17435_p7)
}
0x3a7e   :  { %s17447_s9 = smov 128   ;;  %s17448_s1 = smov 8  }
0x3a7f   :  { %15346 = dma.vmem_to_hbm [thread:$0]  %s15341_s21, 256, %s19166_s5, [#allocation3], %s17447_s9, %s17447_s9, %s17448_s1  }
0x3a80   :  { %17439 = dma.done.wait [#allocation3], 256  }
0x3a81   :  { %17440 = vsyncadd [#allocation3], 4294967040 }
0x3a82   :  { %15350 = vsyncpa [#allocation3], 1 }

</bundles_post_ra>
